<compile_context>
chip_gen: v6e
topology: v6e:2x2x1
jax: 0.10.0
libtpu: 0.0.40
codegen_flags: <defaults>
</compile_context>

<pallas_src>
import functools

import numpy as np
import jax
import jax.numpy as jnp
from jax.experimental import pallas as pl
from jax.experimental.pallas import tpu as pltpu

NA = 3
ND = 6
NZ = 29          # latent size -> nz + na = 32 channels into the first conv
B = 2            # batch

# (Cin, Cout, kernel, stride, padding, Lin) for the 5 ConvTranspose1d layers.
LAYERS = [
    (NZ + NA, 512, 16, 1, 0, 1),
    (512,     256,  4, 2, 1, 16),
    (256,     128,  4, 2, 1, 32),
    (128,      64,  4, 2, 1, 64),
    (64,       ND,  4, 2, 1, 128),
]
K1 = LAYERS[0][2]     # 16: first-layer kernel size == fixed per-phase length M
L_FINAL = 256
BN_EPS = 1e-5
LANE = 128


def _pad_to(n, m):
    return n if n % m == 0 else ((n + m - 1) // m) * m


# Padded (Cin, Cout) for the 4 stride-2 layers: everything becomes a multiple
# of 128 lanes (layer-4 Cout 64->128, layer-5 Cin 64->128, layer-5 Cout 6->128).
PADDED = [(_pad_to(cin, LANE), _pad_to(cout, LANE)) for (cin, cout, *_r) in LAYERS[1:]]


# ----------------------------- kernel helpers ------------------------------

def _shift_down_one(block, batch):
    """block: (M*batch, C), rows ordered (m, b).  result[m] = block[m-1], block[-1]=0."""
    rolled = pltpu.roll(block, shift=batch, axis=0)
    ridx = jax.lax.broadcasted_iota(jnp.int32, block.shape, 0)
    return jnp.where(ridx >= batch, rolled, 0.0)


def _shift_up_one(block, batch):
    """result[m] = block[m+1], block[M]=0."""
    mb = block.shape[0]
    rolled = pltpu.roll(block, shift=mb - batch, axis=0)
    ridx = jax.lax.broadcasted_iota(jnp.int32, block.shape, 0)
    return jnp.where(ridx < mb - batch, rolled, 0.0)


def _stride2_lhs(h, num_phases, batch):
    """Fused-tap LHS operands (bf16) for a polyphase stride-2 ConvTranspose1d.

    h: (num_phases * M * batch, Cin) f32, phase-major.  Returns
    lhs_even = [h | prev], lhs_odd = [h | next], each (rows, 2*Cin) bf16.
    Cin is always a multiple of 128 here, so the lane concat is aligned.
    """
    p_in = num_phases
    n, _ = h.shape
    mb = n // p_in                           # rows per phase block (= 16*batch)

    wrap_prev = _shift_down_one(h[(p_in - 1) * mb:, :], batch)
    wrap_next = _shift_up_one(h[:mb, :], batch)
    if p_in > 1:
        prev_a = jnp.concatenate([wrap_prev, h[:(p_in - 1) * mb, :]], axis=0)
        next_a = jnp.concatenate([h[mb:, :], wrap_next], axis=0)
    else:
        prev_a, next_a = wrap_prev, wrap_next

    hb = h.astype(jnp.bfloat16)
    lhs_even = jnp.concatenate([hb, prev_a.astype(jnp.bfloat16)], axis=1)
    lhs_odd = jnp.concatenate([hb, next_a.astype(jnp.bfloat16)], axis=1)
    return lhs_even, lhs_odd


def _interleave(even, odd, p_in):
    """Phase-major reassembly: output block 2p = even block p, 2p+1 = odd block p.
    Blocks are 8-row aligned (32 rows at B=2), so this is a sublane-aligned concat."""
    mb = even.shape[0] // p_in
    if p_in == 1:
        return jnp.concatenate([even, odd], axis=0)
    blocks = []
    for p in range(p_in):
        blocks.append(even[p * mb:(p + 1) * mb])
        blocks.append(odd[p * mb:(p + 1) * mb])
    return jnp.concatenate(blocks, axis=0)


def _bn_relu(h, gamma, beta):
    """Training-mode BatchNorm1d + ReLU: two-pass batch stats, biased var, f32."""
    n = h.shape[0]
    mean = jnp.sum(h, axis=0, keepdims=True) * (1.0 / n)
    d = h - mean
    var = jnp.sum(d * d, axis=0, keepdims=True) * (1.0 / n)
    hn = d * jax.lax.rsqrt(var + BN_EPS)
    return jnp.maximum(hn * gamma + beta, 0.0)


# ------------------------------ Pallas kernel ------------------------------

def generator_kernel(x0_ref, g1_ref, b1_ref, g2_ref, b2_ref, g3_ref, b3_ref,
                     g4_ref, b4_ref,
                     w1_hbm, w2_hbm, w3_hbm, w4_hbm, w5_hbm,
                     out_ref,
                     w1_buf, w2_buf, w3_buf, w4_buf, w5_buf, sems,
                     *, batch):
    # Start every weight DMA up front; each layer waits for its own weights
    # only right before its matmuls, so w2..w5 fetches hide under compute.
    copies = [
        pltpu.make_async_copy(w1_hbm, w1_buf, sems.at[0]),
        pltpu.make_async_copy(w2_hbm, w2_buf, sems.at[1]),
        pltpu.make_async_copy(w3_hbm, w3_buf, sems.at[2]),
        pltpu.make_async_copy(w4_hbm, w4_buf, sems.at[3]),
        pltpu.make_async_copy(w5_hbm, w5_buf, sems.at[4]),
    ]
    for c in copies:
        c.start()

    # Layer 1: (16B, 16*Cin0) @ (16*Cin0, 512) against the block-diagonal
    # latent expansion (single matmul, P=1, M=16).
    copies[0].wait()
    h = jnp.dot(x0_ref[...].astype(jnp.bfloat16), w1_buf[...],
                preferred_element_type=jnp.float32)              # (16B, 512)
    h = _bn_relu(h, g1_ref[...], b1_ref[...])

    # Layers 2..4: fused-tap stride-2 convT + BN + ReLU (P doubles each time).
    for p_in, w_buf, cp, g_ref, b_ref in (
            (1, w2_buf, copies[1], g2_ref, b2_ref),
            (2, w3_buf, copies[2], g3_ref, b3_ref),
            (4, w4_buf, copies[3], g4_ref, b4_ref)):
        lhs_e, lhs_o = _stride2_lhs(h, p_in, batch)   # weight-independent: overlaps DMA
        cp.wait()
        even = jnp.dot(lhs_e, w_buf[0], preferred_element_type=jnp.float32)
        odd = jnp.dot(lhs_o, w_buf[1], preferred_element_type=jnp.float32)
        h = _bn_relu(_interleave(even, odd, p_in), g_ref[...], b_ref[...])

    # Layer 5 + tanh.  No in-kernel interleave: store [even-section ; odd-section];
    # the wrapper folds the phase interleave into its final NCL reshape/transpose.
    lhs_e, lhs_o = _stride2_lhs(h, 8, batch)
    copies[4].wait()
    even = jnp.dot(lhs_e, w5_buf[0], preferred_element_type=jnp.float32)
    odd = jnp.dot(lhs_o, w5_buf[1], preferred_element_type=jnp.float32)
    half = even.shape[0]
    out_ref[:half, :] = jnp.tanh(even)
    out_ref[half:, :] = jnp.tanh(odd)


# ------------------------------ host wrappers ------------------------------

def pack_params(ws, gammas, betas):
    """One-time host-side packing of the PyTorch-layout weights (hoisted)."""
    cin0 = LAYERS[0][0]
    w1 = jnp.transpose(ws[0], (2, 0, 1)).reshape(K1 * cin0, LAYERS[0][1])
    packed = {"w1": w1.astype(jnp.bfloat16), "w": [], "g": [], "b": []}
    for li in range(1, 5):
        w = ws[li]                                   # (Cin, Cout, 4)
        cin_p, cout_p = PADDED[li - 1]

        def tap(j, w=w, cin_p=cin_p, cout_p=cout_p):
            t = jnp.zeros((cin_p, cout_p), jnp.float32)
            return t.at[:w.shape[0], :w.shape[1]].set(w[:, :, j])

        we = jnp.concatenate([tap(1), tap(3)], axis=0)   # even outputs: taps 1, 3
        wo = jnp.concatenate([tap(2), tap(0)], axis=0)   # odd outputs:  taps 2, 0
        packed["w"].append(jnp.stack([we, wo], axis=0).astype(jnp.bfloat16))
    for li in range(4):
        g = jnp.asarray(gammas[li], jnp.float32)
        b = jnp.asarray(betas[li], jnp.float32)
        c_pad = _pad_to(g.shape[0], LANE)
        if c_pad != g.shape[0]:                           # layer-4 64 -> 128
            g = jnp.concatenate([g, jnp.ones((c_pad - g.shape[0],), jnp.float32)])
            b = jnp.concatenate([b, jnp.zeros((c_pad - b.shape[0],), jnp.float32)])
        packed["g"].append(g.reshape(1, -1))
        packed["b"].append(b.reshape(1, -1))
    return packed


@jax.jit
def generator_forward(x, y, packed):
    """x: (B, nz, 1) f32, y: (B, na) f32  ->  (B, ND, 256) f32 (PyTorch NCL)."""
    bb = x.shape[0]
    # TODO(synk): latent length > 1 not implemented; canonical DCGAN usage is L=1.
    assert x.shape[2] == 1
    x0 = jnp.concatenate([x[:, :, 0], y], axis=1)                 # (B, nz+na)
    cin0 = x0.shape[1]
    # Block-diagonal expansion: row (m*B+b), col (m'*cin0+c) = x0[b,c] * (m==m').
    eye = jnp.eye(K1, dtype=jnp.float32)
    x0big = jnp.einsum("mn,bc->mbnc", eye, x0).reshape(K1 * bb, K1 * cin0)

    cout_last = PADDED[-1][1]            # 128 (padded from ND=6)
    rows_out = 2 * 8 * K1 * bb           # [even-section ; odd-section]

    vmem = pl.BlockSpec(memory_space=pltpu.MemorySpace.VMEM)
    hbm = pl.BlockSpec(memory_space=pl.ANY)

    args = [x0big,
            packed["g"][0], packed["b"][0], packed["g"][1], packed["b"][1],
            packed["g"][2], packed["b"][2], packed["g"][3], packed["b"][3],
            packed["w1"], packed["w"][0], packed["w"][1], packed["w"][2],
            packed["w"][3]]
    in_specs = [vmem] * 9 + [hbm] * 5

    scratch = ([pltpu.VMEM(packed["w1"].shape, jnp.bfloat16)] +
               [pltpu.VMEM(w.shape, jnp.bfloat16) for w in packed["w"]] +
               [pltpu.SemaphoreType.DMA((5,))])

    # Advisory roofline for XLA's surrounding schedule (kernel is DMA-bound at B=2).
    flops = 2 * (16 * bb) * (K1 * cin0) * 512
    rows = 16 * bb
    for (cin_p, cout_p) in PADDED:
        flops += 2 * 2 * rows * (2 * cin_p) * cout_p
        rows *= 2
    bytes_accessed = (x0big.size * 4 + packed["w1"].size * 2 +
                      sum(w.size * 2 for w in packed["w"]) +
                      sum(g.size * 4 + b.size * 4
                          for g, b in zip(packed["g"], packed["b"])) +
                      rows_out * cout_last * 4)
    cost = pl.CostEstimate(flops=flops, transcendentals=rows_out * cout_last,
                           bytes_accessed=bytes_accessed)

    out_flat = pl.pallas_call(
        functools.partial(generator_kernel, batch=bb),
        out_shape=jax.ShapeDtypeStruct((rows_out, cout_last), jnp.float32),
        in_specs=in_specs,
        out_specs=vmem,
        scratch_shapes=scratch,
        compiler_params=pltpu.CompilerParams(vmem_limit_bytes=32 * 1024 * 1024),
        cost_estimate=cost,
    )(*args)

    # Rows ordered (section s in {even,odd}, layer-5 input phase p in [0,8),
    # within-phase m in [0,16), batch b); output position t = 16*m + 2*p + s.
    out = out_flat.reshape(2, 8, K1, bb, cout_last)[..., :ND]
    out = out.transpose(3, 4, 2, 1, 0).reshape(bb, ND, L_FINAL)
    return out


# ------------------------- deterministic parameters ------------------------

def init_params(key):
    ws, gammas, betas = [], [], []
    for (cin, cout, k, s, p, lin) in LAYERS:
        key, sub = jax.random.split(key)
        # PyTorch ConvTranspose1d weight layout: (Cin, Cout, K), no bias.
        ws.append(0.02 * jax.random.normal(sub, (cin, cout, k), jnp.float32))
    for c in (512, 256, 128, 64):
        key, k1, k2 = jax.random.split(key, 3)
        gammas.append(1.0 + 0.1 * jax.random.normal(k1, (c,), jnp.float32))
        betas.append(0.1 * jax.random.normal(k2, (c,), jnp.float32))
    return ws, gammas, betas


# ---------------------------- numpy reference ------------------------------

def _convt_ref(h, w, stride, pad):
    b_, cin, lin = h.shape
    _, cout, k = w.shape
    lout = (lin - 1) * stride - 2 * pad + k
    out = np.zeros((b_, cout, lout), dtype=np.float64)
    for i in range(lin):
        for j in range(k):
            t = i * stride - pad + j
            if 0 <= t < lout:
                out[:, :, t] += h[:, :, i] @ w[:, :, j]
    return out


def _bn_relu_ref(h, g, b):
    mean = h.mean(axis=(0, 2), keepdims=True)
    var = ((h - mean) ** 2).mean(axis=(0, 2), keepdims=True)
    hn = (h - mean) / np.sqrt(var + BN_EPS)
    return np.maximum(hn * g.reshape(1, -1, 1) + b.reshape(1, -1, 1), 0.0)


def reference_forward(x, y, ws, gammas, betas):
    x = np.asarray(x, np.float64)
    y = np.asarray(y, np.float64)
    bb, _, l = x.shape
    yb = np.broadcast_to(y[:, :, None], (bb, y.shape[1], l))
    h = np.concatenate([x, yb], axis=1)
    for li, (cin, cout, k, s, p, lin) in enumerate(LAYERS):
        h = _convt_ref(h, np.asarray(ws[li], np.float64), s, p)
        if li < 4:
            h = _bn_relu_ref(h, np.asarray(gammas[li], np.float64),
                             np.asarray(betas[li], np.float64))
    return np.tanh(h)


# --------------------------------- main ------------------------------------

if __name__ == "__main__":
    key = jax.random.PRNGKey(0)
    kx, ky, kp = jax.random.split(key, 3)
    x = jax.random.normal(kx, (B, NZ, 1), jnp.float32)
    y = jax.random.normal(ky, (B, NA), jnp.float32)
    ws, gammas, betas = init_params(kp)

    packed = pack_params(ws, gammas, betas)          # hoisted, done once
    out = generator_forward(x, y, packed)
    out = jax.block_until_ready(out)

    assert out.shape == (B, ND, L_FINAL), out.shape
    ref = reference_forward(x, y, ws, gammas, betas)
    np.testing.assert_allclose(np.asarray(out), ref, atol=2e-2, rtol=2e-2)

    print("KERNEL_OK")
</pallas_src>

<mosaic_0001>
module attributes {stable_mosaic.version = 11 : i64} {
  func.func @generator_kernel(%arg0: memref<32x512xf32, #tpu.memory_space<vmem>>, %arg1: memref<1x512xf32, #tpu.memory_space<vmem>>, %arg2: memref<1x512xf32, #tpu.memory_space<vmem>>, %arg3: memref<1x256xf32, #tpu.memory_space<vmem>>, %arg4: memref<1x256xf32, #tpu.memory_space<vmem>>, %arg5: memref<1x128xf32, #tpu.memory_space<vmem>>, %arg6: memref<1x128xf32, #tpu.memory_space<vmem>>, %arg7: memref<1x128xf32, #tpu.memory_space<vmem>>, %arg8: memref<1x128xf32, #tpu.memory_space<vmem>>, %arg9: memref<512x512xbf16, #tpu.memory_space<any>>, %arg10: memref<2x1024x256xbf16, #tpu.memory_space<any>>, %arg11: memref<2x512x128xbf16, #tpu.memory_space<any>>, %arg12: memref<2x256x128xbf16, #tpu.memory_space<any>>, %arg13: memref<2x256x128xbf16, #tpu.memory_space<any>>, %arg14: memref<512x128xf32, #tpu.memory_space<vmem>>, %arg15: memref<512x512xbf16, #tpu.memory_space<vmem>>, %arg16: memref<2x1024x256xbf16, #tpu.memory_space<vmem>>, %arg17: memref<2x512x128xbf16, #tpu.memory_space<vmem>>, %arg18: memref<2x256x128xbf16, #tpu.memory_space<vmem>>, %arg19: memref<2x256x128xbf16, #tpu.memory_space<vmem>>, %arg20: memref<5x!tpu.dma_semaphore, #tpu.memory_space<semaphore_mem>>) attributes {dimension_semantics = [], scalar_prefetch = 0 : i64, scratch_operands = 6 : i64, tpu.core_type = #tpu.core_type<tc>} {
    %c0_i32 = arith.constant 0 : i32
    %0 = tpu.memref_slice %arg20[%c0_i32] : memref<5x!tpu.dma_semaphore, #tpu.memory_space<semaphore_mem>> -> memref<1x!tpu.dma_semaphore, #tpu.memory_space<semaphore_mem>>
    %1 = tpu.memref_squeeze %0 : memref<1x!tpu.dma_semaphore, #tpu.memory_space<semaphore_mem>> -> memref<!tpu.dma_semaphore, #tpu.memory_space<semaphore_mem>>
    tpu.enqueue_dma source(%arg9 : memref<512x512xbf16, #tpu.memory_space<any>>) target(%arg15 : memref<512x512xbf16, #tpu.memory_space<vmem>>) target_semaphore(%1 : memref<!tpu.dma_semaphore, #tpu.memory_space<semaphore_mem>>)
    %c1_i32 = arith.constant 1 : i32
    %2 = tpu.memref_slice %arg20[%c1_i32] : memref<5x!tpu.dma_semaphore, #tpu.memory_space<semaphore_mem>> -> memref<1x!tpu.dma_semaphore, #tpu.memory_space<semaphore_mem>>
    %3 = tpu.memref_squeeze %2 : memref<1x!tpu.dma_semaphore, #tpu.memory_space<semaphore_mem>> -> memref<!tpu.dma_semaphore, #tpu.memory_space<semaphore_mem>>
    tpu.enqueue_dma source(%arg10 : memref<2x1024x256xbf16, #tpu.memory_space<any>>) target(%arg16 : memref<2x1024x256xbf16, #tpu.memory_space<vmem>>) target_semaphore(%3 : memref<!tpu.dma_semaphore, #tpu.memory_space<semaphore_mem>>)
    %c2_i32 = arith.constant 2 : i32
    %4 = tpu.memref_slice %arg20[%c2_i32] : memref<5x!tpu.dma_semaphore, #tpu.memory_space<semaphore_mem>> -> memref<1x!tpu.dma_semaphore, #tpu.memory_space<semaphore_mem>>
    %5 = tpu.memref_squeeze %4 : memref<1x!tpu.dma_semaphore, #tpu.memory_space<semaphore_mem>> -> memref<!tpu.dma_semaphore, #tpu.memory_space<semaphore_mem>>
    tpu.enqueue_dma source(%arg11 : memref<2x512x128xbf16, #tpu.memory_space<any>>) target(%arg17 : memref<2x512x128xbf16, #tpu.memory_space<vmem>>) target_semaphore(%5 : memref<!tpu.dma_semaphore, #tpu.memory_space<semaphore_mem>>)
    %c3_i32 = arith.constant 3 : i32
    %6 = tpu.memref_slice %arg20[%c3_i32] : memref<5x!tpu.dma_semaphore, #tpu.memory_space<semaphore_mem>> -> memref<1x!tpu.dma_semaphore, #tpu.memory_space<semaphore_mem>>
    %7 = tpu.memref_squeeze %6 : memref<1x!tpu.dma_semaphore, #tpu.memory_space<semaphore_mem>> -> memref<!tpu.dma_semaphore, #tpu.memory_space<semaphore_mem>>
    tpu.enqueue_dma source(%arg12 : memref<2x256x128xbf16, #tpu.memory_space<any>>) target(%arg18 : memref<2x256x128xbf16, #tpu.memory_space<vmem>>) target_semaphore(%7 : memref<!tpu.dma_semaphore, #tpu.memory_space<semaphore_mem>>)
    %c4_i32 = arith.constant 4 : i32
    %8 = tpu.memref_slice %arg20[%c4_i32] : memref<5x!tpu.dma_semaphore, #tpu.memory_space<semaphore_mem>> -> memref<1x!tpu.dma_semaphore, #tpu.memory_space<semaphore_mem>>
    %9 = tpu.memref_squeeze %8 : memref<1x!tpu.dma_semaphore, #tpu.memory_space<semaphore_mem>> -> memref<!tpu.dma_semaphore, #tpu.memory_space<semaphore_mem>>
    tpu.enqueue_dma source(%arg13 : memref<2x256x128xbf16, #tpu.memory_space<any>>) target(%arg19 : memref<2x256x128xbf16, #tpu.memory_space<vmem>>) target_semaphore(%9 : memref<!tpu.dma_semaphore, #tpu.memory_space<semaphore_mem>>)
    %c0_i32_0 = arith.constant 0 : i32
    %10 = tpu.memref_slice %arg20[%c0_i32_0] : memref<5x!tpu.dma_semaphore, #tpu.memory_space<semaphore_mem>> -> memref<1x!tpu.dma_semaphore, #tpu.memory_space<semaphore_mem>>
    %11 = tpu.memref_squeeze %10 : memref<1x!tpu.dma_semaphore, #tpu.memory_space<semaphore_mem>> -> memref<!tpu.dma_semaphore, #tpu.memory_space<semaphore_mem>>
    tpu.wait_dma2 semaphore(%11 : memref<!tpu.dma_semaphore, #tpu.memory_space<semaphore_mem>>) src(%arg9 : memref<512x512xbf16, #tpu.memory_space<any>>) dst(%arg15 : memref<512x512xbf16, #tpu.memory_space<vmem>>)
    %c0 = arith.constant 0 : index
    %c0_1 = arith.constant 0 : index
    %12 = vector.load %arg0[%c0, %c0_1] : memref<32x512xf32, #tpu.memory_space<vmem>>, vector<32x512xf32>
    %13 = arith.truncf %12 : vector<32x512xf32> to vector<32x512xbf16>
    %c0_2 = arith.constant 0 : index
    %c0_3 = arith.constant 0 : index
    %14 = vector.load %arg15[%c0_2, %c0_3] : memref<512x512xbf16, #tpu.memory_space<vmem>>, vector<512x512xbf16>
    %cst = arith.constant dense<0.000000e+00> : vector<32x512xf32>
    %15 = tpu.matmul %13, %14, %cst {dimension_numbers = #tpu.dot_dimension_numbers<[1], [0], [0], [1], [0, 0, 1, 1], [], []>} : vector<32x512xbf16>, vector<512x512xbf16>, vector<32x512xf32> -> vector<32x512xf32>
    %c0_4 = arith.constant 0 : index
    %c0_5 = arith.constant 0 : index
    %16 = vector.load %arg1[%c0_4, %c0_5] : memref<1x512xf32, #tpu.memory_space<vmem>>, vector<1x512xf32>
    %c0_6 = arith.constant 0 : index
    %c0_7 = arith.constant 0 : index
    %17 = vector.load %arg2[%c0_6, %c0_7] : memref<1x512xf32, #tpu.memory_space<vmem>>, vector<1x512xf32>
    %cst_8 = arith.constant dense<0.000000e+00> : vector<512xf32>
    %18 = vector.multi_reduction <add>, %15, %cst_8 [0] : vector<32x512xf32> to vector<512xf32>
    %19 = vector.shape_cast %18 : vector<512xf32> to vector<1x512xf32>
    %cst_9 = arith.constant 3.125000e-02 : f32
    %20 = vector.broadcast %cst_9 : f32 to vector<1x512xf32>
    %21 = arith.mulf %19, %20 : vector<1x512xf32>
    %22 = vector.broadcast %21 : vector<1x512xf32> to vector<32x512xf32>
    %23 = arith.subf %15, %22 : vector<32x512xf32>
    %24 = arith.mulf %23, %23 : vector<32x512xf32>
    %cst_10 = arith.constant dense<0.000000e+00> : vector<512xf32>
    %25 = vector.multi_reduction <add>, %24, %cst_10 [0] : vector<32x512xf32> to vector<512xf32>
    %26 = vector.shape_cast %25 : vector<512xf32> to vector<1x512xf32>
    %cst_11 = arith.constant 3.125000e-02 : f32
    %27 = vector.broadcast %cst_11 : f32 to vector<1x512xf32>
    %28 = arith.mulf %26, %27 : vector<1x512xf32>
    %cst_12 = arith.constant 9.99999974E-6 : f32
    %29 = vector.broadcast %cst_12 : f32 to vector<1x512xf32>
    %30 = arith.addf %28, %29 : vector<1x512xf32>
    %31 = math.rsqrt %30 : vector<1x512xf32>
    %32 = vector.broadcast %31 : vector<1x512xf32> to vector<32x512xf32>
    %33 = arith.mulf %23, %32 : vector<32x512xf32>
    %34 = vector.broadcast %16 : vector<1x512xf32> to vector<32x512xf32>
    %35 = arith.mulf %33, %34 : vector<32x512xf32>
    %36 = vector.broadcast %17 : vector<1x512xf32> to vector<32x512xf32>
    %37 = arith.addf %35, %36 : vector<32x512xf32>
    %cst_13 = arith.constant 0.000000e+00 : f32
    %38 = vector.broadcast %cst_13 : f32 to vector<32x512xf32>
    %39 = arith.maximumf %37, %38 : vector<32x512xf32>
    %c2_i32_14 = arith.constant 2 : i32
    %40 = tpu.dynamic_rotate %39 by %c2_i32_14 dim 0 : vector<32x512xf32>, i32 -> vector<32x512xf32>
    %41 = tpu.iota {dimensions = array<i32: 0>} : vector<32x512xi32>
    %c2_i32_15 = arith.constant 2 : i32
    %42 = vector.broadcast %c2_i32_15 : i32 to vector<32x512xi32>
    %43 = arith.cmpi sge, %41, %42 : vector<32x512xi32>
    %cst_16 = arith.constant 0.000000e+00 : f32
    %44 = vector.broadcast %cst_16 : f32 to vector<32x512xf32>
    %45 = arith.select %43, %40, %44 : vector<32x512xi1>, vector<32x512xf32>
    %c30_i32 = arith.constant 30 : i32
    %46 = tpu.dynamic_rotate %39 by %c30_i32 dim 0 : vector<32x512xf32>, i32 -> vector<32x512xf32>
    %47 = tpu.iota {dimensions = array<i32: 0>} : vector<32x512xi32>
    %c30_i32_17 = arith.constant 30 : i32
    %48 = vector.broadcast %c30_i32_17 : i32 to vector<32x512xi32>
    %49 = arith.cmpi slt, %47, %48 : vector<32x512xi32>
    %cst_18 = arith.constant 0.000000e+00 : f32
    %50 = vector.broadcast %cst_18 : f32 to vector<32x512xf32>
    %51 = arith.select %49, %46, %50 : vector<32x512xi1>, vector<32x512xf32>
    %52 = arith.truncf %39 : vector<32x512xf32> to vector<32x512xbf16>
    %53 = arith.truncf %45 : vector<32x512xf32> to vector<32x512xbf16>
    %54 = tpu.concatenate %52, %53 in 1 : vector<32x512xbf16>, vector<32x512xbf16> -> vector<32x1024xbf16>
    %55 = arith.truncf %51 : vector<32x512xf32> to vector<32x512xbf16>
    %56 = tpu.concatenate %52, %55 in 1 : vector<32x512xbf16>, vector<32x512xbf16> -> vector<32x1024xbf16>
    %c1_i32_19 = arith.constant 1 : i32
    %57 = tpu.memref_slice %arg20[%c1_i32_19] : memref<5x!tpu.dma_semaphore, #tpu.memory_space<semaphore_mem>> -> memref<1x!tpu.dma_semaphore, #tpu.memory_space<semaphore_mem>>
    %58 = tpu.memref_squeeze %57 : memref<1x!tpu.dma_semaphore, #tpu.memory_space<semaphore_mem>> -> memref<!tpu.dma_semaphore, #tpu.memory_space<semaphore_mem>>
    tpu.wait_dma2 semaphore(%58 : memref<!tpu.dma_semaphore, #tpu.memory_space<semaphore_mem>>) src(%arg10 : memref<2x1024x256xbf16, #tpu.memory_space<any>>) dst(%arg16 : memref<2x1024x256xbf16, #tpu.memory_space<vmem>>)
    %c0_20 = arith.constant 0 : index
    %c0_21 = arith.constant 0 : index
    %c0_22 = arith.constant 0 : index
    %59 = vector.load %arg16[%c0_20, %c0_21, %c0_22] : memref<2x1024x256xbf16, #tpu.memory_space<vmem>>, vector<1x1024x256xbf16>
    %60 = vector.shape_cast %59 : vector<1x1024x256xbf16> to vector<1024x256xbf16>
    %cst_23 = arith.constant dense<0.000000e+00> : vector<32x256xf32>
    %61 = tpu.matmul %54, %60, %cst_23 {dimension_numbers = #tpu.dot_dimension_numbers<[1], [0], [0], [1], [0, 0, 1, 1], [], []>} : vector<32x1024xbf16>, vector<1024x256xbf16>, vector<32x256xf32> -> vector<32x256xf32>
    %c1 = arith.constant 1 : index
    %c0_24 = arith.constant 0 : index
    %c0_25 = arith.constant 0 : index
    %62 = vector.load %arg16[%c1, %c0_24, %c0_25] : memref<2x1024x256xbf16, #tpu.memory_space<vmem>>, vector<1x1024x256xbf16>
    %63 = vector.shape_cast %62 : vector<1x1024x256xbf16> to vector<1024x256xbf16>
    %cst_26 = arith.constant dense<0.000000e+00> : vector<32x256xf32>
    %64 = tpu.matmul %56, %63, %cst_26 {dimension_numbers = #tpu.dot_dimension_numbers<[1], [0], [0], [1], [0, 0, 1, 1], [], []>} : vector<32x1024xbf16>, vector<1024x256xbf16>, vector<32x256xf32> -> vector<32x256xf32>
    %65 = tpu.concatenate %61, %64 in 0 : vector<32x256xf32>, vector<32x256xf32> -> vector<64x256xf32>
    %c0_27 = arith.constant 0 : index
    %c0_28 = arith.constant 0 : index
    %66 = vector.load %arg3[%c0_27, %c0_28] : memref<1x256xf32, #tpu.memory_space<vmem>>, vector<1x256xf32>
    %c0_29 = arith.constant 0 : index
    %c0_30 = arith.constant 0 : index
    %67 = vector.load %arg4[%c0_29, %c0_30] : memref<1x256xf32, #tpu.memory_space<vmem>>, vector<1x256xf32>
    %cst_31 = arith.constant dense<0.000000e+00> : vector<256xf32>
    %68 = vector.multi_reduction <add>, %65, %cst_31 [0] : vector<64x256xf32> to vector<256xf32>
    %69 = vector.shape_cast %68 : vector<256xf32> to vector<1x256xf32>
    %cst_32 = arith.constant 1.562500e-02 : f32
    %70 = vector.broadcast %cst_32 : f32 to vector<1x256xf32>
    %71 = arith.mulf %69, %70 : vector<1x256xf32>
    %72 = vector.broadcast %71 : vector<1x256xf32> to vector<64x256xf32>
    %73 = arith.subf %65, %72 : vector<64x256xf32>
    %74 = arith.mulf %73, %73 : vector<64x256xf32>
    %cst_33 = arith.constant dense<0.000000e+00> : vector<256xf32>
    %75 = vector.multi_reduction <add>, %74, %cst_33 [0] : vector<64x256xf32> to vector<256xf32>
    %76 = vector.shape_cast %75 : vector<256xf32> to vector<1x256xf32>
    %cst_34 = arith.constant 1.562500e-02 : f32
    %77 = vector.broadcast %cst_34 : f32 to vector<1x256xf32>
    %78 = arith.mulf %76, %77 : vector<1x256xf32>
    %cst_35 = arith.constant 9.99999974E-6 : f32
    %79 = vector.broadcast %cst_35 : f32 to vector<1x256xf32>
    %80 = arith.addf %78, %79 : vector<1x256xf32>
    %81 = math.rsqrt %80 : vector<1x256xf32>
    %82 = vector.broadcast %81 : vector<1x256xf32> to vector<64x256xf32>
    %83 = arith.mulf %73, %82 : vector<64x256xf32>
    %84 = vector.broadcast %66 : vector<1x256xf32> to vector<64x256xf32>
    %85 = arith.mulf %83, %84 : vector<64x256xf32>
    %86 = vector.broadcast %67 : vector<1x256xf32> to vector<64x256xf32>
    %87 = arith.addf %85, %86 : vector<64x256xf32>
    %cst_36 = arith.constant 0.000000e+00 : f32
    %88 = vector.broadcast %cst_36 : f32 to vector<64x256xf32>
    %89 = arith.maximumf %87, %88 : vector<64x256xf32>
    %90 = vector.extract_strided_slice %89 {offsets = [32, 0], sizes = [32, 256], strides = [1, 1]} : vector<64x256xf32> to vector<32x256xf32>
    %c2_i32_37 = arith.constant 2 : i32
    %91 = tpu.dynamic_rotate %90 by %c2_i32_37 dim 0 : vector<32x256xf32>, i32 -> vector<32x256xf32>
    %92 = tpu.iota {dimensions = array<i32: 0>} : vector<32x256xi32>
    %c2_i32_38 = arith.constant 2 : i32
    %93 = vector.broadcast %c2_i32_38 : i32 to vector<32x256xi32>
    %94 = arith.cmpi sge, %92, %93 : vector<32x256xi32>
    %cst_39 = arith.constant 0.000000e+00 : f32
    %95 = vector.broadcast %cst_39 : f32 to vector<32x256xf32>
    %96 = arith.select %94, %91, %95 : vector<32x256xi1>, vector<32x256xf32>
    %97 = vector.extract_strided_slice %89 {offsets = [0, 0], sizes = [32, 256], strides = [1, 1]} : vector<64x256xf32> to vector<32x256xf32>
    %c30_i32_40 = arith.constant 30 : i32
    %98 = tpu.dynamic_rotate %97 by %c30_i32_40 dim 0 : vector<32x256xf32>, i32 -> vector<32x256xf32>
    %99 = tpu.iota {dimensions = array<i32: 0>} : vector<32x256xi32>
    %c30_i32_41 = arith.constant 30 : i32
    %100 = vector.broadcast %c30_i32_41 : i32 to vector<32x256xi32>
    %101 = arith.cmpi slt, %99, %100 : vector<32x256xi32>
    %cst_42 = arith.constant 0.000000e+00 : f32
    %102 = vector.broadcast %cst_42 : f32 to vector<32x256xf32>
    %103 = arith.select %101, %98, %102 : vector<32x256xi1>, vector<32x256xf32>
    %104 = vector.extract_strided_slice %89 {offsets = [0, 0], sizes = [32, 256], strides = [1, 1]} : vector<64x256xf32> to vector<32x256xf32>
    %105 = tpu.concatenate %96, %104 in 0 : vector<32x256xf32>, vector<32x256xf32> -> vector<64x256xf32>
    %106 = vector.extract_strided_slice %89 {offsets = [32, 0], sizes = [32, 256], strides = [1, 1]} : vector<64x256xf32> to vector<32x256xf32>
    %107 = tpu.concatenate %106, %103 in 0 : vector<32x256xf32>, vector<32x256xf32> -> vector<64x256xf32>
    %108 = arith.truncf %89 : vector<64x256xf32> to vector<64x256xbf16>
    %109 = arith.truncf %105 : vector<64x256xf32> to vector<64x256xbf16>
    %110 = tpu.concatenate %108, %109 in 1 : vector<64x256xbf16>, vector<64x256xbf16> -> vector<64x512xbf16>
    %111 = arith.truncf %107 : vector<64x256xf32> to vector<64x256xbf16>
    %112 = tpu.concatenate %108, %111 in 1 : vector<64x256xbf16>, vector<64x256xbf16> -> vector<64x512xbf16>
    %c2_i32_43 = arith.constant 2 : i32
    %113 = tpu.memref_slice %arg20[%c2_i32_43] : memref<5x!tpu.dma_semaphore, #tpu.memory_space<semaphore_mem>> -> memref<1x!tpu.dma_semaphore, #tpu.memory_space<semaphore_mem>>
    %114 = tpu.memref_squeeze %113 : memref<1x!tpu.dma_semaphore, #tpu.memory_space<semaphore_mem>> -> memref<!tpu.dma_semaphore, #tpu.memory_space<semaphore_mem>>
    tpu.wait_dma2 semaphore(%114 : memref<!tpu.dma_semaphore, #tpu.memory_space<semaphore_mem>>) src(%arg11 : memref<2x512x128xbf16, #tpu.memory_space<any>>) dst(%arg17 : memref<2x512x128xbf16, #tpu.memory_space<vmem>>)
    %c0_44 = arith.constant 0 : index
    %c0_45 = arith.constant 0 : index
    %c0_46 = arith.constant 0 : index
    %115 = vector.load %arg17[%c0_44, %c0_45, %c0_46] : memref<2x512x128xbf16, #tpu.memory_space<vmem>>, vector<1x512x128xbf16>
    %116 = vector.shape_cast %115 : vector<1x512x128xbf16> to vector<512x128xbf16>
    %cst_47 = arith.constant dense<0.000000e+00> : vector<64x128xf32>
    %117 = tpu.matmul %110, %116, %cst_47 {dimension_numbers = #tpu.dot_dimension_numbers<[1], [0], [0], [1], [0, 0, 1, 1], [], []>} : vector<64x512xbf16>, vector<512x128xbf16>, vector<64x128xf32> -> vector<64x128xf32>
    %c1_48 = arith.constant 1 : index
    %c0_49 = arith.constant 0 : index
    %c0_50 = arith.constant 0 : index
    %118 = vector.load %arg17[%c1_48, %c0_49, %c0_50] : memref<2x512x128xbf16, #tpu.memory_space<vmem>>, vector<1x512x128xbf16>
    %119 = vector.shape_cast %118 : vector<1x512x128xbf16> to vector<512x128xbf16>
    %cst_51 = arith.constant dense<0.000000e+00> : vector<64x128xf32>
    %120 = tpu.matmul %112, %119, %cst_51 {dimension_numbers = #tpu.dot_dimension_numbers<[1], [0], [0], [1], [0, 0, 1, 1], [], []>} : vector<64x512xbf16>, vector<512x128xbf16>, vector<64x128xf32> -> vector<64x128xf32>
    %121 = vector.extract_strided_slice %117 {offsets = [0, 0], sizes = [32, 128], strides = [1, 1]} : vector<64x128xf32> to vector<32x128xf32>
    %122 = vector.extract_strided_slice %120 {offsets = [0, 0], sizes = [32, 128], strides = [1, 1]} : vector<64x128xf32> to vector<32x128xf32>
    %123 = vector.extract_strided_slice %117 {offsets = [32, 0], sizes = [32, 128], strides = [1, 1]} : vector<64x128xf32> to vector<32x128xf32>
    %124 = vector.extract_strided_slice %120 {offsets = [32, 0], sizes = [32, 128], strides = [1, 1]} : vector<64x128xf32> to vector<32x128xf32>
    %125 = tpu.concatenate %121, %122, %123, %124 in 0 : vector<32x128xf32>, vector<32x128xf32>, vector<32x128xf32>, vector<32x128xf32> -> vector<128x128xf32>
    %c0_52 = arith.constant 0 : index
    %c0_53 = arith.constant 0 : index
    %126 = vector.load %arg5[%c0_52, %c0_53] : memref<1x128xf32, #tpu.memory_space<vmem>>, vector<1x128xf32>
    %c0_54 = arith.constant 0 : index
    %c0_55 = arith.constant 0 : index
    %127 = vector.load %arg6[%c0_54, %c0_55] : memref<1x128xf32, #tpu.memory_space<vmem>>, vector<1x128xf32>
    %cst_56 = arith.constant dense<0.000000e+00> : vector<128xf32>
    %128 = vector.multi_reduction <add>, %125, %cst_56 [0] : vector<128x128xf32> to vector<128xf32>
    %129 = vector.shape_cast %128 : vector<128xf32> to vector<1x128xf32>
    %cst_57 = arith.constant 7.812500e-03 : f32
    %130 = vector.broadcast %cst_57 : f32 to vector<1x128xf32>
    %131 = arith.mulf %129, %130 : vector<1x128xf32>
    %132 = vector.broadcast %131 : vector<1x128xf32> to vector<128x128xf32>
    %133 = arith.subf %125, %132 : vector<128x128xf32>
    %134 = arith.mulf %133, %133 : vector<128x128xf32>
    %cst_58 = arith.constant dense<0.000000e+00> : vector<128xf32>
    %135 = vector.multi_reduction <add>, %134, %cst_58 [0] : vector<128x128xf32> to vector<128xf32>
    %136 = vector.shape_cast %135 : vector<128xf32> to vector<1x128xf32>
    %cst_59 = arith.constant 7.812500e-03 : f32
    %137 = vector.broadcast %cst_59 : f32 to vector<1x128xf32>
    %138 = arith.mulf %136, %137 : vector<1x128xf32>
    %cst_60 = arith.constant 9.99999974E-6 : f32
    %139 = vector.broadcast %cst_60 : f32 to vector<1x128xf32>
    %140 = arith.addf %138, %139 : vector<1x128xf32>
    %141 = math.rsqrt %140 : vector<1x128xf32>
    %142 = vector.broadcast %141 : vector<1x128xf32> to vector<128x128xf32>
    %143 = arith.mulf %133, %142 : vector<128x128xf32>
    %144 = vector.broadcast %126 : vector<1x128xf32> to vector<128x128xf32>
    %145 = arith.mulf %143, %144 : vector<128x128xf32>
    %146 = vector.broadcast %127 : vector<1x128xf32> to vector<128x128xf32>
    %147 = arith.addf %145, %146 : vector<128x128xf32>
    %cst_61 = arith.constant 0.000000e+00 : f32
    %148 = vector.broadcast %cst_61 : f32 to vector<128x128xf32>
    %149 = arith.maximumf %147, %148 : vector<128x128xf32>
    %150 = vector.extract_strided_slice %149 {offsets = [96, 0], sizes = [32, 128], strides = [1, 1]} : vector<128x128xf32> to vector<32x128xf32>
    %c2_i32_62 = arith.constant 2 : i32
    %151 = tpu.dynamic_rotate %150 by %c2_i32_62 dim 0 : vector<32x128xf32>, i32 -> vector<32x128xf32>
    %152 = tpu.iota {dimensions = array<i32: 0>} : vector<32x128xi32>
    %c2_i32_63 = arith.constant 2 : i32
    %153 = vector.broadcast %c2_i32_63 : i32 to vector<32x128xi32>
    %154 = arith.cmpi sge, %152, %153 : vector<32x128xi32>
    %cst_64 = arith.constant 0.000000e+00 : f32
    %155 = vector.broadcast %cst_64 : f32 to vector<32x128xf32>
    %156 = arith.select %154, %151, %155 : vector<32x128xi1>, vector<32x128xf32>
    %157 = vector.extract_strided_slice %149 {offsets = [0, 0], sizes = [32, 128], strides = [1, 1]} : vector<128x128xf32> to vector<32x128xf32>
    %c30_i32_65 = arith.constant 30 : i32
    %158 = tpu.dynamic_rotate %157 by %c30_i32_65 dim 0 : vector<32x128xf32>, i32 -> vector<32x128xf32>
    %159 = tpu.iota {dimensions = array<i32: 0>} : vector<32x128xi32>
    %c30_i32_66 = arith.constant 30 : i32
    %160 = vector.broadcast %c30_i32_66 : i32 to vector<32x128xi32>
    %161 = arith.cmpi slt, %159, %160 : vector<32x128xi32>
    %cst_67 = arith.constant 0.000000e+00 : f32
    %162 = vector.broadcast %cst_67 : f32 to vector<32x128xf32>
    %163 = arith.select %161, %158, %162 : vector<32x128xi1>, vector<32x128xf32>
    %164 = vector.extract_strided_slice %149 {offsets = [0, 0], sizes = [96, 128], strides = [1, 1]} : vector<128x128xf32> to vector<96x128xf32>
    %165 = tpu.concatenate %156, %164 in 0 : vector<32x128xf32>, vector<96x128xf32> -> vector<128x128xf32>
    %166 = vector.extract_strided_slice %149 {offsets = [32, 0], sizes = [96, 128], strides = [1, 1]} : vector<128x128xf32> to vector<96x128xf32>
    %167 = tpu.concatenate %166, %163 in 0 : vector<96x128xf32>, vector<32x128xf32> -> vector<128x128xf32>
    %168 = arith.truncf %149 : vector<128x128xf32> to vector<128x128xbf16>
    %169 = arith.truncf %165 : vector<128x128xf32> to vector<128x128xbf16>
    %170 = tpu.concatenate %168, %169 in 1 : vector<128x128xbf16>, vector<128x128xbf16> -> vector<128x256xbf16>
    %171 = arith.truncf %167 : vector<128x128xf32> to vector<128x128xbf16>
    %172 = tpu.concatenate %168, %171 in 1 : vector<128x128xbf16>, vector<128x128xbf16> -> vector<128x256xbf16>
    %c3_i32_68 = arith.constant 3 : i32
    %173 = tpu.memref_slice %arg20[%c3_i32_68] : memref<5x!tpu.dma_semaphore, #tpu.memory_space<semaphore_mem>> -> memref<1x!tpu.dma_semaphore, #tpu.memory_space<semaphore_mem>>
    %174 = tpu.memref_squeeze %173 : memref<1x!tpu.dma_semaphore, #tpu.memory_space<semaphore_mem>> -> memref<!tpu.dma_semaphore, #tpu.memory_space<semaphore_mem>>
    tpu.wait_dma2 semaphore(%174 : memref<!tpu.dma_semaphore, #tpu.memory_space<semaphore_mem>>) src(%arg12 : memref<2x256x128xbf16, #tpu.memory_space<any>>) dst(%arg18 : memref<2x256x128xbf16, #tpu.memory_space<vmem>>)
    %c0_69 = arith.constant 0 : index
    %c0_70 = arith.constant 0 : index
    %c0_71 = arith.constant 0 : index
    %175 = vector.load %arg18[%c0_69, %c0_70, %c0_71] : memref<2x256x128xbf16, #tpu.memory_space<vmem>>, vector<1x256x128xbf16>
    %176 = vector.shape_cast %175 : vector<1x256x128xbf16> to vector<256x128xbf16>
    %cst_72 = arith.constant dense<0.000000e+00> : vector<128x128xf32>
    %177 = tpu.matmul %170, %176, %cst_72 {dimension_numbers = #tpu.dot_dimension_numbers<[1], [0], [0], [1], [0, 0, 1, 1], [], []>} : vector<128x256xbf16>, vector<256x128xbf16>, vector<128x128xf32> -> vector<128x128xf32>
    %c1_73 = arith.constant 1 : index
    %c0_74 = arith.constant 0 : index
    %c0_75 = arith.constant 0 : index
    %178 = vector.load %arg18[%c1_73, %c0_74, %c0_75] : memref<2x256x128xbf16, #tpu.memory_space<vmem>>, vector<1x256x128xbf16>
    %179 = vector.shape_cast %178 : vector<1x256x128xbf16> to vector<256x128xbf16>
    %cst_76 = arith.constant dense<0.000000e+00> : vector<128x128xf32>
    %180 = tpu.matmul %172, %179, %cst_76 {dimension_numbers = #tpu.dot_dimension_numbers<[1], [0], [0], [1], [0, 0, 1, 1], [], []>} : vector<128x256xbf16>, vector<256x128xbf16>, vector<128x128xf32> -> vector<128x128xf32>
    %181 = vector.extract_strided_slice %177 {offsets = [0, 0], sizes = [32, 128], strides = [1, 1]} : vector<128x128xf32> to vector<32x128xf32>
    %182 = vector.extract_strided_slice %180 {offsets = [0, 0], sizes = [32, 128], strides = [1, 1]} : vector<128x128xf32> to vector<32x128xf32>
    %183 = vector.extract_strided_slice %177 {offsets = [32, 0], sizes = [32, 128], strides = [1, 1]} : vector<128x128xf32> to vector<32x128xf32>
    %184 = vector.extract_strided_slice %180 {offsets = [32, 0], sizes = [32, 128], strides = [1, 1]} : vector<128x128xf32> to vector<32x128xf32>
    %185 = vector.extract_strided_slice %177 {offsets = [64, 0], sizes = [32, 128], strides = [1, 1]} : vector<128x128xf32> to vector<32x128xf32>
    %186 = vector.extract_strided_slice %180 {offsets = [64, 0], sizes = [32, 128], strides = [1, 1]} : vector<128x128xf32> to vector<32x128xf32>
    %187 = vector.extract_strided_slice %177 {offsets = [96, 0], sizes = [32, 128], strides = [1, 1]} : vector<128x128xf32> to vector<32x128xf32>
    %188 = vector.extract_strided_slice %180 {offsets = [96, 0], sizes = [32, 128], strides = [1, 1]} : vector<128x128xf32> to vector<32x128xf32>
    %189 = tpu.concatenate %181, %182, %183, %184, %185, %186, %187, %188 in 0 : vector<32x128xf32>, vector<32x128xf32>, vector<32x128xf32>, vector<32x128xf32>, vector<32x128xf32>, vector<32x128xf32>, vector<32x128xf32>, vector<32x128xf32> -> vector<256x128xf32>
    %c0_77 = arith.constant 0 : index
    %c0_78 = arith.constant 0 : index
    %190 = vector.load %arg7[%c0_77, %c0_78] : memref<1x128xf32, #tpu.memory_space<vmem>>, vector<1x128xf32>
    %c0_79 = arith.constant 0 : index
    %c0_80 = arith.constant 0 : index
    %191 = vector.load %arg8[%c0_79, %c0_80] : memref<1x128xf32, #tpu.memory_space<vmem>>, vector<1x128xf32>
    %cst_81 = arith.constant dense<0.000000e+00> : vector<128xf32>
    %192 = vector.multi_reduction <add>, %189, %cst_81 [0] : vector<256x128xf32> to vector<128xf32>
    %193 = vector.shape_cast %192 : vector<128xf32> to vector<1x128xf32>
    %cst_82 = arith.constant 3.906250e-03 : f32
    %194 = vector.broadcast %cst_82 : f32 to vector<1x128xf32>
    %195 = arith.mulf %193, %194 : vector<1x128xf32>
    %196 = vector.broadcast %195 : vector<1x128xf32> to vector<256x128xf32>
    %197 = arith.subf %189, %196 : vector<256x128xf32>
    %198 = arith.mulf %197, %197 : vector<256x128xf32>
    %cst_83 = arith.constant dense<0.000000e+00> : vector<128xf32>
    %199 = vector.multi_reduction <add>, %198, %cst_83 [0] : vector<256x128xf32> to vector<128xf32>
    %200 = vector.shape_cast %199 : vector<128xf32> to vector<1x128xf32>
    %cst_84 = arith.constant 3.906250e-03 : f32
    %201 = vector.broadcast %cst_84 : f32 to vector<1x128xf32>
    %202 = arith.mulf %200, %201 : vector<1x128xf32>
    %cst_85 = arith.constant 9.99999974E-6 : f32
    %203 = vector.broadcast %cst_85 : f32 to vector<1x128xf32>
    %204 = arith.addf %202, %203 : vector<1x128xf32>
    %205 = math.rsqrt %204 : vector<1x128xf32>
    %206 = vector.broadcast %205 : vector<1x128xf32> to vector<256x128xf32>
    %207 = arith.mulf %197, %206 : vector<256x128xf32>
    %208 = vector.broadcast %190 : vector<1x128xf32> to vector<256x128xf32>
    %209 = arith.mulf %207, %208 : vector<256x128xf32>
    %210 = vector.broadcast %191 : vector<1x128xf32> to vector<256x128xf32>
    %211 = arith.addf %209, %210 : vector<256x128xf32>
    %cst_86 = arith.constant 0.000000e+00 : f32
    %212 = vector.broadcast %cst_86 : f32 to vector<256x128xf32>
    %213 = arith.maximumf %211, %212 : vector<256x128xf32>
    %214 = vector.extract_strided_slice %213 {offsets = [224, 0], sizes = [32, 128], strides = [1, 1]} : vector<256x128xf32> to vector<32x128xf32>
    %c2_i32_87 = arith.constant 2 : i32
    %215 = tpu.dynamic_rotate %214 by %c2_i32_87 dim 0 : vector<32x128xf32>, i32 -> vector<32x128xf32>
    %216 = tpu.iota {dimensions = array<i32: 0>} : vector<32x128xi32>
    %c2_i32_88 = arith.constant 2 : i32
    %217 = vector.broadcast %c2_i32_88 : i32 to vector<32x128xi32>
    %218 = arith.cmpi sge, %216, %217 : vector<32x128xi32>
    %cst_89 = arith.constant 0.000000e+00 : f32
    %219 = vector.broadcast %cst_89 : f32 to vector<32x128xf32>
    %220 = arith.select %218, %215, %219 : vector<32x128xi1>, vector<32x128xf32>
    %221 = vector.extract_strided_slice %213 {offsets = [0, 0], sizes = [32, 128], strides = [1, 1]} : vector<256x128xf32> to vector<32x128xf32>
    %c30_i32_90 = arith.constant 30 : i32
    %222 = tpu.dynamic_rotate %221 by %c30_i32_90 dim 0 : vector<32x128xf32>, i32 -> vector<32x128xf32>
    %223 = tpu.iota {dimensions = array<i32: 0>} : vector<32x128xi32>
    %c30_i32_91 = arith.constant 30 : i32
    %224 = vector.broadcast %c30_i32_91 : i32 to vector<32x128xi32>
    %225 = arith.cmpi slt, %223, %224 : vector<32x128xi32>
    %cst_92 = arith.constant 0.000000e+00 : f32
    %226 = vector.broadcast %cst_92 : f32 to vector<32x128xf32>
    %227 = arith.select %225, %222, %226 : vector<32x128xi1>, vector<32x128xf32>
    %228 = vector.extract_strided_slice %213 {offsets = [0, 0], sizes = [224, 128], strides = [1, 1]} : vector<256x128xf32> to vector<224x128xf32>
    %229 = tpu.concatenate %220, %228 in 0 : vector<32x128xf32>, vector<224x128xf32> -> vector<256x128xf32>
    %230 = vector.extract_strided_slice %213 {offsets = [32, 0], sizes = [224, 128], strides = [1, 1]} : vector<256x128xf32> to vector<224x128xf32>
    %231 = tpu.concatenate %230, %227 in 0 : vector<224x128xf32>, vector<32x128xf32> -> vector<256x128xf32>
    %232 = arith.truncf %213 : vector<256x128xf32> to vector<256x128xbf16>
    %233 = arith.truncf %229 : vector<256x128xf32> to vector<256x128xbf16>
    %234 = tpu.concatenate %232, %233 in 1 : vector<256x128xbf16>, vector<256x128xbf16> -> vector<256x256xbf16>
    %235 = arith.truncf %231 : vector<256x128xf32> to vector<256x128xbf16>
    %236 = tpu.concatenate %232, %235 in 1 : vector<256x128xbf16>, vector<256x128xbf16> -> vector<256x256xbf16>
    %c4_i32_93 = arith.constant 4 : i32
    %237 = tpu.memref_slice %arg20[%c4_i32_93] : memref<5x!tpu.dma_semaphore, #tpu.memory_space<semaphore_mem>> -> memref<1x!tpu.dma_semaphore, #tpu.memory_space<semaphore_mem>>
    %238 = tpu.memref_squeeze %237 : memref<1x!tpu.dma_semaphore, #tpu.memory_space<semaphore_mem>> -> memref<!tpu.dma_semaphore, #tpu.memory_space<semaphore_mem>>
    tpu.wait_dma2 semaphore(%238 : memref<!tpu.dma_semaphore, #tpu.memory_space<semaphore_mem>>) src(%arg13 : memref<2x256x128xbf16, #tpu.memory_space<any>>) dst(%arg19 : memref<2x256x128xbf16, #tpu.memory_space<vmem>>)
    %c0_94 = arith.constant 0 : index
    %c0_95 = arith.constant 0 : index
    %c0_96 = arith.constant 0 : index
    %239 = vector.load %arg19[%c0_94, %c0_95, %c0_96] : memref<2x256x128xbf16, #tpu.memory_space<vmem>>, vector<1x256x128xbf16>
    %240 = vector.shape_cast %239 : vector<1x256x128xbf16> to vector<256x128xbf16>
    %cst_97 = arith.constant dense<0.000000e+00> : vector<256x128xf32>
    %241 = tpu.matmul %234, %240, %cst_97 {dimension_numbers = #tpu.dot_dimension_numbers<[1], [0], [0], [1], [0, 0, 1, 1], [], []>} : vector<256x256xbf16>, vector<256x128xbf16>, vector<256x128xf32> -> vector<256x128xf32>
    %c1_98 = arith.constant 1 : index
    %c0_99 = arith.constant 0 : index
    %c0_100 = arith.constant 0 : index
    %242 = vector.load %arg19[%c1_98, %c0_99, %c0_100] : memref<2x256x128xbf16, #tpu.memory_space<vmem>>, vector<1x256x128xbf16>
    %243 = vector.shape_cast %242 : vector<1x256x128xbf16> to vector<256x128xbf16>
    %cst_101 = arith.constant dense<0.000000e+00> : vector<256x128xf32>
    %244 = tpu.matmul %236, %243, %cst_101 {dimension_numbers = #tpu.dot_dimension_numbers<[1], [0], [0], [1], [0, 0, 1, 1], [], []>} : vector<256x256xbf16>, vector<256x128xbf16>, vector<256x128xf32> -> vector<256x128xf32>
    %245 = math.tanh %241 : vector<256x128xf32>
    %c0_102 = arith.constant 0 : index
    %c0_103 = arith.constant 0 : index
    %246 = vector.load %arg14[%c0_102, %c0_103] : memref<512x128xf32, #tpu.memory_space<vmem>>, vector<256x128xf32>
    tpu.vector_store %arg14[%c0_102, %c0_103], %245 {strides = array<i32>} : memref<512x128xf32, #tpu.memory_space<vmem>>, vector<256x128xf32>,
    %247 = math.tanh %244 : vector<256x128xf32>
    %c256 = arith.constant 256 : index
    %c0_104 = arith.constant 0 : index
    %248 = vector.load %arg14[%c256, %c0_104] : memref<512x128xf32, #tpu.memory_space<vmem>>, vector<256x128xf32>
    tpu.vector_store %arg14[%c256, %c0_104], %247 {strides = array<i32>} : memref<512x128xf32, #tpu.memory_space<vmem>>, vector<256x128xf32>,
    return
  }
}

</mosaic_0001>

<bundles_post_ra>
// kernel: generator_forward.1
= control target key start
LH: loop header
LB: loop body
LE: loop exit
PB: predicated region body
PF: predicated region fallthrough
CT: control target
= control target key end

     0   :  { %s10838_s0 = inlined_call_operand.vmem [shape: f32[32,512], index: 0, kind: input, shape index: {}]   ;;  %s10839_s1 = inlined_call_operand.vmem [shape: f32[1,512], index: 1, kind: input, shape index: {}]   ;;  %s10840_s2 = inlined_call_operand.vmem [shape: f32[1,512], index: 2, kind: input, shape index: {}]   ;;  %s10841_s3 = inlined_call_operand.vmem [shape: f32[1,256], index: 3, kind: input, shape index: {}]   ;;  %s10842_s4 = inlined_call_operand.vmem [shape: f32[1,256], index: 4, kind: input, shape index: {}]   ;;  %s10843_s5 = inlined_call_operand.vmem [shape: f32[1,128], index: 5, kind: input, shape index: {}]   ;;  %s10844_s6 = inlined_call_operand.vmem [shape: f32[1,128], index: 6, kind: input, shape index: {}]   ;;  %s10845_s7 = inlined_call_operand.vmem [shape: f32[1,128], index: 7, kind: input, shape index: {}]   ;;  %s10846_s8 = inlined_call_operand.vmem [shape: f32[1,128], index: 8, kind: input, shape index: {}]   ;;  %s10847_s9 = inlined_call_operand.vmem [shape: bf16[512,512], index: 9, kind: input, shape index: {}]   ;;  %s10848_s10 = inlined_call_operand.hbm [shape: bf16[2,1024,256], index: 10, kind: input, shape index: {}]   ;;  %s10849_s11 = inlined_call_operand.hbm [shape: bf16[2,512,128], index: 11, kind: input, shape index: {}]   ;;  %s10850_s12 = inlined_call_operand.hbm [shape: bf16[2,256,128], index: 12, kind: input, shape index: {}]   ;;  %s10851_s13 = inlined_call_operand.hbm [shape: bf16[2,256,128], index: 13, kind: input, shape index: {}]   ;;  %s10852_s14 = inlined_call_operand.vmem [shape: f32[512,128], index: 14, kind: output, shape index: {}]  }
   0x1   :  { %v8386_v0 = vld [vmem:[%s10847_s9] sm:$0xff]  ;;  %v8391_v1 = vld [vmem:[%s10847_s9 + $0x8] sm:$0xff]  ;;  %v8396_v2 = vld [vmem:[%s10847_s9 + $0x10] sm:$0xff] }
   0x2   :  { %10934 = vst [vmem:[#allocation24_spill] sm:$0xff] %v8391_v1  ;;  %v8401_v3 = vld [vmem:[%s10847_s9 + $0x18] sm:$0xff]  ;;  %v8406_v4 = vld [vmem:[%s10847_s9 + $0x20] sm:$0xff]  ;;  %v8411_v5 = vld [vmem:[%s10847_s9 + $0x28] sm:$0xff] }
   0x3   :  { %10935 = vst [vmem:[#allocation25_spill] sm:$0xff] %v8401_v3  ;;  %10936 = vst [vmem:[#allocation26_spill] sm:$0xff] %v8411_v5  ;;  %v8416_v6 = vld [vmem:[%s10847_s9 + $0x30] sm:$0xff]  ;;  %v8421_v7 = vld [vmem:[%s10847_s9 + $0x38] sm:$0xff] }
   0x4   :  { %10937 = vst [vmem:[#allocation27_spill] sm:$0xff] %v8421_v7  ;;  %v8426_v8 = vld [vmem:[%s10847_s9 + $0x40] sm:$0xff]  ;;  %v8431_v9 = vld [vmem:[%s10847_s9 + $0x48] sm:$0xff]  ;;  %v8436_v10 = vld [vmem:[%s10847_s9 + $0x50] sm:$0xff] }
   0x5   :  { %10938 = vst [vmem:[#allocation28_spill] sm:$0xff] %v8431_v9  ;;  %v8441_v11 = vld [vmem:[%s10847_s9 + $0x58] sm:$0xff]  ;;  %v8446_v12 = vld [vmem:[%s10847_s9 + $0x60] sm:$0xff]  ;;  %v8451_v13 = vld [vmem:[%s10847_s9 + $0x68] sm:$0xff] }
   0x6   :  { %10939 = vst [vmem:[#allocation29_spill] sm:$0xff] %v8441_v11  ;;  %10940 = vst [vmem:[#allocation30_spill] sm:$0xff] %v8451_v13  ;;  %v8456_v14 = vld [vmem:[%s10847_s9 + $0x70] sm:$0xff]  ;;  %v8461_v15 = vld [vmem:[%s10847_s9 + $0x78] sm:$0xff] }
   0x7   :  { %10941 = vst [vmem:[#allocation31_spill] sm:$0xff] %v8461_v15  ;;  %v8466_v16 = vld [vmem:[%s10847_s9 + $0x80] sm:$0xff]  ;;  %v8471_v17 = vld [vmem:[%s10847_s9 + $0x88] sm:$0xff]  ;;  %v8476_v18 = vld [vmem:[%s10847_s9 + $0x90] sm:$0xff] }
   0x8   :  { %10942 = vst [vmem:[#allocation32_spill] sm:$0xff] %v8471_v17  ;;  %v8481_v19 = vld [vmem:[%s10847_s9 + $0x98] sm:$0xff]  ;;  %v8486_v20 = vld [vmem:[%s10847_s9 + $0xa0] sm:$0xff]  ;;  %v8491_v21 = vld [vmem:[%s10847_s9 + $0xa8] sm:$0xff] }
   0x9   :  { %10943 = vst [vmem:[#allocation33_spill] sm:$0xff] %v8481_v19  ;;  %10944 = vst [vmem:[#allocation34_spill] sm:$0xff] %v8491_v21  ;;  %v8496_v22 = vld [vmem:[%s10847_s9 + $0xb0] sm:$0xff]  ;;  %v8501_v23 = vld [vmem:[%s10847_s9 + $0xb8] sm:$0xff] }
   0xa   :  { %10945 = vst [vmem:[#allocation35_spill] sm:$0xff] %v8501_v23  ;;  %v8506_v24 = vld [vmem:[%s10847_s9 + $0xc0] sm:$0xff]  ;;  %v8511_v25 = vld [vmem:[%s10847_s9 + $0xc8] sm:$0xff]  ;;  %v8516_v26 = vld [vmem:[%s10847_s9 + $0xd0] sm:$0xff] }
   0xb   :  { %10946 = vst [vmem:[#allocation36_spill] sm:$0xff] %v8511_v25  ;;  %v8521_v27 = vld [vmem:[%s10847_s9 + $0xd8] sm:$0xff]  ;;  %v8526_v28 = vld [vmem:[%s10847_s9 + $0xe0] sm:$0xff]  ;;  %v8531_v29 = vld [vmem:[%s10847_s9 + $0xe8] sm:$0xff] }
   0xc   :  { %10947 = vst [vmem:[#allocation37_spill] sm:$0xff] %v8521_v27  ;;  %10948 = vst [vmem:[#allocation38_spill] sm:$0xff] %v8531_v29  ;;  %v8536_v30 = vld [vmem:[%s10847_s9 + $0xf0] sm:$0xff]  ;;  %v8541_v31 = vld [vmem:[%s10847_s9 + $0xf8] sm:$0xff] }
   0xd   :  { %10949 = vst [vmem:[#allocation39_spill] sm:$0xff] %v8541_v31  ;;  %v8546_v32 = vld [vmem:[%s10847_s9 + $0x100] sm:$0xff]  ;;  %v8551_v33 = vld [vmem:[%s10847_s9 + $0x108] sm:$0xff]  ;;  %v8556_v34 = vld [vmem:[%s10847_s9 + $0x110] sm:$0xff] }
   0xe   :  { %10950 = vst [vmem:[#allocation40_spill] sm:$0xff] %v8546_v32  ;;  %10951 = vst [vmem:[#allocation41_spill] sm:$0xff] %v8551_v33  ;;  %v8561_v35 = vld [vmem:[%s10847_s9 + $0x118] sm:$0xff]  ;;  %v8566_v36 = vld [vmem:[%s10847_s9 + $0x120] sm:$0xff] }
   0xf   :  { %10952 = vst [vmem:[#allocation42_spill] sm:$0xff] %v8556_v34  ;;  %10953 = vst [vmem:[#allocation43_spill] sm:$0xff] %v8561_v35  ;;  %v8571_v37 = vld [vmem:[%s10847_s9 + $0x128] sm:$0xff]  ;;  %v8576_v38 = vld [vmem:[%s10847_s9 + $0x130] sm:$0xff] }
  0x10   :  { %10954 = vst [vmem:[#allocation44_spill] sm:$0xff] %v8566_v36  ;;  %10955 = vst [vmem:[#allocation45_spill] sm:$0xff] %v8571_v37  ;;  %v8581_v39 = vld [vmem:[%s10847_s9 + $0x138] sm:$0xff]  ;;  %v8586_v40 = vld [vmem:[%s10847_s9 + $0x140] sm:$0xff] }
  0x11   :  { %10956 = vst [vmem:[#allocation46_spill] sm:$0xff] %v8581_v39  ;;  %v8591_v41 = vld [vmem:[%s10847_s9 + $0x148] sm:$0xff]  ;;  %v8596_v42 = vld [vmem:[%s10847_s9 + $0x150] sm:$0xff]  ;;  %v8601_v43 = vld [vmem:[%s10847_s9 + $0x158] sm:$0xff] }
  0x12   :  { %10957 = vst [vmem:[#allocation47_spill] sm:$0xff] %v8591_v41  ;;  %10958 = vst [vmem:[#allocation48_spill] sm:$0xff] %v8601_v43  ;;  %v8606_v44 = vld [vmem:[%s10847_s9 + $0x160] sm:$0xff]  ;;  %v8611_v45 = vld [vmem:[%s10847_s9 + $0x168] sm:$0xff] }
  0x13   :  { %10959 = vst [vmem:[#allocation49_spill] sm:$0xff] %v8611_v45  ;;  %v8616_v46 = vld [vmem:[%s10847_s9 + $0x170] sm:$0xff]  ;;  %v8621_v47 = vld [vmem:[%s10847_s9 + $0x178] sm:$0xff]  ;;  %v8626_v48 = vld [vmem:[%s10847_s9 + $0x180] sm:$0xff] }
  0x14   :  { %10960 = vst [vmem:[#allocation50_spill] sm:$0xff] %v8621_v47  ;;  %v8631_v49 = vld [vmem:[%s10847_s9 + $0x188] sm:$0xff]  ;;  %v8636_v50 = vld [vmem:[%s10847_s9 + $0x190] sm:$0xff]  ;;  %v8641_v51 = vld [vmem:[%s10847_s9 + $0x198] sm:$0xff] }
  0x15   :  { %10961 = vst [vmem:[#allocation51_spill] sm:$0xff] %v8631_v49  ;;  %10962 = vst [vmem:[#allocation52_spill] sm:$0xff] %v8641_v51  ;;  %v8646_v52 = vld [vmem:[%s10847_s9 + $0x1a0] sm:$0xff]  ;;  %v8651_v53 = vld [vmem:[%s10847_s9 + $0x1a8] sm:$0xff] }
  0x16   :  { %10963 = vst [vmem:[#allocation53_spill] sm:$0xff] %v8651_v53  ;;  %v8656_v54 = vld [vmem:[%s10847_s9 + $0x1b0] sm:$0xff]  ;;  %v8661_v55 = vld [vmem:[%s10847_s9 + $0x1b8] sm:$0xff]  ;;  %v8666_v56 = vld [vmem:[%s10847_s9 + $0x1c0] sm:$0xff] }
  0x17   :  { %10964 = vst [vmem:[#allocation54_spill] sm:$0xff] %v8661_v55  ;;  %v8671_v57 = vld [vmem:[%s10847_s9 + $0x1c8] sm:$0xff]  ;;  %v8676_v58 = vld [vmem:[%s10847_s9 + $0x1d0] sm:$0xff]  ;;  %v8681_v59 = vld [vmem:[%s10847_s9 + $0x1d8] sm:$0xff] }
  0x18   :  { %10965 = vst [vmem:[#allocation55_spill] sm:$0xff] %v8671_v57  ;;  %10966 = vst [vmem:[#allocation56_spill] sm:$0xff] %v8681_v59  ;;  %v8686_v60 = vld [vmem:[%s10847_s9 + $0x1e0] sm:$0xff]  ;;  %v8691_v61 = vld [vmem:[%s10847_s9 + $0x1e8] sm:$0xff] }
  0x19   :  { %10967 = vst [vmem:[#allocation57_spill] sm:$0xff] %v8691_v61  ;;  %v8696_v62 = vld [vmem:[%s10847_s9 + $0x1f0] sm:$0xff]  ;;  %v8701_v63 = vld [vmem:[%s10847_s9 + $0x1f8] sm:$0xff]  ;;  %v8706_v33 = vld [vmem:[%s10847_s9 + $0x200] sm:$0xff] }
  0x1a   :  { %10968 = vst [vmem:[#allocation58_spill] sm:$0xff] %v8701_v63  ;;  %v8711_v35 = vld [vmem:[%s10847_s9 + $0x208] sm:$0xff]  ;;  %v8716_v37 = vld [vmem:[%s10847_s9 + $0x210] sm:$0xff]  ;;  %v8721_v39 = vld [vmem:[%s10847_s9 + $0x218] sm:$0xff] }
  0x1b   :  { %10969 = vst [vmem:[#allocation59_spill] sm:$0xff] %v8711_v35  ;;  %10970 = vst [vmem:[#allocation60_spill] sm:$0xff] %v8721_v39  ;;  %v8726_v41 = vld [vmem:[%s10847_s9 + $0x220] sm:$0xff]  ;;  %v8731_v43 = vld [vmem:[%s10847_s9 + $0x228] sm:$0xff] }
  0x1c   :  { %10971 = vst [vmem:[#allocation61_spill] sm:$0xff] %v8731_v43  ;;  %v8736_v45 = vld [vmem:[%s10847_s9 + $0x230] sm:$0xff]  ;;  %v8741_v47 = vld [vmem:[%s10847_s9 + $0x238] sm:$0xff]  ;;  %v8746_v49 = vld [vmem:[%s10847_s9 + $0x240] sm:$0xff] }
  0x1d   :  { %10972 = vst [vmem:[#allocation62_spill] sm:$0xff] %v8741_v47  ;;  %v8751_v51 = vld [vmem:[%s10847_s9 + $0x248] sm:$0xff]  ;;  %v8756_v53 = vld [vmem:[%s10847_s9 + $0x250] sm:$0xff]  ;;  %v8761_v55 = vld [vmem:[%s10847_s9 + $0x258] sm:$0xff] }
  0x1e   :  { %10973 = vst [vmem:[#allocation63_spill] sm:$0xff] %v8751_v51  ;;  %10974 = vst [vmem:[#allocation64_spill] sm:$0xff] %v8761_v55  ;;  %v8766_v57 = vld [vmem:[%s10847_s9 + $0x260] sm:$0xff]  ;;  %v8771_v59 = vld [vmem:[%s10847_s9 + $0x268] sm:$0xff] }
  0x1f   :  { %10975 = vst [vmem:[#allocation65_spill] sm:$0xff] %v8771_v59  ;;  %v8776_v61 = vld [vmem:[%s10847_s9 + $0x270] sm:$0xff]  ;;  %v8781_v63 = vld [vmem:[%s10847_s9 + $0x278] sm:$0xff]  ;;  %v8786_v35 = vld [vmem:[%s10847_s9 + $0x280] sm:$0xff] }
  0x20   :  { %10976 = vst [vmem:[#allocation66_spill] sm:$0xff] %v8781_v63  ;;  %v8791_v39 = vld [vmem:[%s10847_s9 + $0x288] sm:$0xff]  ;;  %v8796_v1 = vld [vmem:[%s10847_s9 + $0x290] sm:$0xff]  ;;  %v8801_v3 = vld [vmem:[%s10847_s9 + $0x298] sm:$0xff] }
  0x21   :  { %10977 = vst [vmem:[#allocation67_spill] sm:$0xff] %v8791_v39  ;;  %10978 = vst [vmem:[#allocation68_spill] sm:$0xff] %v8801_v3  ;;  %v8806_v43 = vld [vmem:[%s10847_s9 + $0x2a0] sm:$0xff]  ;;  %v8811_v47 = vld [vmem:[%s10847_s9 + $0x2a8] sm:$0xff] }
  0x22   :  { %10979 = vst [vmem:[#allocation69_spill] sm:$0xff] %v8811_v47  ;;  %v8816_v5 = vld [vmem:[%s10847_s9 + $0x2b0] sm:$0xff]  ;;  %v8821_v7 = vld [vmem:[%s10847_s9 + $0x2b8] sm:$0xff]  ;;  %v8826_v51 = vld [vmem:[%s10847_s9 + $0x2c0] sm:$0xff] }
  0x23   :  { %10980 = vst [vmem:[#allocation70_spill] sm:$0xff] %v8821_v7  ;;  %v8831_v55 = vld [vmem:[%s10847_s9 + $0x2c8] sm:$0xff]  ;;  %v8836_v9 = vld [vmem:[%s10847_s9 + $0x2d0] sm:$0xff]  ;;  %v8841_v11 = vld [vmem:[%s10847_s9 + $0x2d8] sm:$0xff] }
  0x24   :  { %10981 = vst [vmem:[#allocation71_spill] sm:$0xff] %v8831_v55  ;;  %10982 = vst [vmem:[#allocation72_spill] sm:$0xff] %v8841_v11  ;;  %v8846_v59 = vld [vmem:[%s10847_s9 + $0x2e0] sm:$0xff]  ;;  %v8851_v63 = vld [vmem:[%s10847_s9 + $0x2e8] sm:$0xff] }
  0x25   :  { %10983 = vst [vmem:[#allocation73_spill] sm:$0xff] %v8851_v63  ;;  %v8856_v13 = vld [vmem:[%s10847_s9 + $0x2f0] sm:$0xff]  ;;  %v8861_v15 = vld [vmem:[%s10847_s9 + $0x2f8] sm:$0xff]  ;;  %v8866_v39 = vld [vmem:[%s10847_s9 + $0x300] sm:$0xff] }
  0x26   :  { %10984 = vst [vmem:[#allocation74_spill] sm:$0xff] %v8861_v15  ;;  %10985 = vst [vmem:[#allocation75_spill] sm:$0xff] %v8866_v39  ;;  %v8871_v3 = vld [vmem:[%s10847_s9 + $0x308] sm:$0xff]  ;;  %v8876_v17 = vld [vmem:[%s10847_s9 + $0x310] sm:$0xff] }
  0x27   :  { %10986 = vst [vmem:[#allocation76_spill] sm:$0xff] %v8871_v3  ;;  %10987 = vst [vmem:[#allocation77_spill] sm:$0xff] %v8876_v17  ;;  %v8881_v19 = vld [vmem:[%s10847_s9 + $0x318] sm:$0xff]  ;;  %v8886_v47 = vld [vmem:[%s10847_s9 + $0x320] sm:$0xff] }
  0x28   :  { %10988 = vst [vmem:[#allocation78_spill] sm:$0xff] %v8881_v19  ;;  %10989 = vst [vmem:[#allocation79_spill] sm:$0xff] %v8886_v47  ;;  %v8891_v7 = vld [vmem:[%s10847_s9 + $0x328] sm:$0xff]  ;;  %v8896_v3 = vld [vmem:[%s10847_s9 + $0x330] sm:$0xff] }
  0x29   :  { %10990 = vst [vmem:[#allocation80_spill] sm:$0xff] %v8891_v7  ;;  %10991 = vst [vmem:[#allocation81_spill] sm:$0xff] %v8896_v3  ;;  %v8901_v21 = vld [vmem:[%s10847_s9 + $0x338] sm:$0xff]  ;;  %v8906_v19 = vld [vmem:[%s10847_s9 + $0x340] sm:$0xff] }
  0x2a   :  { %10992 = vst [vmem:[#allocation82_spill] sm:$0xff] %v8901_v21  ;;  %v8911_v23 = vld [vmem:[%s10847_s9 + $0x348] sm:$0xff]  ;;  %v8916_v7 = vld [vmem:[%s10847_s9 + $0x350] sm:$0xff]  ;;  %v8921_v55 = vld [vmem:[%s10847_s9 + $0x358] sm:$0xff] }
  0x2b   :  { %10993 = vst [vmem:[#allocation83_spill] sm:$0xff] %v8911_v23  ;;  %10994 = vst [vmem:[#allocation84_spill] sm:$0xff] %v8921_v55  ;;  %v8926_v21 = vld [vmem:[%s10847_s9 + $0x360] sm:$0xff]  ;;  %v8931_v11 = vld [vmem:[%s10847_s9 + $0x368] sm:$0xff] }
  0x2c   :  { %10995 = vst [vmem:[#allocation85_spill] sm:$0xff] %v8931_v11  ;;  %v8936_v23 = vld [vmem:[%s10847_s9 + $0x370] sm:$0xff]  ;;  %v8941_v25 = vld [vmem:[%s10847_s9 + $0x378] sm:$0xff]  ;;  %v8946_v55 = vld [vmem:[%s10847_s9 + $0x380] sm:$0xff] }
  0x2d   :  { %10996 = vst [vmem:[#allocation86_spill] sm:$0xff] %v8941_v25  ;;  %v8951_v27 = vld [vmem:[%s10847_s9 + $0x388] sm:$0xff]  ;;  %v8956_v11 = vld [vmem:[%s10847_s9 + $0x390] sm:$0xff]  ;;  %v8961_v63 = vld [vmem:[%s10847_s9 + $0x398] sm:$0xff] }
  0x2e   :  { %10997 = vst [vmem:[#allocation87_spill] sm:$0xff] %v8951_v27  ;;  %10998 = vst [vmem:[#allocation88_spill] sm:$0xff] %v8961_v63  ;;  %v8966_v25 = vld [vmem:[%s10847_s9 + $0x3a0] sm:$0xff]  ;;  %v8971_v15 = vld [vmem:[%s10847_s9 + $0x3a8] sm:$0xff] }
  0x2f   :  { %10999 = vst [vmem:[#allocation89_spill] sm:$0xff] %v8971_v15  ;;  %v8976_v27 = vld [vmem:[%s10847_s9 + $0x3b0] sm:$0xff]  ;;  %v8981_v29 = vld [vmem:[%s10847_s9 + $0x3b8] sm:$0xff]  ;;  %v8986_v63 = vld [vmem:[%s10847_s9 + $0x3c0] sm:$0xff] }
  0x30   :  { %11000 = vst [vmem:[#allocation90_spill] sm:$0xff] %v8981_v29  ;;  %v8991_v31 = vld [vmem:[%s10847_s9 + $0x3c8] sm:$0xff]  ;;  %v8996_v15 = vld [vmem:[%s10847_s9 + $0x3d0] sm:$0xff]  ;;  %v9001_v39 = vld [vmem:[%s10847_s9 + $0x3d8] sm:$0xff] }
  0x31   :  { %11001 = vst [vmem:[#allocation91_spill] sm:$0xff] %v8991_v31  ;;  %11002 = vst [vmem:[#allocation92_spill] sm:$0xff] %v9001_v39  ;;  %v9006_v29 = vld [vmem:[%s10847_s9 + $0x3e0] sm:$0xff]  ;;  %v9011_v17 = vld [vmem:[%s10847_s9 + $0x3e8] sm:$0xff] }
  0x32   :  { %11003 = vst [vmem:[#allocation93_spill] sm:$0xff] %v9011_v17  ;;  %v9016_v31 = vld [vmem:[%s10847_s9 + $0x3f0] sm:$0xff]  ;;  %v9021_v32 = vld [vmem:[%s10847_s9 + $0x3f8] sm:$0xff] }
  0x33   :  { %11004 = vst [vmem:[#allocation94_spill] sm:$0xff] %v9021_v32 }
  0x34   :  { %334 = vsyncadd [#allocation7], 16384  ;;  %s8303_s29 = smov [#allocation3]   ;;  %s8304_s15 = smov [#allocation4]  }
  0x35   :  { %s343_s30 = sshll.u32 %s8303_s29, 4  ;;  %s355_s16 = sshll.u32 %s8304_s15, 4  ;;  %s344_s30 = int_to_ptr.vmem [resolvable:$true] %s343_s30  ;;  %s356_s16 = int_to_ptr.vmem [resolvable:$true] %s355_s16 }
  0x36   :  { %s8221_s17 = scalar_lea.vmem %s344_s30, 32768  ;;  %p8226_p1 = scmp.lt.s32.totalorder %s344_s30, %s344_s30 }
  0x37   :  { %p8222_p0 = scmp.ne.s32.totalorder %s344_s30, %s8221_s17  ;;  %p8227_p2 = scmp.lt.s32.totalorder %s8221_s17, %s8221_s17 }
  0x39   :  { %p8228_p3 = por %p8227_p2, %p8226_p1 }
  0x3b   :  { %p8229_p4 = pnand %p8228_p3, %p8222_p0 }
  0x3d   :  { %8232 = shalt.err (!%p8229_p4)  }
  0x3e   :  { %346 = dma.hbm_to_vmem [thread:$0]  %s10848_s10, 32768, %s344_s30, [#allocation7 + $0x1] }
  0x3f   :  { %s8241_s9 = scalar_lea.vmem %s356_s16, 8192  ;;  %p8246_p6 = scmp.lt.s32.totalorder %s356_s16, %s356_s16 }
  0x40   :  { %p8242_p5 = scmp.ne.s32.totalorder %s356_s16, %s8241_s9  ;;  %p8247_p7 = scmp.lt.s32.totalorder %s8241_s9, %s8241_s9 }
  0x42   :  { %p8248_p8 = por %p8247_p7, %p8246_p6 }
  0x44   :  { %p8249_p9 = pnand %p8248_p8, %p8242_p5 }
  0x46   :  { %8252 = shalt.err (!%p8249_p9)  }
  0x47   :  { %358 = dma.hbm_to_vmem [thread:$0]  %s10849_s11, 8192, %s356_s16, [#allocation7 + $0x2] }
  0x48   :  { %s8305_s22 = smov [#allocation5]   ;;  %s8306_s24 = smov [#allocation6]  }
  0x49   :  { %s367_s23 = sshll.u32 %s8305_s22, 4  ;;  %s379_s25 = sshll.u32 %s8306_s24, 4  ;;  %s368_s23 = int_to_ptr.vmem [resolvable:$true] %s367_s23  ;;  %s380_s25 = int_to_ptr.vmem [resolvable:$true] %s379_s25 }
  0x4a   :  { %s8261_s26 = scalar_lea.vmem %s368_s23, 4096  ;;  %p8266_p11 = scmp.lt.s32.totalorder %s368_s23, %s368_s23 }
  0x4b   :  { %p8262_p10 = scmp.ne.s32.totalorder %s368_s23, %s8261_s26  ;;  %p8267_p12 = scmp.lt.s32.totalorder %s8261_s26, %s8261_s26 }
  0x4d   :  { %p8268_p13 = por %p8267_p12, %p8266_p11 }
  0x4f   :  { %p8269_p0 = pnand %p8268_p13, %p8262_p10 }
  0x51   :  { %8272 = shalt.err (!%p8269_p0)  }
  0x52   :  { %370 = dma.hbm_to_vmem [thread:$0]  %s10850_s12, 4096, %s368_s23, [#allocation7 + $0x3] }
  0x53   :  { %s8281_s28 = scalar_lea.vmem %s380_s25, 4096  ;;  %p8286_p2 = scmp.lt.s32.totalorder %s380_s25, %s380_s25 }
  0x54   :  { %p8282_p1 = scmp.ne.s32.totalorder %s380_s25, %s8281_s28  ;;  %p8287_p3 = scmp.lt.s32.totalorder %s8281_s28, %s8281_s28 }
  0x56   :  { %p8288_p4 = por %p8287_p3, %p8286_p2 }
  0x58   :  { %p8289_p5 = pnand %p8288_p4, %p8282_p1 }
  0x5a   :  { %8292 = shalt.err (!%p8289_p5)  }
  0x5b   :  { %382 = dma.hbm_to_vmem [thread:$0]  %s10851_s13, 4096, %s380_s25, [#allocation7 + $0x4]  ;;  %v6500_v39 = vcombine.high %v8526_v28, %v8536_v30  ;;  %v6564_v17 = vcombine.high %v8846_v59, %v8856_v13  ;;  %v6499_v32 = vcombine.low %v8526_v28, %v8536_v30  ;;  %v6563_v34 = vcombine.low %v8846_v59, %v8856_v13 }
  0x5c   :  { %8293 = dma.done.wait [#allocation7], 16384 }
  0x5d   :  { %8294 = vsyncadd [#allocation7], 4294950912  ;;  %v6496_v47 = vcombine.high %v8506_v24, %v8516_v26  ;;  %v6560_v3 = vcombine.high %v8826_v51, %v8836_v9  ;;  %1179 = vmatprep.subr.bf16.mxu0 %v6500_v39  ;;  %1232 = vmatprep.subr.bf16.mxu1 %v6564_v17  ;;  %v6495_v36 = vcombine.low %v8506_v24, %v8516_v26 }
  0x5e   :  { %1180 = vmatpush1.bf16.msra.mxu0 %v6499_v32  ;;  %1233 = vmatpush1.bf16.msra.mxu1 %v6563_v34  ;;  %v6559_v28 = vcombine.low %v8826_v51, %v8836_v9  ;;  %v6492_v13 = vcombine.high %v8486_v20, %v8496_v22  ;;  %v6556_v30 = vcombine.high %v8806_v43, %v8816_v5  ;;  %v390_v34 = vld [vmem:[%s10838_s0 + $0x18] sm:$0xff] }
  0x5f   :  { %1181 = vmatprep.subr.bf16.mxu0 %v6496_v47  ;;  %1234 = vmatprep.subr.bf16.mxu1 %v6560_v3  ;;  %v6491_v17 = vcombine.low %v8486_v20, %v8496_v22  ;;  %v6555_v32 = vcombine.low %v8806_v43, %v8816_v5  ;;  %v6488_v9 = vcombine.high %v8466_v16, %v8476_v18  ;;  %v388_v22 = vld [vmem:[%s10838_s0 + $0x8] sm:$0xff] }
  0x60   :  { %v6552_v3 = vcombine.high %v8786_v35, %v8796_v1  ;;  %v6487_v24 = vcombine.low %v8466_v16, %v8476_v18  ;;  %v6551_v26 = vcombine.low %v8786_v35, %v8796_v1  ;;  %v6484_v5 = vcombine.high %v8446_v12, %v8456_v14  ;;  %v392_v18 = vld [vmem:[%s10838_s0 + $0x28] sm:$0xff]  ;;  %v394_v35 = vld [vmem:[%s10838_s0 + $0x38] sm:$0xff] }
  0x61   :  { %v6548_v20 = vcombine.high %v8766_v57, %v8776_v61  ;;  %v6483_v16 = vcombine.low %v8446_v12, %v8456_v14  ;;  %v6547_v1 = vcombine.low %v8766_v57, %v8776_v61  ;;  %v6480_v12 = vcombine.high %v8426_v8, %v8436_v10 }
  0x62   :  { %1182 = vmatpush1.bf16.msra.mxu0 %v6495_v36  ;;  %1235 = vmatpush1.bf16.msra.mxu1 %v6559_v28  ;;  %v6544_v14 = vcombine.high %v8746_v49, %v8756_v53  ;;  %v9091_v36 = vpack.c.bf16 %v392_v18, %v388_v22  ;;  %v9093_v39 = vpack.c.bf16 %v394_v35, %v390_v34  ;;  %v11013_v22 = vld [vmem:[#allocation38_spill] sm:$0xff]  ;;  %v11015_v18 = vld [vmem:[#allocation73_spill] sm:$0xff] }
  0x63   :  { %1183 = vmatprep.subr.bf16.mxu0 %v6492_v13  ;;  %1236 = vmatprep.subr.bf16.mxu1 %v6556_v30  ;;  %v6479_v43 = vcombine.low %v8426_v8, %v8436_v10  ;;  %v6543_v47 = vcombine.low %v8746_v49, %v8756_v53  ;;  %v6476_v51 = vcombine.high %v8406_v4, %v8416_v6  ;;  %v396_v35 = vld [vmem:[%s10838_s0 + $0x48] sm:$0xff] }
  0x64   :  { %v6540_v57 = vcombine.high %v8726_v41, %v8736_v45  ;;  %1211 = vmatprep.mubr.bf16.mxu0 %v9091_v36  ;;  %1264 = vmatprep.mubr.bf16.mxu1 %v9093_v39  ;;  %v6475_v8 = vcombine.low %v8406_v4, %v8416_v6  ;;  %v6539_v10 = vcombine.low %v8726_v41, %v8736_v45 }
  0x65   :  { %v6472_v49 = vcombine.high %v8386_v0, %v8396_v2  ;;  %v6536_v53 = vcombine.high %v8706_v33, %v8716_v37  ;;  %v6471_v59 = vcombine.low %v8386_v0, %v8396_v2  ;;  %v6535_v61 = vcombine.low %v8706_v33, %v8716_v37 }
  0x66   :  { %1184 = vmatpush1.bf16.msra.mxu0 %v6491_v17  ;;  %1237 = vmatpush1.bf16.msra.mxu1 %v6555_v32  ;;  %v6532_v4 = vcombine.high %v8686_v60, %v8696_v62  ;;  %v6596_v6 = vcombine.high %v9006_v29, %v9016_v31  ;;  %v6531_v41 = vcombine.low %v8686_v60, %v8696_v62  ;;  %v11011_v17 = vld [vmem:[#allocation75_spill] sm:$0xff] }
  0x67   :  { %1185 = vmatprep.subr.bf16.mxu0 %v6488_v9  ;;  %1238 = vmatprep.subr.bf16.mxu1 %v6552_v3  ;;  %v6595_v45 = vcombine.low %v9006_v29, %v9016_v31  ;;  %v6528_v0 = vcombine.high %v8666_v56, %v8676_v58  ;;  %v6592_v2 = vcombine.high %v8986_v63, %v8996_v15  ;;  %v387_v9 = vld [vmem:[%s10838_s0] sm:$0xff] }
  0x68   :  { %v6527_v33 = vcombine.low %v8666_v56, %v8676_v58  ;;  %v6591_v37 = vcombine.low %v8986_v63, %v8996_v15  ;;  %v6524_v29 = vcombine.high %v8646_v52, %v8656_v54  ;;  %v6588_v31 = vcombine.high %v8966_v25, %v8976_v27 }
  0x69   :  { %v6523_v60 = vcombine.low %v8646_v52, %v8656_v54  ;;  %v6587_v62 = vcombine.low %v8966_v25, %v8976_v27  ;;  %v6520_v15 = vcombine.high %v8626_v48, %v8636_v50  ;;  %v6584_v56 = vcombine.high %v8946_v55, %v8956_v11 }
  0x6a   :  { %1186 = vmatpush1.bf16.msra.mxu0 %v6487_v24  ;;  %1239 = vmatpush1.bf16.msra.mxu1 %v6551_v26  ;;  %v6519_v58 = vcombine.low %v8626_v48, %v8636_v50  ;;  %v6583_v63 = vcombine.low %v8946_v55, %v8956_v11  ;;  %v6516_v25 = vcombine.high %v8606_v44, %v8616_v46  ;;  %v391_v24 = vld [vmem:[%s10838_s0 + $0x20] sm:$0xff]  ;;  %v389_v26 = vld [vmem:[%s10838_s0 + $0x10] sm:$0xff] }
  0x6b   :  { %1187 = vmatprep.subr.bf16.mxu0 %v6484_v5  ;;  %1240 = vmatprep.subr.bf16.mxu1 %v6548_v20  ;;  %v6580_v27 = vcombine.high %v8926_v21, %v8936_v23  ;;  %v6515_v52 = vcombine.low %v8606_v44, %v8616_v46  ;;  %v6579_v54 = vcombine.low %v8926_v21, %v8936_v23  ;;  %v11005_v21 = vld [vmem:[#allocation44_spill] sm:$0xff]  ;;  %v11006_v44 = vld [vmem:[#allocation81_spill] sm:$0xff]  ;;  %v11007_v46 = vld [vmem:[#allocation79_spill] sm:$0xff] }
  0x6c   :  { %v6512_v11 = vcombine.high %v8586_v40, %v8596_v42  ;;  %v6576_v48 = vcombine.high %v8906_v19, %v8916_v7  ;;  %v6511_v50 = vcombine.low %v8586_v40, %v8596_v42  ;;  %v6575_v55 = vcombine.low %v8906_v19, %v8916_v7  ;;  %v11008_v40 = vld [vmem:[#allocation42_spill] sm:$0xff]  ;;  %v11009_v7 = vld [vmem:[#allocation40_spill] sm:$0xff]  ;;  %v11010_v42 = vld [vmem:[#allocation77_spill] sm:$0xff] }
  0x6d   :  { %v6508_v23 = vcombine.high %v11005_v21, %v8576_v38  ;;  %v6572_v28 = vcombine.high %v11007_v46, %v11006_v44  ;;  %v6507_v13 = vcombine.low %v11005_v21, %v8576_v38  ;;  %v6571_v30 = vcombine.low %v11007_v46, %v11006_v44  ;;  %v393_v5 = vld [vmem:[%s10838_s0 + $0x30] sm:$0xff]  ;;  %v11012_v20 = vld [vmem:[#allocation39_spill] sm:$0xff] }
  0x6e   :  { %1188 = vmatpush1.bf16.msra.mxu0 %v6483_v16  ;;  %1241 = vmatpush1.bf16.msra.mxu1 %v6547_v1  ;;  %v6504_v19 = vcombine.high %v11009_v7, %v11008_v40  ;;  %v6568_v32 = vcombine.high %v11011_v17, %v11010_v42  ;;  %v6503_v38 = vcombine.low %v11009_v7, %v11008_v40  ;;  %v11014_v1 = vld [vmem:[#allocation74_spill] sm:$0xff]  ;;  %v11028_v46 = vld [vmem:[#allocation31_spill] sm:$0xff]  ;;  %v11031_v40 = vld [vmem:[#allocation65_spill] sm:$0xff] }
  0x6f   :  { %1189 = vmatprep.subr.bf16.mxu0 %v6480_v12  ;;  %1242 = vmatprep.subr.bf16.mxu1 %v6544_v14  ;;  %v6567_v3 = vcombine.low %v11011_v17, %v11010_v42  ;;  %v6502_v16 = vcombine.high %v11013_v22, %v11012_v20  ;;  %v6566_v34 = vcombine.high %v11015_v18, %v11014_v1  ;;  %v11032_v17 = vld [vmem:[#allocation29_spill] sm:$0xff] }
  0x70   :  { %v9200_v12 = vpack.c.bf16 %v391_v24, %v387_v9  ;;  %v9202_v14 = vpack.c.bf16 %v393_v5, %v389_v26  ;;  %v11036_v26 = vld [vmem:[#allocation27_spill] sm:$0xff]  ;;  %v11037_v5 = vld [vmem:[#allocation26_spill] sm:$0xff] }
  0x72   :  { %1190 = vmatpush1.bf16.msra.mxu0 %v6479_v43  ;;  %1243 = vmatpush1.bf16.msra.mxu1 %v6543_v47  ;;  %v400_v43 = vld [vmem:[%s10838_s0 + $0x68] sm:$0xff]  ;;  %v398_v47 = vld [vmem:[%s10838_s0 + $0x58] sm:$0xff] }
  0x73   :  { %1191 = vmatprep.subr.bf16.mxu0 %v6476_v51  ;;  %1244 = vmatprep.subr.bf16.mxu1 %v6540_v57  ;;  %v402_v51 = vld [vmem:[%s10838_s0 + $0x78] sm:$0xff]  ;;  %v6501_v57 = vcombine.low %v11013_v22, %v11012_v20  ;;  %v6478_v20 = vcombine.high %v11037_v5, %v11036_v26  ;;  %v11038_v22 = vld [vmem:[#allocation62_spill] sm:$0xff] }
  0x76   :  { %1192 = vmatpush1.bf16.msra.mxu0 %v6475_v8  ;;  %1245 = vmatpush1.bf16.msra.mxu1 %v6539_v10  ;;  %v6565_v8 = vcombine.low %v11015_v18, %v11014_v1  ;;  %v11016_v10 = vld [vmem:[#allocation37_spill] sm:$0xff]  ;;  %v6477_v18 = vcombine.low %v11037_v5, %v11036_v26  ;;  %v11066_v5 = vld [vmem:[#allocation84_spill] sm:$0xff] }
  0x77   :  { %1193 = vmatprep.subr.bf16.mxu0 %v6472_v49  ;;  %1246 = vmatprep.subr.bf16.mxu1 %v6536_v53  ;;  %v11017_v49 = vld [vmem:[#allocation36_spill] sm:$0xff] }
  0x78   :  { %v6498_v53 = vcombine.high %v11017_v49, %v11016_v10 }
  0x7a   :  { %1194 = vmatpush1.bf16.msra.mxu0 %v6471_v59  ;;  %1247 = vmatpush1.bf16.msra.mxu1 %v6535_v61  ;;  %v11018_v59 = vld [vmem:[#allocation72_spill] sm:$0xff]  ;;  %v11019_v61 = vld [vmem:[#allocation71_spill] sm:$0xff] }
  0x7b   :  { %1195 = vmatprep.subr.bf16.mxu0 %v6532_v4  ;;  %1248 = vmatprep.subr.bf16.mxu1 %v6596_v6  ;;  %v6562_v4 = vcombine.high %v11019_v61, %v11018_v59  ;;  %v9221_v6 = vpack.c.bf16 %v400_v43, %v396_v35  ;;  %v11040_v35 = vld [vmem:[#allocation25_spill] sm:$0xff]  ;;  %v11041_v43 = vld [vmem:[#allocation24_spill] sm:$0xff] }
  0x7e   :  { %1196 = vmatpush2.bf16.msra.mxu0 %v6531_v41  ;;  %1249 = vmatpush2.bf16.msra.mxu1 %v6595_v45  ;;  %v9223_v41 = vpack.c.bf16 %v402_v51, %v398_v47  ;;  %v395_v45 = vld [vmem:[%s10838_s0 + $0x40] sm:$0xff]  ;;  %v6474_v47 = vcombine.high %v11041_v43, %v11040_v35 }
  0x7f   :  { %1197 = vmatprep.subr.bf16.mxu0 %v6528_v0  ;;  %1250 = vmatprep.subr.bf16.mxu1 %v6592_v2  ;;  %v6497_v0 = vcombine.low %v11017_v49, %v11016_v10  ;;  %v6561_v2 = vcombine.low %v11019_v61, %v11018_v59  ;;  %v11042_v51 = vld [vmem:[#allocation60_spill] sm:$0xff]  ;;  %v6473_v10 = vcombine.low %v11041_v43, %v11040_v35  ;;  %v11045_v59 = vld [vmem:[#allocation57_spill] sm:$0xff]  ;;  %v11070_v43 = vld [vmem:[#allocation82_spill] sm:$0xff] }
  0x82   :  { %1198 = vmatpush2.bf16.msra.mxu0 %v6527_v33  ;;  %1251 = vmatpush2.bf16.msra.mxu1 %v6591_v37  ;;  %v399_v33 = vld [vmem:[%s10838_s0 + $0x60] sm:$0xff]  ;;  %v397_v37 = vld [vmem:[%s10838_s0 + $0x50] sm:$0xff] }
  0x83   :  { %1199 = vmatprep.subr.bf16.mxu0 %v6524_v29  ;;  %1252 = vmatprep.subr.bf16.mxu1 %v6588_v31  ;;  %v401_v29 = vld [vmem:[%s10838_s0 + $0x70] sm:$0xff]  ;;  %v11020_v31 = vld [vmem:[#allocation35_spill] sm:$0xff] }
  0x86   :  { %1200 = vmatpush2.bf16.msra.mxu0 %v6523_v60  ;;  %1253 = vmatpush2.bf16.msra.mxu1 %v6587_v62  ;;  %v11021_v60 = vld [vmem:[#allocation34_spill] sm:$0xff] }
  0x87   :  { %1201 = vmatprep.subr.bf16.mxu0 %v6520_v15  ;;  %1254 = vmatprep.subr.bf16.mxu1 %v6584_v56  ;;  %v6494_v62 = vcombine.high %v11021_v60, %v11020_v31  ;;  %v11022_v15 = vld [vmem:[#allocation70_spill] sm:$0xff]  ;;  %v11023_v56 = vld [vmem:[#allocation69_spill] sm:$0xff] }
  0x8a   :  { %1202 = vmatpush2.bf16.msra.mxu0 %v6519_v58  ;;  %1255 = vmatpush2.bf16.msra.mxu1 %v6583_v63  ;;  %v6558_v58 = vcombine.high %v11023_v56, %v11022_v15  ;;  %v9249_v63 = vpack.c.bf16 %v399_v33, %v395_v45  ;;  %v11047_v45 = vld [vmem:[#allocation93_spill] sm:$0xff] }
  0x8b   :  { %1203 = vmatprep.subr.bf16.mxu0 %v6516_v25  ;;  %1256 = vmatprep.subr.bf16.mxu1 %v6580_v27  ;;  %v9251_v25 = vpack.c.bf16 %v401_v29, %v397_v37  ;;  %v6493_v27 = vcombine.low %v11021_v60, %v11020_v31  ;;  %v11048_v37 = vld [vmem:[#allocation56_spill] sm:$0xff]  ;;  %v11049_v29 = vld [vmem:[#allocation55_spill] sm:$0xff] }
  0x8c   :  { %v6530_v31 = vcombine.high %v11049_v29, %v11048_v37  ;;  %v11050_v60 = vld [vmem:[#allocation92_spill] sm:$0xff] }
  0x8e   :  { %1204 = vmatpush2.bf16.msra.mxu0 %v6515_v52  ;;  %1257 = vmatpush2.bf16.msra.mxu1 %v6579_v54  ;;  %v6557_v52 = vcombine.low %v11023_v56, %v11022_v15  ;;  %v11024_v54 = vld [vmem:[#allocation33_spill] sm:$0xff]  ;;  %v6529_v56 = vcombine.low %v11049_v29, %v11048_v37 }
  0x8f   :  { %1205 = vmatprep.subr.bf16.mxu0 %v6512_v11  ;;  %1258 = vmatprep.subr.bf16.mxu1 %v6576_v48  ;;  %v11025_v11 = vld [vmem:[#allocation32_spill] sm:$0xff] }
  0x90   :  { %v6490_v48 = vcombine.high %v11025_v11, %v11024_v54 }
  0x92   :  { %1206 = vmatpush2.bf16.msra.mxu0 %v6511_v50  ;;  %1259 = vmatpush2.bf16.msra.mxu1 %v6575_v55  ;;  %v11026_v50 = vld [vmem:[#allocation68_spill] sm:$0xff]  ;;  %v11027_v55 = vld [vmem:[#allocation67_spill] sm:$0xff] }
  0x93   :  { %1207 = vmatprep.subr.bf16.mxu0 %v6508_v23  ;;  %1260 = vmatprep.subr.bf16.mxu1 %v6572_v28  ;;  %v6554_v21 = vcombine.high %v11027_v55, %v11026_v50  ;;  %v6489_v23 = vcombine.low %v11025_v11, %v11024_v54  ;;  %v6553_v44 = vcombine.low %v11027_v55, %v11026_v50  ;;  %v11029_v28 = vld [vmem:[#allocation30_spill] sm:$0xff] }
  0x94   :  { %v11054_v11 = vld [vmem:[#allocation90_spill] sm:$0xff] }
  0x96   :  { %1208 = vmatpush2.bf16.msra.mxu0 %v6507_v13  ;;  %1261 = vmatpush2.bf16.msra.mxu1 %v6571_v30  ;;  %v6486_v13 = vcombine.high %v11029_v28, %v11028_v46  ;;  %v11030_v30 = vld [vmem:[#allocation66_spill] sm:$0xff] }
  0x97   :  { %1209 = vmatprep.subr.bf16.mxu0 %v6504_v19  ;;  %1262 = vmatprep.subr.bf16.mxu1 %v6568_v32  ;;  %v6550_v7 = vcombine.high %v11031_v40, %v11030_v30  ;;  %v6485_v19 = vcombine.low %v11029_v28, %v11028_v46  ;;  %v6549_v42 = vcombine.low %v11031_v40, %v11030_v30  ;;  %v11033_v32 = vld [vmem:[#allocation28_spill] sm:$0xff] }
  0x98   :  { %v6482_v9 = vcombine.high %v11033_v32, %v11032_v17  ;;  %v11058_v28 = vld [vmem:[#allocation88_spill] sm:$0xff] }
  0x9a   :  { %1210 = vmatpush2.bf16.msra.mxu0 %v6503_v38  ;;  %1263 = vmatpush2.bf16.msra.mxu1 %v6567_v3  ;;  %v11034_v38 = vld [vmem:[#allocation64_spill] sm:$0xff]  ;;  %v11035_v3 = vld [vmem:[#allocation63_spill] sm:$0xff] }
  0x9b   :  { %1285 = vmatprep.subr.bf16.mxu0 %v6502_v16  ;;  %1338 = vmatprep.subr.bf16.mxu1 %v6566_v34  ;;  %v6546_v24 = vcombine.high %v11035_v3, %v11034_v38  ;;  %v11039_v16 = vld [vmem:[#allocation61_spill] sm:$0xff] }
  0x9c   :  { %v6542_v1 = vcombine.high %v11039_v16, %v11038_v22  ;;  %v6541_v34 = vcombine.low %v11039_v16, %v11038_v22 }
  0x9d   :  { %1212 = vmatmul.mubr.bf16.vlgmr.msra.gmra.mxu0 %v9200_v12  ;;  %1265 = vmatmul.mubr.bf16.vlgmr.msra.gmra.mxu1 %v9202_v14 }
  0x9e   :  { %1286 = vmatpush1.bf16.msra.mxu0 %v6501_v57  ;;  %1339 = vmatpush1.bf16.msra.mxu1 %v6565_v8  ;;  %v11043_v57 = vld [vmem:[#allocation59_spill] sm:$0xff] }
  0x9f   :  { %1287 = vmatprep.subr.bf16.mxu0 %v6498_v53  ;;  %1340 = vmatprep.subr.bf16.mxu1 %v6562_v4  ;;  %v6538_v8 = vcombine.high %v11043_v57, %v11042_v51  ;;  %v6537_v49 = vcombine.low %v11043_v57, %v11042_v51  ;;  %v11044_v53 = vld [vmem:[#allocation58_spill] sm:$0xff] }
  0xa0   :  { %1221 = vmatprep.mubr.bf16.mxu0 %v9221_v6  ;;  %1274 = vmatprep.mubr.bf16.mxu1 %v9223_v41  ;;  %v6534_v61 = vcombine.high %v11045_v59, %v11044_v53  ;;  %v11046_v4 = vld [vmem:[#allocation94_spill] sm:$0xff] }
  0xa1   :  { %v6597_v33 = vcombine.low %v11047_v45, %v11046_v4 }
  0xa2   :  { %1288 = vmatpush1.bf16.msra.mxu0 %v6497_v0  ;;  %1341 = vmatpush1.bf16.msra.mxu1 %v6561_v2  ;;  %v6598_v0 = vcombine.high %v11047_v45, %v11046_v4  ;;  %v6533_v2 = vcombine.low %v11045_v59, %v11044_v53  ;;  %v11074_v59 = vld [vmem:[#allocation78_spill] sm:$0xff] }
  0xa3   :  { %1289 = vmatprep.subr.bf16.mxu0 %v6494_v62  ;;  %1342 = vmatprep.subr.bf16.mxu1 %v6558_v58  ;;  %v11051_v62 = vld [vmem:[#allocation91_spill] sm:$0xff] }
  0xa4   :  { %v6594_v15 = vcombine.high %v11051_v62, %v11050_v60  ;;  %v6593_v58 = vcombine.low %v11051_v62, %v11050_v60 }
  0xa5   :  { %1222 = vmatmul.mubr.bf16.gmra.mxu0 %v9249_v63  ;;  %1275 = vmatmul.mubr.bf16.gmra.mxu1 %v9251_v25 }
  0xa6   :  { %1290 = vmatpush1.bf16.msra.mxu0 %v6493_v27  ;;  %1343 = vmatpush1.bf16.msra.mxu1 %v6557_v52  ;;  %v11052_v27 = vld [vmem:[#allocation54_spill] sm:$0xff]  ;;  %v11053_v52 = vld [vmem:[#allocation53_spill] sm:$0xff] }
  0xa7   :  { %1291 = vmatprep.subr.bf16.mxu0 %v6490_v48  ;;  %1344 = vmatprep.subr.bf16.mxu1 %v6554_v21  ;;  %v6526_v54 = vcombine.high %v11053_v52, %v11052_v27  ;;  %v11055_v48 = vld [vmem:[#allocation89_spill] sm:$0xff]  ;;  %v6525_v55 = vcombine.low %v11053_v52, %v11052_v27 }
  0xa8   :  { %1317 = vmatprep.mubr.bf16.mxu0 %v9091_v36  ;;  %1370 = vmatprep.mubr.bf16.mxu1 %v9093_v39  ;;  %v6481_v36 = vcombine.low %v11033_v32, %v11032_v17  ;;  %v6545_v39 = vcombine.low %v11035_v3, %v11034_v38  ;;  %v6590_v50 = vcombine.high %v11055_v48, %v11054_v11  ;;  %v11062_v32 = vld [vmem:[#allocation86_spill] sm:$0xff] }
  0xa9   :  { %v6589_v21 = vcombine.low %v11055_v48, %v11054_v11 }
  0xaa   :  { %1292 = vmatpush1.bf16.msra.mxu0 %v6489_v23  ;;  %1345 = vmatpush1.bf16.msra.mxu1 %v6553_v44  ;;  %v11056_v23 = vld [vmem:[#allocation52_spill] sm:$0xff]  ;;  %v11057_v44 = vld [vmem:[#allocation51_spill] sm:$0xff] }
  0xab   :  { %1293 = vmatprep.subr.bf16.mxu0 %v6486_v13  ;;  %1346 = vmatprep.subr.bf16.mxu1 %v6550_v7  ;;  %v6522_v46 = vcombine.high %v11057_v44, %v11056_v23  ;;  %v11059_v13 = vld [vmem:[#allocation87_spill] sm:$0xff]  ;;  %v6521_v40 = vcombine.low %v11057_v44, %v11056_v23 }
  0xac   :  { %v6586_v30 = vcombine.high %v11059_v13, %v11058_v28  ;;  %v6585_v7 = vcombine.low %v11059_v13, %v11058_v28 }
  0xae   :  { %1294 = vmatpush1.bf16.msra.mxu0 %v6485_v19  ;;  %1347 = vmatpush1.bf16.msra.mxu1 %v6549_v42  ;;  %v11060_v19 = vld [vmem:[#allocation50_spill] sm:$0xff]  ;;  %v11061_v42 = vld [vmem:[#allocation49_spill] sm:$0xff] }
  0xaf   :  { %1295 = vmatprep.subr.bf16.mxu0 %v6482_v9  ;;  %1348 = vmatprep.subr.bf16.mxu1 %v6546_v24  ;;  %v6518_v17 = vcombine.high %v11061_v42, %v11060_v19  ;;  %v11063_v9 = vld [vmem:[#allocation85_spill] sm:$0xff]  ;;  %v6517_v3 = vcombine.low %v11061_v42, %v11060_v19 }
  0xb0   :  { %v6582_v38 = vcombine.high %v11063_v9, %v11062_v32  ;;  %v6581_v24 = vcombine.low %v11063_v9, %v11062_v32 }
  0xb2   :  { %1296 = vmatpush1.bf16.msra.mxu0 %v6481_v36  ;;  %1349 = vmatpush1.bf16.msra.mxu1 %v6545_v39  ;;  %v11064_v36 = vld [vmem:[#allocation48_spill] sm:$0xff]  ;;  %v11065_v39 = vld [vmem:[#allocation47_spill] sm:$0xff] }
  0xb3   :  { %1297 = vmatprep.subr.bf16.mxu0 %v6478_v20  ;;  %1350 = vmatprep.subr.bf16.mxu1 %v6542_v1  ;;  %v6514_v26 = vcombine.high %v11065_v39, %v11064_v36  ;;  %v11067_v20 = vld [vmem:[#allocation83_spill] sm:$0xff]  ;;  %v6513_v16 = vcombine.low %v11065_v39, %v11064_v36 }
  0xb4   :  { %v6578_v22 = vcombine.high %v11067_v20, %v11066_v5  ;;  %v6577_v1 = vcombine.low %v11067_v20, %v11066_v5 }
  0xb6   :  { %1298 = vmatpush1.bf16.msra.mxu0 %v6477_v18  ;;  %1351 = vmatpush1.bf16.msra.mxu1 %v6541_v34  ;;  %v11068_v18 = vld [vmem:[#allocation46_spill] sm:$0xff]  ;;  %v11069_v34 = vld [vmem:[#allocation45_spill] sm:$0xff] }
  0xb7   :  { %1299 = vmatprep.subr.bf16.mxu0 %v6474_v47  ;;  %1352 = vmatprep.subr.bf16.mxu1 %v6538_v8  ;;  %v6510_v35 = vcombine.high %v11069_v34, %v11068_v18  ;;  %v11071_v47 = vld [vmem:[#allocation80_spill] sm:$0xff]  ;;  %v6509_v57 = vcombine.low %v11069_v34, %v11068_v18 }
  0xb8   :  { %v6574_v51 = vcombine.high %v11071_v47, %v11070_v43  ;;  %v6573_v8 = vcombine.low %v11071_v47, %v11070_v43 }
  0xba   :  { %1300 = vmatpush1.bf16.msra.mxu0 %v6473_v10  ;;  %1353 = vmatpush1.bf16.msra.mxu1 %v6537_v49  ;;  %v11072_v10 = vld [vmem:[#allocation43_spill] sm:$0xff]  ;;  %v11073_v49 = vld [vmem:[#allocation41_spill] sm:$0xff] }
  0xbb   :  { %1301 = vmatprep.subr.bf16.mxu0 %v6534_v61  ;;  %1354 = vmatprep.subr.bf16.mxu1 %v6598_v0  ;;  %v6506_v53 = vcombine.high %v11073_v49, %v11072_v10  ;;  %v11075_v61 = vld [vmem:[#allocation76_spill] sm:$0xff]  ;;  %v6505_v45 = vcombine.low %v11073_v49, %v11072_v10 }
  0xbc   :  { %v6570_v4 = vcombine.high %v11075_v61, %v11074_v59  ;;  %v6569_v0 = vcombine.low %v11075_v61, %v11074_v59 }
  0xbe   :  { %1302 = vmatpush2.bf16.msra.mxu0 %v6533_v2  ;;  %1355 = vmatpush2.bf16.msra.mxu1 %v6597_v33  ;;  %v1530_v2 = vlaneseq }
  0xbf   :  { %1303 = vmatprep.subr.bf16.mxu0 %v6530_v31  ;;  %1356 = vmatprep.subr.bf16.mxu1 %v6594_v15 }
  0xc0   :  { %v9371_v33 = vshrl.u32 %v1530_v2, 7 }
  0xc2   :  { %1304 = vmatpush2.bf16.msra.mxu0 %v6529_v56  ;;  %1357 = vmatpush2.bf16.msra.mxu1 %v6593_v58  ;;  %11076 = vst [vmem:[#allocation44_spill] sm:$0xff] %v9371_v33  ;;  %v9374_v37 = vadd.s32 24, %v9371_v33  ;;  %vm1657_vm0 = vcmp.ge.s32.totalorder %v9371_v33, 2  ;;  %vm1637_vm2 = vcmp.lt.s32.totalorder %v9371_v33, 2  ;;  %vm1693_vm3 = vcmp.lt.s32.totalorder %v9371_v33, 6 }
  0xc3   :  { %1305 = vmatprep.subr.bf16.mxu0 %v6526_v54  ;;  %1358 = vmatprep.subr.bf16.mxu1 %v6590_v50 }
  0xc4   :  { %vm1713_vm1 = vcmp.lt.s32.totalorder %v9374_v37, 30 }
  0xc6   :  { %1306 = vmatpush2.bf16.msra.mxu0 %v6525_v55  ;;  %1359 = vmatpush2.bf16.msra.mxu1 %v6589_v21 }
  0xc7   :  { %1307 = vmatprep.subr.bf16.mxu0 %v6522_v46  ;;  %1360 = vmatprep.subr.bf16.mxu1 %v6586_v30 }
  0xca   :  { %1308 = vmatpush2.bf16.msra.mxu0 %v6521_v40  ;;  %1361 = vmatpush2.bf16.msra.mxu1 %v6585_v7 }
  0xcb   :  { %1309 = vmatprep.subr.bf16.mxu0 %v6518_v17  ;;  %1362 = vmatprep.subr.bf16.mxu1 %v6582_v38 }
  0xce   :  { %1310 = vmatpush2.bf16.msra.mxu0 %v6517_v3  ;;  %1363 = vmatpush2.bf16.msra.mxu1 %v6581_v24 }
  0xcf   :  { %1311 = vmatprep.subr.bf16.mxu0 %v6514_v26  ;;  %1364 = vmatprep.subr.bf16.mxu1 %v6578_v22 }
  0xd2   :  { %1312 = vmatpush2.bf16.msra.mxu0 %v6513_v16  ;;  %1365 = vmatpush2.bf16.msra.mxu1 %v6577_v1 }
  0xd3   :  { %1313 = vmatprep.subr.bf16.mxu0 %v6510_v35  ;;  %1366 = vmatprep.subr.bf16.mxu1 %v6574_v51 }
  0xd6   :  { %1314 = vmatpush2.bf16.msra.mxu0 %v6509_v57  ;;  %1367 = vmatpush2.bf16.msra.mxu1 %v6573_v8 }
  0xd7   :  { %1315 = vmatprep.subr.bf16.mxu0 %v6506_v53  ;;  %1368 = vmatprep.subr.bf16.mxu1 %v6570_v4 }
  0xda   :  { %1316 = vmatpush2.bf16.msra.mxu0 %v6505_v45  ;;  %1369 = vmatpush2.bf16.msra.mxu1 %v6569_v0 }
  0xdd   :  { %1318 = vmatmul.mubr.bf16.vlgmr.msra.gmra.mxu0 %v9200_v12  ;;  %1371 = vmatmul.mubr.bf16.vlgmr.msra.gmra.mxu1 %v9202_v14 }
  0xde   :  { %1327 = vmatprep.mubr.bf16.mxu0 %v9221_v6  ;;  %1380 = vmatprep.mubr.bf16.mxu1 %v9223_v41 }
  0xe5   :  { %1328 = vmatmul.mubr.bf16.gmra.mxu0 %v9249_v63  ;;  %1381 = vmatmul.mubr.bf16.gmra.mxu1 %v9251_v25 }
 0x15d   :  { %v1213_v12 = vpop.f32.mrf.mxu0  ;;  %v1266_v14 = vpop.f32.mrf.mxu1 }
 0x15e   :  { %v1267_v56 = vadd.f32 %v1266_v14, %v1213_v12 }
 0x15f   :  { %v1215_v29 = vpop.f32.mrf.mxu0  ;;  %v1268_v6 = vpop.f32.mrf.mxu1 }
 0x160   :  { %v1269_v11 = vadd.f32 %v1268_v6, %v1215_v29 }
 0x161   :  { %v1217_v31 = vpop.f32.mrf.mxu0  ;;  %v1270_v41 = vpop.f32.mrf.mxu1 }
 0x162   :  { %v1271_v62 = vadd.f32 %v1270_v41, %v1217_v31 }
 0x163   :  { %v1219_v60 = vpop.f32.mrf.mxu0  ;;  %v1272_v63 = vpop.f32.mrf.mxu1 }
 0x164   :  { %v1273_v58 = vadd.f32 %v1272_v63, %v1219_v60  ;;  %v1393_v48 = vadd.f32 %v1271_v62, %v1267_v56 }
 0x165   :  { %v1223_v25 = vpop.f32.mrf.mxu0  ;;  %v1276_v15 = vpop.f32.mrf.mxu1 }
 0x166   :  { %v1277_v27 = vadd.f32 %v1276_v15, %v1223_v25  ;;  %v1402_v23 = vadd.f32 %v1273_v58, %v1269_v11 }
 0x167   :  { %v1225_v52 = vpop.f32.mrf.mxu0  ;;  %v1278_v54 = vpop.f32.mrf.mxu1 }
 0x168   :  { %v1279_v50 = vadd.f32 %v1278_v54, %v1225_v52  ;;  %v1394_v44 = vadd.f32 %v1393_v48, %v1277_v27 }
 0x169   :  { %v1227_v55 = vpop.f32.mrf.mxu0  ;;  %v1280_v21 = vpop.f32.mrf.mxu1 }
 0x16a   :  { %v1281_v46 = vadd.f32 %v1280_v21, %v1227_v55  ;;  %v1403_v30 = vadd.f32 %v1402_v23, %v1279_v50 }
 0x16b   :  { %v1229_v28 = vpop.f32.mrf.mxu0  ;;  %v1282_v13 = vpop.f32.mrf.mxu1 }
 0x16c   :  { %v1395_v40 = vadd.f32 %v1394_v44, %v1281_v46  ;;  %v1283_v7 = vadd.f32 %v1282_v13, %v1229_v28  ;;  %v9395_v44 = vsub.s32 0, %v9371_v33  ;;  %v9405_v28 = vld [vmem:[%s10840_s2] sm:$0xf]  ;;  %v9408_v13 = vsub.s32 1, %v9371_v33 }
 0x16e   :  { %v1396_v19 = vrot.slane %v1395_v40, 4  ;;  %v1404_v42 = vadd.f32 %v1403_v30, %v1283_v7  ;;  %11077 = vst [vmem:[#allocation81_spill] sm:$0xff] %v9395_v44  ;;  %11078 = vst [vmem:[#allocation79_spill] sm:$0xff] %v9408_v13 }
 0x170   :  { %v1397_v17 = vadd.f32 %v1396_v19, %v1395_v40  ;;  %v1405_v32 = vrot.slane %v1404_v42, 4 }
 0x172   :  { %v1398_v9 = vrot.slane %v1397_v17, 2  ;;  %v1406_v38 = vadd.f32 %v1405_v32, %v1404_v42 }
 0x174   :  { %v1399_v3 = vadd.f32 %v1398_v9, %v1397_v17  ;;  %v1407_v24 = vrot.slane %v1406_v38, 2  ;;  %v1570_v17 = vrot.slane %v9405_v28, %v9395_v44 }
 0x176   :  { %v1400_v36 = vrot.slane %v1399_v3, 1  ;;  %v1408_v39 = vadd.f32 %v1407_v24, %v1406_v38 }
 0x178   :  { %v1401_v26 = vadd.f32 %v1400_v36, %v1399_v3  ;;  %v1409_v5 = vrot.slane %v1408_v39, 1  ;;  %v1574_v3 = vrot.slane %v9405_v28, %v9408_v13 }
 0x17a   :  { %v1429_v20 = vmul.f32 0.03125, %v1401_v26  ;;  %v1410_v22 = vadd.f32 %v1409_v5, %v1408_v39 }
 0x17c   :  { %v1433_v16 = vsub.f32 %v1267_v56, %v1429_v20  ;;  %v1437_v1 = vsub.f32 %v1271_v62, %v1429_v20  ;;  %v1441_v18 = vsub.f32 %v1277_v27, %v1429_v20  ;;  %v1430_v34 = vmul.f32 0.03125, %v1410_v22 }
 0x17d   :  { %v1445_v35 = vsub.f32 %v1281_v46, %v1429_v20  ;;  %v9400_v46 = vld [vmem:[%s10839_s1] sm:$0xf] }
 0x17e   :  { %v1449_v43 = vmul.f32 %v1433_v16, %v1433_v16  ;;  %v1453_v47 = vmul.f32 %v1437_v1, %v1437_v1  ;;  %v9378_v51 = vsub.f32 %v1269_v11, %v1430_v34  ;;  %v9380_v57 = vsub.f32 %v1273_v58, %v1430_v34 }
 0x17f   :  { %v9382_v8 = vsub.f32 %v1279_v50, %v1430_v34  ;;  %v1457_v10 = vmul.f32 %v1441_v18, %v1441_v18  ;;  %v9384_v53 = vsub.f32 %v1283_v7, %v1430_v34  ;;  %v1461_v4 = vmul.f32 %v1445_v35, %v1445_v35 }
 0x180   :  { %v1465_v49 = vadd.f32 %v1453_v47, %v1449_v43  ;;  %v1450_v59 = vmul.f32 %v9378_v51, %v9378_v51  ;;  %v1454_v61 = vmul.f32 %v9380_v57, %v9380_v57  ;;  %v1533_v42 = vrot.slane %v9400_v46, %v9395_v44 }
 0x181   :  { %v1458_v0 = vmul.f32 %v9382_v8, %v9382_v8  ;;  %v1462_v14 = vmul.f32 %v9384_v53, %v9384_v53  ;;  %v1537_v38 = vrot.slane %v9400_v46, %v9408_v13 }
 0x182   :  { %v1466_v45 = vadd.f32 %v1465_v49, %v1457_v10  ;;  %v1474_v2 = vadd.f32 %v1454_v61, %v1450_v59 }
 0x184   :  { %v1467_v12 = vadd.f32 %v1466_v45, %v1461_v4  ;;  %v1475_v29 = vadd.f32 %v1474_v2, %v1458_v0 }
 0x186   :  { %v1468_v6 = vrot.slane %v1467_v12, 4  ;;  %v1476_v31 = vadd.f32 %v1475_v29, %v1462_v14 }
 0x188   :  { %v1469_v41 = vadd.f32 %v1468_v6, %v1467_v12  ;;  %v1477_v60 = vrot.slane %v1476_v31, 4 }
 0x18a   :  { %v1470_v63 = vrot.slane %v1469_v41, 2  ;;  %v1478_v62 = vadd.f32 %v1477_v60, %v1476_v31 }
 0x18c   :  { %v1471_v25 = vadd.f32 %v1470_v63, %v1469_v41  ;;  %v1479_v15 = vrot.slane %v1478_v62, 2 }
 0x18e   :  { %v1472_v56 = vrot.slane %v1471_v25, 1  ;;  %v1480_v58 = vadd.f32 %v1479_v15, %v1478_v62 }
 0x190   :  { %v1473_v27 = vadd.f32 %v1472_v56, %v1471_v25  ;;  %v1481_v52 = vrot.slane %v1480_v58, 1 }
 0x192   :  { %v1501_v54 = vmul.f32 0.03125, %v1473_v27  ;;  %v1482_v11 = vadd.f32 %v1481_v52, %v1480_v58 }
 0x194   :  { %v1505_v48 = vadd.f32 1e-05, %v1501_v54  ;;  %v1502_v50 = vmul.f32 0.03125, %v1482_v11 }
 0x196   :  { %7557 = vrsqrt.f32 %v1505_v48  ;;  %v1506_v55 = vadd.f32 1e-05, %v1502_v50 }
 0x198   :  { %7559 = vrsqrt.f32 %v1506_v55 }
 0x19d   :  { %v1319_v21 = vpop.f32.mrf.mxu0  ;;  %v1372_v23 = vpop.f32.mrf.mxu1 }
 0x19e   :  { %v9421_v24 = vadd.f32 %v1372_v23, %v1319_v21 }
 0x19f   :  { %v1321_v30 = vpop.f32.mrf.mxu0  ;;  %v1374_v40 = vpop.f32.mrf.mxu1 }
 0x1a0   :  { %v9424_v34 = vadd.f32 %v1374_v40, %v1321_v30 }
 0x1a1   :  { %v1323_v7 = vpop.f32.mrf.mxu0  ;;  %v1376_v19 = vpop.f32.mrf.mxu1 }
 0x1a2   :  { %v9414_v32 = vadd.f32 %v1376_v19, %v1323_v7 }
 0x1a3   :  { %v7558_v9 = vpop.eup %7557  ;;  %v1325_v36 = vpop.f32.mrf.mxu0 }
 0x1a4   :  { %v1378_v39 = vpop.f32.mrf.mxu1  ;;  %v1513_v26 = vmul.f32 %v7558_v9, %v1433_v16  ;;  %v1517_v5 = vmul.f32 %v7558_v9, %v1437_v1  ;;  %v1521_v20 = vmul.f32 %v7558_v9, %v1441_v18  ;;  %v1525_v22 = vmul.f32 %v7558_v9, %v1445_v35 }
 0x1a5   :  { %v9428_v43 = vadd.f32 %v9414_v32, %v9421_v24  ;;  %v9430_v47 = vadd.f32 %v1378_v39, %v1325_v36  ;;  %v7560_v10 = vpop.eup %7559  ;;  %v1329_v45 = vpop.f32.mrf.mxu0 }
 0x1a6   :  { %v1550_v49 = vmul.f32 %v1533_v42, %v1513_v26  ;;  %v1554_v59 = vmul.f32 %v1533_v42, %v1517_v5  ;;  %v1558_v61 = vmul.f32 %v1533_v42, %v1521_v20  ;;  %v1562_v4 = vmul.f32 %v1533_v42, %v1525_v22  ;;  %v1382_v0 = vpop.f32.mrf.mxu1 }
 0x1a7   :  { %v1514_v16 = vmul.f32 %v7560_v10, %v9378_v51  ;;  %v1518_v1 = vmul.f32 %v7560_v10, %v9380_v57  ;;  %v1522_v18 = vmul.f32 %v7560_v10, %v9382_v8  ;;  %v1526_v35 = vmul.f32 %v7560_v10, %v9384_v53  ;;  %v1331_v58 = vpop.f32.mrf.mxu0 }
 0x1a8   :  { %v1587_v2 = vadd.f32 %v1570_v17, %v1550_v49  ;;  %v1591_v12 = vadd.f32 %v1570_v17, %v1554_v59  ;;  %v1595_v14 = vadd.f32 %v1570_v17, %v1558_v61  ;;  %v1599_v29 = vadd.f32 %v1570_v17, %v1562_v4  ;;  %v1384_v53 = vpop.f32.mrf.mxu1 }
 0x1a9   :  { %v1551_v6 = vmul.f32 %v1537_v38, %v1514_v16  ;;  %v1555_v31 = vmul.f32 %v1537_v38, %v1518_v1  ;;  %v1559_v41 = vmul.f32 %v1537_v38, %v1522_v18  ;;  %v1563_v60 = vmul.f32 %v1537_v38, %v1526_v35  ;;  %v1333_v38 = vpop.f32.mrf.mxu0 }
 0x1aa   :  { %v1603_v63 = vmax.f32 %v1587_v2, 0.0  ;;  %v1607_v62 = vmax.f32 %v1591_v12, 0.0  ;;  %v1611_v25 = vmax.f32 %v1595_v14, 0.0  ;;  %v1615_v51 = vmax.f32 %v1599_v29, 0.0 }
 0x1ab   :  { %v1588_v15 = vadd.f32 %v1574_v3, %v1551_v6  ;;  %v1592_v57 = vadd.f32 %v1574_v3, %v1555_v31  ;;  %v1596_v56 = vadd.f32 %v1574_v3, %v1559_v41  ;;  %v1600_v8 = vadd.f32 %v1574_v3, %v1563_v60  ;;  %v1386_v3 = vpop.f32.mrf.mxu1  ;;  %v1335_v60 = vpop.f32.mrf.mxu0 }
 0x1ac   :  { %v1619_v27 = vrot.slane %v1603_v63, 6  ;;  %v1623_v52 = vrot.slane %v1607_v62, 6  ;;  %v1627_v54 = vrot.slane %v1611_v25, 6  ;;  %v1631_v11 = vrot.slane %v1615_v51, 6 }
 0x1ad   :  { %v1677_v48 = vrot.slane %v1603_v63, 2  ;;  %v1681_v50 = vrot.slane %v1607_v62, 2  ;;  %v1685_v55 = vrot.slane %v1611_v25, 2  ;;  %v1689_v21 = vrot.slane %v1615_v51, 2 }
 0x1ae   :  { %v9438_v23 = vsel %vm1637_vm2, %v1627_v54, %v1631_v11  ;;  %v9442_v30 = vsel %vm1637_vm2, %v1623_v52, %v1627_v54  ;;  %v9446_v40 = vsel %vm1637_vm2, %v1619_v27, %v1623_v52  ;;  %v9450_v7 = vsel %vm1637_vm2, %v1631_v11, %v1619_v27 }
 0x1af   :  { %v9454_v19 = vsel %vm1693_vm3, %v1685_v55, %v1689_v21  ;;  %v9458_v42 = vsel %vm1693_vm3, %v1681_v50, %v1685_v55  ;;  %v9462_v17 = vsel %vm1693_vm3, %v1677_v48, %v1681_v50  ;;  %v9466_v9 = vsel %vm1693_vm3, %v1689_v21, %v1677_v48 }
 0x1b0   :  { %v9468_v36 = vpack.c.bf16 %v1607_v62, %v1603_v63  ;;  %v9470_v39 = vpack.c.bf16 %v1615_v51, %v1611_v25  ;;  %v1742_v26 = vpack.c.bf16 %v9438_v23, %v9442_v30  ;;  %v1604_v20 = vmax.f32 %v1588_v15, 0.0  ;;  %v1388_v63 = vpop.f32.mrf.mxu1 }
 0x1b1   :  { %v1608_v22 = vmax.f32 %v1592_v57, 0.0  ;;  %v1612_v10 = vmax.f32 %v1596_v56, 0.0  ;;  %v1616_v49 = vmax.f32 %v1600_v8, 0.0  ;;  %v1420_v59 = vadd.f32 %v9430_v47, %v9424_v34 }
 0x1b2   :  { %v1383_v61 = vadd.f32 %v1382_v0, %v1329_v45  ;;  %v1385_v4 = vadd.f32 %v1384_v53, %v1331_v58  ;;  %v1387_v16 = vadd.f32 %v1386_v3, %v1333_v38  ;;  %v1620_v1 = vrot.slane %v1604_v20, 6 }
 0x1b3   :  { %v1624_v18 = vrot.slane %v1608_v22, 6  ;;  %v1628_v35 = vrot.slane %v1612_v10, 6  ;;  %v1632_v2 = vrot.slane %v1616_v49, 6  ;;  %v1678_v12 = vrot.slane %v1604_v20, 2 }
 0x1b4   :  { %v1682_v14 = vrot.slane %v1608_v22, 2  ;;  %v1686_v29 = vrot.slane %v1612_v10, 2  ;;  %v1690_v6 = vrot.slane %v1616_v49, 2  ;;  %v9510_v57 = vpack.c.bf16 %v1608_v22, %v1604_v20 }
 0x1b5   :  { %v9480_v31 = vsel %vm1637_vm2, %v1628_v35, %v1632_v2  ;;  %v9484_v41 = vsel %vm1637_vm2, %v1624_v18, %v1628_v35  ;;  %v9488_v45 = vsel %vm1637_vm2, %v1620_v1, %v1624_v18  ;;  %v9492_v0 = vsel %vm1637_vm2, %v1632_v2, %v1620_v1 }
 0x1b6   :  { %v9496_v62 = vsel %vm1693_vm3, %v1686_v29, %v1690_v6  ;;  %v9500_v25 = vsel %vm1693_vm3, %v1682_v14, %v1686_v29  ;;  %v9504_v51 = vsel %vm1693_vm3, %v1678_v12, %v1682_v14  ;;  %v9508_v15 = vsel %vm1693_vm3, %v1690_v6, %v1678_v12 }
 0x1b7   :  { %v9512_v56 = vpack.c.bf16 %v1616_v49, %v1612_v10  ;;  %v1743_v8 = vpack.c.bf16 %v9480_v31, %v9484_v41  ;;  %v1747_v58 = vpack.c.bf16 %v9500_v25, %v9504_v51  ;;  %v1412_v53 = vadd.f32 %v9428_v43, %v1383_v61 }
 0x1b8   :  { %v1421_v27 = vadd.f32 %v1420_v59, %v1385_v4  ;;  %v1389_v52 = vadd.f32 %v1388_v63, %v1335_v60 }
 0x1b9   :  { %v1413_v54 = vadd.f32 %v1412_v53, %v1387_v16 }
 0x1ba   :  { %v1422_v11 = vadd.f32 %v1421_v27, %v1389_v52 }
 0x1bb   :  { %v1414_v48 = vrot.slane %v1413_v54, 4 }
 0x1bc   :  { %v1423_v50 = vrot.slane %v1422_v11, 4 }
 0x1bd   :  { %v1415_v55 = vadd.f32 %v1414_v48, %v1413_v54 }
 0x1be   :  { %v1424_v21 = vadd.f32 %v1423_v50, %v1422_v11 }
 0x1bf   :  { %v1416_v38 = vrot.slane %v1415_v55, 2 }
 0x1c0   :  { %v1425_v3 = vrot.slane %v1424_v21, 2 }
 0x1c1   :  { %v1417_v20 = vadd.f32 %v1416_v38, %v1415_v55 }
 0x1c2   :  { %v1426_v22 = vadd.f32 %v1425_v3, %v1424_v21 }
 0x1c3   :  { %v1418_v10 = vrot.slane %v1417_v20, 1 }
 0x1c4   :  { %v1427_v49 = vrot.slane %v1426_v22, 1 }
 0x1c5   :  { %v1419_v1 = vadd.f32 %v1418_v10, %v1417_v20 }
 0x1c6   :  { %v1428_v18 = vadd.f32 %v1427_v49, %v1426_v22 }
 0x1c7   :  { %v1431_v35 = vmul.f32 0.03125, %v1419_v1 }
 0x1c8   :  { %v1432_v2 = vmul.f32 0.03125, %v1428_v18 }
 0x1c9   :  { %v1435_v43 = vsub.f32 %v9421_v24, %v1431_v35  ;;  %v1439_v59 = vsub.f32 %v9414_v32, %v1431_v35  ;;  %v1443_v12 = vsub.f32 %v1383_v61, %v1431_v35  ;;  %v1447_v60 = vsub.f32 %v1387_v16, %v1431_v35 }
 0x1ca   :  { %v1436_v14 = vsub.f32 %v9424_v34, %v1432_v2  ;;  %v1440_v29 = vsub.f32 %v9430_v47, %v1432_v2  ;;  %v1444_v6 = vsub.f32 %v1385_v4, %v1432_v2  ;;  %v1448_v27 = vsub.f32 %v1389_v52, %v1432_v2 }
 0x1cb   :  { %v1451_v63 = vmul.f32 %v1435_v43, %v1435_v43  ;;  %v1455_v53 = vmul.f32 %v1439_v59, %v1439_v59  ;;  %v1459_v48 = vmul.f32 %v1443_v12, %v1443_v12  ;;  %v1463_v38 = vmul.f32 %v1447_v60, %v1447_v60 }
 0x1cc   :  { %v1452_v54 = vmul.f32 %v1436_v14, %v1436_v14  ;;  %v1456_v11 = vmul.f32 %v1440_v29, %v1440_v29  ;;  %v1460_v55 = vmul.f32 %v1444_v6, %v1444_v6  ;;  %v1464_v3 = vmul.f32 %v1448_v27, %v1448_v27 }
 0x1cd   :  { %v1483_v50 = vadd.f32 %v1455_v53, %v1451_v63 }
 0x1ce   :  { %v1492_v21 = vadd.f32 %v1456_v11, %v1452_v54 }
 0x1cf   :  { %v1484_v24 = vadd.f32 %v1483_v50, %v1459_v48  ;;  %v1540_v48 = vsub.s32 2, %v9371_v33  ;;  %v1544_v50 = vsub.s32 3, %v9371_v33 }
 0x1d0   :  { %v1493_v32 = vadd.f32 %v1492_v21, %v1460_v55 }
 0x1d1   :  { %v1485_v61 = vadd.f32 %v1484_v24, %v1463_v38  ;;  %v1541_v55 = vrot.slane %v9400_v46, %v1540_v48  ;;  %v1578_v38 = vrot.slane %v9405_v28, %v1540_v48  ;;  %v1545_v24 = vrot.slane %v9400_v46, %v1544_v50 }
 0x1d2   :  { %v1494_v20 = vadd.f32 %v1493_v32, %v1464_v3  ;;  %v1582_v3 = vrot.slane %v9405_v28, %v1544_v50 }
 0x1d3   :  { %v1486_v34 = vrot.slane %v1485_v61, 4 }
 0x1d4   :  { %v1495_v22 = vrot.slane %v1494_v20, 4 }
 0x1d5   :  { %v1487_v47 = vadd.f32 %v1486_v34, %v1485_v61 }
 0x1d6   :  { %v1496_v4 = vadd.f32 %v1495_v22, %v1494_v20 }
 0x1d7   :  { %v1488_v16 = vrot.slane %v1487_v47, 2 }
 0x1d8   :  { %v1497_v10 = vrot.slane %v1496_v4, 2 }
 0x1d9   :  { %v1489_v49 = vadd.f32 %v1488_v16, %v1487_v47 }
 0x1da   :  { %v1498_v52 = vadd.f32 %v1497_v10, %v1496_v4 }
 0x1db   :  { %v1490_v1 = vrot.slane %v1489_v49, 1 }
 0x1dc   :  { %v1499_v18 = vrot.slane %v1498_v52, 1 }
 0x1dd   :  { %v1491_v35 = vadd.f32 %v1490_v1, %v1489_v49 }
 0x1de   :  { %v1500_v2 = vadd.f32 %v1499_v18, %v1498_v52 }
 0x1df   :  { %v1503_v63 = vmul.f32 0.03125, %v1491_v35 }
 0x1e0   :  { %v1504_v53 = vmul.f32 0.03125, %v1500_v2 }
 0x1e1   :  { %v1507_v54 = vadd.f32 1e-05, %v1503_v63 }
 0x1e2   :  { %v1508_v11 = vadd.f32 1e-05, %v1504_v53 }
 0x1e3   :  { %7561 = vrsqrt.f32 %v1507_v54 }
 0x1e4   :  { %7563 = vrsqrt.f32 %v1508_v11 }
 0x1f0   :  { %v7562_v21 = vpop.eup %7561 }
 0x1f1   :  { %v7564_v32 = vpop.eup %7563  ;;  %v1515_v61 = vmul.f32 %v7562_v21, %v1435_v43  ;;  %v1519_v20 = vmul.f32 %v7562_v21, %v1439_v59  ;;  %v1523_v34 = vmul.f32 %v7562_v21, %v1443_v12  ;;  %v1527_v22 = vmul.f32 %v7562_v21, %v1447_v60 }
 0x1f2   :  { %v1516_v47 = vmul.f32 %v7564_v32, %v1436_v14  ;;  %v1520_v4 = vmul.f32 %v7564_v32, %v1440_v29  ;;  %v1524_v16 = vmul.f32 %v7564_v32, %v1444_v6  ;;  %v1528_v10 = vmul.f32 %v7564_v32, %v1448_v27 }
 0x1f3   :  { %v1552_v49 = vmul.f32 %v1541_v55, %v1515_v61  ;;  %v1556_v52 = vmul.f32 %v1541_v55, %v1519_v20  ;;  %v1560_v1 = vmul.f32 %v1541_v55, %v1523_v34  ;;  %v1564_v18 = vmul.f32 %v1541_v55, %v1527_v22 }
 0x1f4   :  { %v1553_v35 = vmul.f32 %v1545_v24, %v1516_v47  ;;  %v1557_v2 = vmul.f32 %v1545_v24, %v1520_v4  ;;  %v1561_v63 = vmul.f32 %v1545_v24, %v1524_v16  ;;  %v1565_v53 = vmul.f32 %v1545_v24, %v1528_v10 }
 0x1f5   :  { %v1589_v46 = vadd.f32 %v1578_v38, %v1552_v49  ;;  %v1593_v54 = vadd.f32 %v1578_v38, %v1556_v52  ;;  %v1597_v28 = vadd.f32 %v1578_v38, %v1560_v1  ;;  %v1601_v11 = vadd.f32 %v1578_v38, %v1564_v18 }
 0x1f6   :  { %v1590_v43 = vadd.f32 %v1582_v3, %v1553_v35  ;;  %v1594_v59 = vadd.f32 %v1582_v3, %v1557_v2  ;;  %v1598_v12 = vadd.f32 %v1582_v3, %v1561_v63  ;;  %v1602_v60 = vadd.f32 %v1582_v3, %v1565_v53 }
 0x1f7   :  { %v1605_v14 = vmax.f32 %v1589_v46, 0.0  ;;  %v1609_v29 = vmax.f32 %v1593_v54, 0.0  ;;  %v1613_v6 = vmax.f32 %v1597_v28, 0.0  ;;  %v1617_v27 = vmax.f32 %v1601_v11, 0.0 }
 0x1f8   :  { %v1606_v48 = vmax.f32 %v1590_v43, 0.0  ;;  %v1610_v50 = vmax.f32 %v1594_v59, 0.0  ;;  %v1614_v21 = vmax.f32 %v1598_v12, 0.0  ;;  %v1618_v55 = vmax.f32 %v1602_v60, 0.0 }
 0x1f9   :  { %v1621_v32 = vrot.slane %v1605_v14, 6  ;;  %v1625_v61 = vrot.slane %v1609_v29, 6  ;;  %v1629_v20 = vrot.slane %v1613_v6, 6  ;;  %v1633_v24 = vrot.slane %v1617_v27, 6 }
 0x1fa   :  { %v1679_v34 = vrot.slane %v1605_v14, 2  ;;  %v1683_v22 = vrot.slane %v1609_v29, 2  ;;  %v1687_v47 = vrot.slane %v1613_v6, 2  ;;  %v1691_v38 = vrot.slane %v1617_v27, 2 }
 0x1fb   :  { %v9531_v4 = vsel %vm1637_vm2, %v1629_v20, %v1633_v24  ;;  %v9535_v3 = vsel %vm1637_vm2, %v1625_v61, %v1629_v20  ;;  %v9539_v16 = vsel %vm1637_vm2, %v1621_v32, %v1625_v61  ;;  %v9543_v10 = vsel %vm1637_vm2, %v1633_v24, %v1621_v32 }
 0x1fc   :  { %v9547_v49 = vsel %vm1693_vm3, %v1687_v47, %v1691_v38  ;;  %v9551_v52 = vsel %vm1693_vm3, %v1683_v22, %v1687_v47  ;;  %v9555_v1 = vsel %vm1693_vm3, %v1679_v34, %v1683_v22  ;;  %v9559_v18 = vsel %vm1693_vm3, %v1691_v38, %v1679_v34 }
 0x1fd   :  { %v9561_v35 = vpack.c.bf16 %v1609_v29, %v1605_v14  ;;  %v9563_v2 = vpack.c.bf16 %v1617_v27, %v1613_v6  ;;  %v1744_v63 = vpack.c.bf16 %v9531_v4, %v9535_v3  ;;  %v1622_v46 = vrot.slane %v1606_v48, 6 }
 0x1fe   :  { %v1626_v54 = vrot.slane %v1610_v50, 6  ;;  %v1630_v28 = vrot.slane %v1614_v21, 6  ;;  %v1634_v11 = vrot.slane %v1618_v55, 6  ;;  %v1680_v43 = vrot.slane %v1606_v48, 2 }
 0x1ff   :  { %v1684_v59 = vrot.slane %v1610_v50, 2  ;;  %v1688_v12 = vrot.slane %v1614_v21, 2  ;;  %v1692_v60 = vrot.slane %v1618_v55, 2  ;;  %v9601_v34 = vpack.c.bf16 %v1610_v50, %v1606_v48 }
 0x200   :  { %v9571_v14 = vsel %vm1637_vm2, %v1630_v28, %v1634_v11  ;;  %v9575_v29 = vsel %vm1637_vm2, %v1626_v54, %v1630_v28  ;;  %v9579_v6 = vsel %vm1637_vm2, %v1622_v46, %v1626_v54  ;;  %v9583_v27 = vsel %vm1637_vm2, %v1634_v11, %v1622_v46 }
 0x201   :  { %v9587_v32 = vsel %vm1693_vm3, %v1688_v12, %v1692_v60  ;;  %v9591_v61 = vsel %vm1693_vm3, %v1684_v59, %v1688_v12  ;;  %v9595_v20 = vsel %vm1693_vm3, %v1680_v43, %v1684_v59  ;;  %v9599_v24 = vsel %vm1693_vm3, %v1692_v60, %v1680_v43 }
 0x202   :  { %v9603_v22 = vpack.c.bf16 %v1618_v55, %v1614_v21  ;;  %v1745_v47 = vpack.c.bf16 %v9571_v14, %v9575_v29 }
 0x203   :  { %8295 = dma.done.wait [#allocation7 + $0x1], 32768 }
 0x204   :  { %8296 = vsyncadd [#allocation7 + $0x1], 4294934528  ;;  %2559 = vmatprep.mubr.bf16.mxu0 %v9510_v57  ;;  %2612 = vmatprep.mubr.bf16.mxu1 %v9601_v34  ;;  %v7565_v46 = vld [vmem:[#allocation3 + $0x74] ss:$8 sps:$4 sm:$0xff]   ;;  %v7569_v28 = vld [vmem:[#allocation3 + $0x70] ss:$8 sps:$4 sm:$0xff]   ;;  %v6871_v37 = vpack.c.bf16 %v9466_v9, %v9454_v19 }
 0x205   :  { %v7567_v54 = vld [vmem:[#allocation3 + $0x174] ss:$8 sps:$4 sm:$0xff]   ;;  %2527 = vmatprep.subr.bf16.mxu0 %v7565_v46  ;;  %v7570_v48 = vld [vmem:[#allocation3 + $0x170] ss:$8 sps:$4 sm:$0xff]   ;;  %v7571_v50 = vld [vmem:[#allocation3 + $0x64] ss:$8 sps:$4 sm:$0xff]  }
 0x206   :  { %2580 = vmatprep.subr.bf16.mxu1 %v7567_v54  ;;  %2528 = vmatpush1.bf16.msra.mxu0 %v7569_v28  ;;  %v7573_v21 = vld [vmem:[#allocation3 + $0x164] ss:$8 sps:$4 sm:$0xff]   ;;  %v7575_v55 = vld [vmem:[#allocation3 + $0x60] ss:$8 sps:$4 sm:$0xff]   ;;  %v7577_v43 = vld [vmem:[#allocation3 + $0x54] ss:$8 sps:$4 sm:$0xff]  }
 0x207   :  { %2581 = vmatpush1.bf16.msra.mxu1 %v7570_v48  ;;  %2529 = vmatprep.subr.bf16.mxu0 %v7571_v50  ;;  %v7576_v11 = vld [vmem:[#allocation3 + $0x160] ss:$8 sps:$4 sm:$0xff]   ;;  %v7579_v59 = vld [vmem:[#allocation3 + $0x154] ss:$8 sps:$4 sm:$0xff]   ;;  %v7581_v12 = vld [vmem:[#allocation3 + $0x50] ss:$8 sps:$4 sm:$0xff]  }
 0x208   :  { %2582 = vmatprep.subr.bf16.mxu1 %v7573_v21  ;;  %v7582_v60 = vld [vmem:[#allocation3 + $0x150] ss:$8 sps:$4 sm:$0xff]   ;;  %v7583_v53 = vld [vmem:[#allocation3 + $0x44] ss:$8 sps:$4 sm:$0xff]   ;;  %v7587_v5 = vld [vmem:[#allocation3 + $0x40] ss:$8 sps:$4 sm:$0xff]  }
 0x209   :  { %v7585_v46 = vld [vmem:[#allocation3 + $0x144] ss:$8 sps:$4 sm:$0xff]   ;;  %v7588_v54 = vld [vmem:[#allocation3 + $0x140] ss:$8 sps:$4 sm:$0xff]   ;;  %v7589_v28 = vld [vmem:[#allocation3 + $0x34] ss:$8 sps:$4 sm:$0xff]  }
 0x20a   :  { %2530 = vmatpush1.bf16.msra.mxu0 %v7575_v55  ;;  %v7591_v48 = vld [vmem:[#allocation3 + $0x134] ss:$8 sps:$4 sm:$0xff]   ;;  %v7593_v50 = vld [vmem:[#allocation3 + $0x30] ss:$8 sps:$4 sm:$0xff]   ;;  %v7595_v38 = vld [vmem:[#allocation3 + $0x24] ss:$8 sps:$4 sm:$0xff]  }
 0x20b   :  { %2583 = vmatpush1.bf16.msra.mxu1 %v7576_v11  ;;  %2531 = vmatprep.subr.bf16.mxu0 %v7577_v43  ;;  %v7594_v21 = vld [vmem:[#allocation3 + $0x130] ss:$8 sps:$4 sm:$0xff]   ;;  %v7597_v55 = vld [vmem:[#allocation3 + $0x124] ss:$8 sps:$4 sm:$0xff]   ;;  %v7599_v11 = vld [vmem:[#allocation3 + $0x20] ss:$8 sps:$4 sm:$0xff]  }
 0x20c   :  { %2584 = vmatprep.subr.bf16.mxu1 %v7579_v59  ;;  %v7600_v43 = vld [vmem:[#allocation3 + $0x120] ss:$8 sps:$4 sm:$0xff]   ;;  %v7601_v59 = vld [vmem:[#allocation3 + $0x14] ss:$8 sps:$4 sm:$0xff]   ;;  %vm8307_vm4 = vmmov 1  }
 0x20d   :  { %vm9624_vm5 = vmpackc.low %vm8307_vm4, %vm1657_vm0  ;;  %v7775_v31 = vld [vmem:[#allocation3 + $0x440] ss:$8 sps:$4 sm:$0xff]   ;;  %v7786_v14 = vld [vmem:[#allocation3 + $0x534] ss:$8 sps:$4 sm:$0xff]  }
 0x20e   :  { %2532 = vmatpush1.bf16.msra.mxu0 %v7581_v12  ;;  %v7603_v12 = vld [vmem:[#allocation3 + $0x114] ss:$8 sps:$4 sm:$0xff]   ;;  %v7778_v41 = vld [vmem:[#allocation3 + $0x540] ss:$8 sps:$4 sm:$0xff]   ;;  %v7781_v29 = vld [vmem:[#allocation3 + $0x430] ss:$8 sps:$4 sm:$0xff]  }
 0x20f   :  { %2585 = vmatpush1.bf16.msra.mxu1 %v7582_v60  ;;  %2533 = vmatprep.subr.bf16.mxu0 %v7583_v53  ;;  %v7605_v60 = vld [vmem:[#allocation3 + $0x10] ss:$8 sps:$4 sm:$0xff]   ;;  %v7789_v30 = vld [vmem:[#allocation3 + $0x424] ss:$8 sps:$4 sm:$0xff]   ;;  %v7787_v4 = vld [vmem:[#allocation3 + $0x420] ss:$8 sps:$4 sm:$0xff]  }
 0x210   :  { %2586 = vmatprep.subr.bf16.mxu1 %v7585_v46  ;;  %v7606_v53 = vld [vmem:[#allocation3 + $0x110] ss:$8 sps:$4 sm:$0xff]   ;;  %v7607_v46 = vld [vmem:[#allocation3 + $0x4] ss:$8 sps:$4 sm:$0xff]   ;;  %v7790_v3 = vld [vmem:[#allocation3 + $0x520] ss:$8 sps:$4 sm:$0xff]  }
 0x211   :  { %v7784_v23 = vld [vmem:[#allocation3 + $0x530] ss:$8 sps:$4 sm:$0xff]   ;;  %v7891_v25 = vld [vmem:[#allocation3 + $0x614] ss:$8 sps:$4 sm:$0xff]   ;;  %vm9673_vm6 = vmpackc.low %vm1713_vm1, %vm8307_vm4 }
 0x212   :  { %2534 = vmatpush1.bf16.msra.mxu0 %v7587_v5  ;;  %v7609_v5 = vld [vmem:[#allocation3 + $0x104] ss:$8 sps:$4 sm:$0xff]   ;;  %v7894_v51 = vld [vmem:[#allocation3 + $0x714] ss:$8 sps:$4 sm:$0xff]  }
 0x213   :  { %2587 = vmatpush1.bf16.msra.mxu1 %v7588_v54  ;;  %2535 = vmatprep.subr.bf16.mxu0 %v7589_v28  ;;  %v7611_v54 = vld [vmem:[#allocation3] ss:$8 sps:$4 sm:$0xff]  }
 0x214   :  { %2588 = vmatprep.subr.bf16.mxu1 %v7591_v48  ;;  %v7612_v28 = vld [vmem:[#allocation3 + $0x100] ss:$8 sps:$4 sm:$0xff]   ;;  %v7613_v48 = vld [vmem:[#allocation3 + $0xf4] ss:$8 sps:$4 sm:$0xff]  }
 0x216   :  { %2536 = vmatpush1.bf16.msra.mxu0 %v7593_v50  ;;  %v7615_v50 = vld [vmem:[#allocation3 + $0x1f4] ss:$8 sps:$4 sm:$0xff]  }
 0x217   :  { %2589 = vmatpush1.bf16.msra.mxu1 %v7594_v21  ;;  %2537 = vmatprep.subr.bf16.mxu0 %v7595_v38  ;;  %v7617_v21 = vld [vmem:[#allocation3 + $0xf0] ss:$8 sps:$4 sm:$0xff]  }
 0x218   :  { %2590 = vmatprep.subr.bf16.mxu1 %v7597_v55  ;;  %v7618_v38 = vld [vmem:[#allocation3 + $0x1f0] ss:$8 sps:$4 sm:$0xff]   ;;  %v7619_v55 = vld [vmem:[#allocation3 + $0xe4] ss:$8 sps:$4 sm:$0xff]  }
 0x21a   :  { %2538 = vmatpush1.bf16.msra.mxu0 %v7599_v11  ;;  %v7621_v11 = vld [vmem:[#allocation3 + $0x1e4] ss:$8 sps:$4 sm:$0xff]  }
 0x21b   :  { %2591 = vmatpush1.bf16.msra.mxu1 %v7600_v43  ;;  %2539 = vmatprep.subr.bf16.mxu0 %v7601_v59  ;;  %v7623_v43 = vld [vmem:[#allocation3 + $0xe0] ss:$8 sps:$4 sm:$0xff]  }
 0x21c   :  { %2592 = vmatprep.subr.bf16.mxu1 %v7603_v12  ;;  %v7624_v59 = vld [vmem:[#allocation3 + $0x1e0] ss:$8 sps:$4 sm:$0xff]   ;;  %v7625_v12 = vld [vmem:[#allocation3 + $0xd4] ss:$8 sps:$4 sm:$0xff]  }
 0x21e   :  { %2540 = vmatpush1.bf16.msra.mxu0 %v7605_v60  ;;  %v7627_v60 = vld [vmem:[#allocation3 + $0x1d4] ss:$8 sps:$4 sm:$0xff]  }
 0x21f   :  { %2593 = vmatpush1.bf16.msra.mxu1 %v7606_v53  ;;  %2541 = vmatprep.subr.bf16.mxu0 %v7607_v46  ;;  %v7629_v53 = vld [vmem:[#allocation3 + $0xd0] ss:$8 sps:$4 sm:$0xff]  }
 0x220   :  { %2594 = vmatprep.subr.bf16.mxu1 %v7609_v5  ;;  %v7630_v46 = vld [vmem:[#allocation3 + $0x1d0] ss:$8 sps:$4 sm:$0xff]   ;;  %v7631_v5 = vld [vmem:[#allocation3 + $0xc4] ss:$8 sps:$4 sm:$0xff]  }
 0x222   :  { %2542 = vmatpush1.bf16.msra.mxu0 %v7611_v54  ;;  %v7633_v54 = vld [vmem:[#allocation3 + $0x1c4] ss:$8 sps:$4 sm:$0xff]  }
 0x223   :  { %2595 = vmatpush1.bf16.msra.mxu1 %v7612_v28  ;;  %2543 = vmatprep.subr.bf16.mxu0 %v7613_v48  ;;  %v7635_v28 = vld [vmem:[#allocation3 + $0xc0] ss:$8 sps:$4 sm:$0xff]  }
 0x224   :  { %2596 = vmatprep.subr.bf16.mxu1 %v7615_v50  ;;  %v7636_v48 = vld [vmem:[#allocation3 + $0x1c0] ss:$8 sps:$4 sm:$0xff]   ;;  %v7637_v50 = vld [vmem:[#allocation3 + $0xb4] ss:$8 sps:$4 sm:$0xff]  }
 0x226   :  { %2544 = vmatpush2.bf16.msra.mxu0 %v7617_v21  ;;  %v7639_v21 = vld [vmem:[#allocation3 + $0x1b4] ss:$8 sps:$4 sm:$0xff]  }
 0x227   :  { %2597 = vmatpush2.bf16.msra.mxu1 %v7618_v38  ;;  %2545 = vmatprep.subr.bf16.mxu0 %v7619_v55  ;;  %v7641_v38 = vld [vmem:[#allocation3 + $0xb0] ss:$8 sps:$4 sm:$0xff]  }
 0x228   :  { %2598 = vmatprep.subr.bf16.mxu1 %v7621_v11  ;;  %v7642_v55 = vld [vmem:[#allocation3 + $0x1b0] ss:$8 sps:$4 sm:$0xff]   ;;  %v7643_v11 = vld [vmem:[#allocation3 + $0xa4] ss:$8 sps:$4 sm:$0xff]  }
 0x22a   :  { %2546 = vmatpush2.bf16.msra.mxu0 %v7623_v43  ;;  %v7645_v43 = vld [vmem:[#allocation3 + $0x1a4] ss:$8 sps:$4 sm:$0xff]  }
 0x22b   :  { %2599 = vmatpush2.bf16.msra.mxu1 %v7624_v59  ;;  %2547 = vmatprep.subr.bf16.mxu0 %v7625_v12  ;;  %v7647_v59 = vld [vmem:[#allocation3 + $0xa0] ss:$8 sps:$4 sm:$0xff]  }
 0x22c   :  { %2600 = vmatprep.subr.bf16.mxu1 %v7627_v60  ;;  %v7648_v12 = vld [vmem:[#allocation3 + $0x1a0] ss:$8 sps:$4 sm:$0xff]   ;;  %v7649_v60 = vld [vmem:[#allocation3 + $0x94] ss:$8 sps:$4 sm:$0xff]  }
 0x22e   :  { %2548 = vmatpush2.bf16.msra.mxu0 %v7629_v53  ;;  %v7651_v53 = vld [vmem:[#allocation3 + $0x194] ss:$8 sps:$4 sm:$0xff]  }
 0x22f   :  { %2601 = vmatpush2.bf16.msra.mxu1 %v7630_v46  ;;  %2549 = vmatprep.subr.bf16.mxu0 %v7631_v5  ;;  %v7653_v46 = vld [vmem:[#allocation3 + $0x90] ss:$8 sps:$4 sm:$0xff]  }
 0x230   :  { %2602 = vmatprep.subr.bf16.mxu1 %v7633_v54  ;;  %v7654_v5 = vld [vmem:[#allocation3 + $0x190] ss:$8 sps:$4 sm:$0xff]   ;;  %v7655_v54 = vld [vmem:[#allocation3 + $0x84] ss:$8 sps:$4 sm:$0xff]  }
 0x232   :  { %2550 = vmatpush2.bf16.msra.mxu0 %v7635_v28  ;;  %v7657_v28 = vld [vmem:[#allocation3 + $0x184] ss:$8 sps:$4 sm:$0xff]  }
 0x233   :  { %2603 = vmatpush2.bf16.msra.mxu1 %v7636_v48  ;;  %2551 = vmatprep.subr.bf16.mxu0 %v7637_v50  ;;  %v7659_v48 = vld [vmem:[#allocation3 + $0x80] ss:$8 sps:$4 sm:$0xff]  }
 0x234   :  { %2604 = vmatprep.subr.bf16.mxu1 %v7639_v21  ;;  %v7660_v50 = vld [vmem:[#allocation3 + $0x180] ss:$8 sps:$4 sm:$0xff]   ;;  %v7663_v21 = vld [vmem:[#allocation3 + $0x274] ss:$8 sps:$4 sm:$0xff]  }
 0x236   :  { %2552 = vmatpush2.bf16.msra.mxu0 %v7641_v38  ;;  %v7666_v38 = vld [vmem:[#allocation3 + $0x374] ss:$8 sps:$4 sm:$0xff]  }
 0x237   :  { %2605 = vmatpush2.bf16.msra.mxu1 %v7642_v55  ;;  %2553 = vmatprep.subr.bf16.mxu0 %v7643_v11  ;;  %v7661_v55 = vld [vmem:[#allocation3 + $0x270] ss:$8 sps:$4 sm:$0xff]  }
 0x238   :  { %2606 = vmatprep.subr.bf16.mxu1 %v7645_v43  ;;  %v7664_v11 = vld [vmem:[#allocation3 + $0x370] ss:$8 sps:$4 sm:$0xff]   ;;  %v7669_v43 = vld [vmem:[#allocation3 + $0x264] ss:$8 sps:$4 sm:$0xff]  }
 0x23a   :  { %2554 = vmatpush2.bf16.msra.mxu0 %v7647_v59  ;;  %v7672_v59 = vld [vmem:[#allocation3 + $0x364] ss:$8 sps:$4 sm:$0xff]  }
 0x23b   :  { %2607 = vmatpush2.bf16.msra.mxu1 %v7648_v12  ;;  %2555 = vmatprep.subr.bf16.mxu0 %v7649_v60  ;;  %v7667_v12 = vld [vmem:[#allocation3 + $0x260] ss:$8 sps:$4 sm:$0xff]  }
 0x23c   :  { %2608 = vmatprep.subr.bf16.mxu1 %v7651_v53  ;;  %v7670_v60 = vld [vmem:[#allocation3 + $0x360] ss:$8 sps:$4 sm:$0xff]   ;;  %v7675_v53 = vld [vmem:[#allocation3 + $0x254] ss:$8 sps:$4 sm:$0xff]  }
 0x23e   :  { %2556 = vmatpush2.bf16.msra.mxu0 %v7653_v46  ;;  %v7678_v46 = vld [vmem:[#allocation3 + $0x354] ss:$8 sps:$4 sm:$0xff]  }
 0x23f   :  { %2609 = vmatpush2.bf16.msra.mxu1 %v7654_v5  ;;  %2557 = vmatprep.subr.bf16.mxu0 %v7655_v54  ;;  %v7673_v5 = vld [vmem:[#allocation3 + $0x250] ss:$8 sps:$4 sm:$0xff]  }
 0x240   :  { %2610 = vmatprep.subr.bf16.mxu1 %v7657_v28  ;;  %v7676_v54 = vld [vmem:[#allocation3 + $0x350] ss:$8 sps:$4 sm:$0xff]   ;;  %v7681_v28 = vld [vmem:[#allocation3 + $0x244] ss:$8 sps:$4 sm:$0xff]  }
 0x242   :  { %2558 = vmatpush2.bf16.msra.mxu0 %v7659_v48  ;;  %v7684_v48 = vld [vmem:[#allocation3 + $0x344] ss:$8 sps:$4 sm:$0xff]  }
 0x243   :  { %2611 = vmatpush2.bf16.msra.mxu1 %v7660_v50  ;;  %2633 = vmatprep.subr.bf16.mxu0 %v7663_v21  ;;  %v7679_v50 = vld [vmem:[#allocation3 + $0x240] ss:$8 sps:$4 sm:$0xff]  }
 0x244   :  { %2686 = vmatprep.subr.bf16.mxu1 %v7666_v38  ;;  %v7682_v21 = vld [vmem:[#allocation3 + $0x340] ss:$8 sps:$4 sm:$0xff]   ;;  %v7687_v38 = vld [vmem:[#allocation3 + $0x234] ss:$8 sps:$4 sm:$0xff]  }
 0x245   :  { %2560 = vmatmul.mubr.bf16.vlgmr.msra.gmra.mxu0 %v9468_v36 }
 0x246   :  { %2613 = vmatmul.mubr.bf16.vlgmr.msra.gmra.mxu1 %v9561_v35  ;;  %2634 = vmatpush1.bf16.msra.mxu0 %v7661_v55  ;;  %v7690_v55 = vld [vmem:[#allocation3 + $0x334] ss:$8 sps:$4 sm:$0xff]  }
 0x247   :  { %2687 = vmatpush1.bf16.msra.mxu1 %v7664_v11  ;;  %2635 = vmatprep.subr.bf16.mxu0 %v7669_v43  ;;  %v7685_v11 = vld [vmem:[#allocation3 + $0x230] ss:$8 sps:$4 sm:$0xff]  }
 0x248   :  { %2688 = vmatprep.subr.bf16.mxu1 %v7672_v59  ;;  %2569 = vmatprep.mubr.bf16.mxu0 %v9512_v56  ;;  %v7688_v43 = vld [vmem:[#allocation3 + $0x330] ss:$8 sps:$4 sm:$0xff]   ;;  %v7693_v59 = vld [vmem:[#allocation3 + $0x224] ss:$8 sps:$4 sm:$0xff]  }
 0x249   :  { %2622 = vmatprep.mubr.bf16.mxu1 %v9603_v22 }
 0x24a   :  { %2636 = vmatpush1.bf16.msra.mxu0 %v7667_v12  ;;  %v7696_v12 = vld [vmem:[#allocation3 + $0x324] ss:$8 sps:$4 sm:$0xff]  }
 0x24b   :  { %2689 = vmatpush1.bf16.msra.mxu1 %v7670_v60  ;;  %2637 = vmatprep.subr.bf16.mxu0 %v7675_v53  ;;  %v6728_v60 = vpack.c.bf16 %v9488_v45, %v9492_v0  ;;  %v6734_v53 = vpack.c.bf16 %v9579_v6, %v9583_v27  ;;  %v7697_v45 = vld [vmem:[#allocation3 + $0x210] ss:$8 sps:$4 sm:$0xff]   ;;  %v7705_v6 = vld [vmem:[#allocation3 + $0x204] ss:$8 sps:$4 sm:$0xff]  }
 0x24c   :  { %2690 = vmatprep.subr.bf16.mxu1 %v7678_v46  ;;  %v7691_v46 = vld [vmem:[#allocation3 + $0x220] ss:$8 sps:$4 sm:$0xff]   ;;  %v7700_v0 = vld [vmem:[#allocation3 + $0x310] ss:$8 sps:$4 sm:$0xff]   ;;  %v7708_v27 = vld [vmem:[#allocation3 + $0x304] ss:$8 sps:$4 sm:$0xff]  }
 0x24d   :  { %2570 = vmatmul.mubr.bf16.gmra.mxu0 %v9470_v39 }
 0x24e   :  { %2623 = vmatmul.mubr.bf16.gmra.mxu1 %v9563_v2  ;;  %2638 = vmatpush1.bf16.msra.mxu0 %v7673_v5  ;;  %v7694_v5 = vld [vmem:[#allocation3 + $0x320] ss:$8 sps:$4 sm:$0xff]  }
 0x24f   :  { %2691 = vmatpush1.bf16.msra.mxu1 %v7676_v54  ;;  %2639 = vmatprep.subr.bf16.mxu0 %v7681_v28  ;;  %v7699_v54 = vld [vmem:[#allocation3 + $0x214] ss:$8 sps:$4 sm:$0xff]  }
 0x250   :  { %2692 = vmatprep.subr.bf16.mxu1 %v7684_v48  ;;  %v7702_v28 = vld [vmem:[#allocation3 + $0x314] ss:$8 sps:$4 sm:$0xff]   ;;  %v11079_v48 = vmov 0  ;;  %6729 = vmatprep.mubr.msk.bf16.mxu0 %vm9624_vm5, %v6728_v60  ;;  %v7715_v60 = vld [vmem:[#allocation3 + $0x2e0] ss:$8 sps:$4 sm:$0xff]  }
 0x251   :  { %v11080_v48 = vsel %vm9624_vm5, 4294967295, %v11079_v48  ;;  %6735 = vmatprep.mubr.msk.bf16.mxu1 %vm9624_vm5, %v6734_v53  ;;  %v7718_v53 = vld [vmem:[#allocation3 + $0x3e0] ss:$8 sps:$4 sm:$0xff]  }
 0x252   :  { %2640 = vmatpush1.bf16.msra.mxu0 %v7679_v50  ;;  %11081 = vst [vmem:[#allocation42_spill] sm:$0xff] %v11080_v48  ;;  %v7703_v50 = vld [vmem:[#allocation3 + $0x200] ss:$8 sps:$4 sm:$0xff]  }
 0x253   :  { %2693 = vmatpush1.bf16.msra.mxu1 %v7682_v21  ;;  %2641 = vmatprep.subr.bf16.mxu0 %v7687_v38  ;;  %v7706_v21 = vld [vmem:[#allocation3 + $0x300] ss:$8 sps:$4 sm:$0xff]   ;;  %v7711_v38 = vld [vmem:[#allocation3 + $0x2f4] ss:$8 sps:$4 sm:$0xff]  }
 0x254   :  { %2694 = vmatprep.subr.bf16.mxu1 %v7690_v55  ;;  %v7714_v55 = vld [vmem:[#allocation3 + $0x3f4] ss:$8 sps:$4 sm:$0xff]  }
 0x256   :  { %2642 = vmatpush1.bf16.msra.mxu0 %v7685_v11  ;;  %v7709_v11 = vld [vmem:[#allocation3 + $0x2f0] ss:$8 sps:$4 sm:$0xff]  }
 0x257   :  { %2695 = vmatpush1.bf16.msra.mxu1 %v7688_v43  ;;  %2643 = vmatprep.subr.bf16.mxu0 %v7693_v59  ;;  %v7712_v43 = vld [vmem:[#allocation3 + $0x3f0] ss:$8 sps:$4 sm:$0xff]   ;;  %v7717_v59 = vld [vmem:[#allocation3 + $0x2e4] ss:$8 sps:$4 sm:$0xff]  }
 0x258   :  { %2696 = vmatprep.subr.bf16.mxu1 %v7696_v12  ;;  %v7720_v12 = vld [vmem:[#allocation3 + $0x3e4] ss:$8 sps:$4 sm:$0xff]  }
 0x25a   :  { %2644 = vmatpush1.bf16.msra.mxu0 %v7691_v46  ;;  %v7723_v46 = vld [vmem:[#allocation3 + $0x2d4] ss:$8 sps:$4 sm:$0xff]  }
 0x25b   :  { %2697 = vmatpush1.bf16.msra.mxu1 %v7694_v5  ;;  %2645 = vmatprep.subr.bf16.mxu0 %v7699_v54  ;;  %v7726_v5 = vld [vmem:[#allocation3 + $0x3d4] ss:$8 sps:$4 sm:$0xff]   ;;  %v7721_v54 = vld [vmem:[#allocation3 + $0x2d0] ss:$8 sps:$4 sm:$0xff]  }
 0x25c   :  { %2698 = vmatprep.subr.bf16.mxu1 %v7702_v28  ;;  %v7724_v28 = vld [vmem:[#allocation3 + $0x3d0] ss:$8 sps:$4 sm:$0xff]  }
 0x25e   :  { %2646 = vmatpush1.bf16.msra.mxu0 %v7697_v45  ;;  %v7729_v45 = vld [vmem:[#allocation3 + $0x2c4] ss:$8 sps:$4 sm:$0xff]  }
 0x25f   :  { %2699 = vmatpush1.bf16.msra.mxu1 %v7700_v0  ;;  %2647 = vmatprep.subr.bf16.mxu0 %v7705_v6  ;;  %v7732_v0 = vld [vmem:[#allocation3 + $0x3c4] ss:$8 sps:$4 sm:$0xff]   ;;  %v7727_v6 = vld [vmem:[#allocation3 + $0x2c0] ss:$8 sps:$4 sm:$0xff]  }
 0x260   :  { %2700 = vmatprep.subr.bf16.mxu1 %v7708_v27  ;;  %v7730_v27 = vld [vmem:[#allocation3 + $0x3c0] ss:$8 sps:$4 sm:$0xff]  }
 0x262   :  { %2648 = vmatpush1.bf16.msra.mxu0 %v7703_v50  ;;  %v7735_v50 = vld [vmem:[#allocation3 + $0x2b4] ss:$8 sps:$4 sm:$0xff]  }
 0x263   :  { %2701 = vmatpush1.bf16.msra.mxu1 %v7706_v21  ;;  %2649 = vmatprep.subr.bf16.mxu0 %v7711_v38  ;;  %v7738_v21 = vld [vmem:[#allocation3 + $0x3b4] ss:$8 sps:$4 sm:$0xff]   ;;  %v7733_v38 = vld [vmem:[#allocation3 + $0x2b0] ss:$8 sps:$4 sm:$0xff]  }
 0x264   :  { %2702 = vmatprep.subr.bf16.mxu1 %v7714_v55  ;;  %v7736_v55 = vld [vmem:[#allocation3 + $0x3b0] ss:$8 sps:$4 sm:$0xff]  }
 0x266   :  { %2650 = vmatpush2.bf16.msra.mxu0 %v7709_v11  ;;  %v7741_v11 = vld [vmem:[#allocation3 + $0x2a4] ss:$8 sps:$4 sm:$0xff]  }
 0x267   :  { %2703 = vmatpush2.bf16.msra.mxu1 %v7712_v43  ;;  %2651 = vmatprep.subr.bf16.mxu0 %v7717_v59  ;;  %v7744_v43 = vld [vmem:[#allocation3 + $0x3a4] ss:$8 sps:$4 sm:$0xff]   ;;  %v7739_v59 = vld [vmem:[#allocation3 + $0x2a0] ss:$8 sps:$4 sm:$0xff]  }
 0x268   :  { %2704 = vmatprep.subr.bf16.mxu1 %v7720_v12  ;;  %v7742_v12 = vld [vmem:[#allocation3 + $0x3a0] ss:$8 sps:$4 sm:$0xff]  }
 0x26a   :  { %2652 = vmatpush2.bf16.msra.mxu0 %v7715_v60  ;;  %v7747_v60 = vld [vmem:[#allocation3 + $0x294] ss:$8 sps:$4 sm:$0xff]  }
 0x26b   :  { %2705 = vmatpush2.bf16.msra.mxu1 %v7718_v53  ;;  %2653 = vmatprep.subr.bf16.mxu0 %v7723_v46  ;;  %v7750_v53 = vld [vmem:[#allocation3 + $0x394] ss:$8 sps:$4 sm:$0xff]   ;;  %v7745_v46 = vld [vmem:[#allocation3 + $0x290] ss:$8 sps:$4 sm:$0xff]  }
 0x26c   :  { %2706 = vmatprep.subr.bf16.mxu1 %v7726_v5  ;;  %v7748_v5 = vld [vmem:[#allocation3 + $0x390] ss:$8 sps:$4 sm:$0xff]  }
 0x26e   :  { %2654 = vmatpush2.bf16.msra.mxu0 %v7721_v54  ;;  %v7753_v54 = vld [vmem:[#allocation3 + $0x284] ss:$8 sps:$4 sm:$0xff]  }
 0x26f   :  { %2707 = vmatpush2.bf16.msra.mxu1 %v7724_v28  ;;  %2655 = vmatprep.subr.bf16.mxu0 %v7729_v45  ;;  %v7756_v28 = vld [vmem:[#allocation3 + $0x384] ss:$8 sps:$4 sm:$0xff]   ;;  %v7751_v45 = vld [vmem:[#allocation3 + $0x280] ss:$8 sps:$4 sm:$0xff]  }
 0x270   :  { %2708 = vmatprep.subr.bf16.mxu1 %v7732_v0  ;;  %v7754_v0 = vld [vmem:[#allocation3 + $0x380] ss:$8 sps:$4 sm:$0xff]  }
 0x272   :  { %2656 = vmatpush2.bf16.msra.mxu0 %v7727_v6  ;;  %v7759_v6 = vld [vmem:[#allocation3 + $0x474] ss:$8 sps:$4 sm:$0xff]  }
 0x273   :  { %2709 = vmatpush2.bf16.msra.mxu1 %v7730_v27  ;;  %2657 = vmatprep.subr.bf16.mxu0 %v7735_v50  ;;  %v7762_v27 = vld [vmem:[#allocation3 + $0x574] ss:$8 sps:$4 sm:$0xff]   ;;  %v6731_v50 = vpack.c.bf16 %v9446_v40, %v9450_v7  ;;  %v7766_v40 = vld [vmem:[#allocation3 + $0x560] ss:$8 sps:$4 sm:$0xff]  }
 0x274   :  { %2710 = vmatprep.subr.bf16.mxu1 %v7738_v21  ;;  %v6737_v21 = vpack.c.bf16 %v9539_v16, %v9543_v10  ;;  %v7771_v7 = vld [vmem:[#allocation3 + $0x454] ss:$8 sps:$4 sm:$0xff]   ;;  %v7769_v10 = vld [vmem:[#allocation3 + $0x450] ss:$8 sps:$4 sm:$0xff]  }
 0x275   :  { %v7774_v16 = vld [vmem:[#allocation3 + $0x554] ss:$8 sps:$4 sm:$0xff]  }
 0x276   :  { %2658 = vmatpush2.bf16.msra.mxu0 %v7733_v38  ;;  %v7757_v38 = vld [vmem:[#allocation3 + $0x470] ss:$8 sps:$4 sm:$0xff]  }
 0x277   :  { %2711 = vmatpush2.bf16.msra.mxu1 %v7736_v55  ;;  %2659 = vmatprep.subr.bf16.mxu0 %v7741_v11  ;;  %v7760_v55 = vld [vmem:[#allocation3 + $0x570] ss:$8 sps:$4 sm:$0xff]   ;;  %v7765_v11 = vld [vmem:[#allocation3 + $0x464] ss:$8 sps:$4 sm:$0xff]  }
 0x278   :  { %2712 = vmatprep.subr.bf16.mxu1 %v7744_v43  ;;  %v7768_v43 = vld [vmem:[#allocation3 + $0x564] ss:$8 sps:$4 sm:$0xff]  }
 0x27a   :  { %2660 = vmatpush2.bf16.msra.mxu0 %v7739_v59  ;;  %v7763_v59 = vld [vmem:[#allocation3 + $0x460] ss:$8 sps:$4 sm:$0xff]  }
 0x27b   :  { %2713 = vmatpush2.bf16.msra.mxu1 %v7742_v12  ;;  %2661 = vmatprep.subr.bf16.mxu0 %v7747_v60  ;;  %v7772_v12 = vld [vmem:[#allocation3 + $0x550] ss:$8 sps:$4 sm:$0xff]   ;;  %v7777_v60 = vld [vmem:[#allocation3 + $0x444] ss:$8 sps:$4 sm:$0xff]  }
 0x27c   :  { %2714 = vmatprep.subr.bf16.mxu1 %v7750_v53  ;;  %v7780_v53 = vld [vmem:[#allocation3 + $0x544] ss:$8 sps:$4 sm:$0xff]  }
 0x27e   :  { %2662 = vmatpush2.bf16.msra.mxu0 %v7745_v46  ;;  %v7793_v46 = vld [vmem:[#allocation3 + $0x410] ss:$8 sps:$4 sm:$0xff]  }
 0x27f   :  { %2715 = vmatpush2.bf16.msra.mxu1 %v7748_v5  ;;  %2663 = vmatprep.subr.bf16.mxu0 %v7753_v54  ;;  %v7804_v5 = vld [vmem:[#allocation3 + $0x504] ss:$8 sps:$4 sm:$0xff]   ;;  %v7799_v54 = vld [vmem:[#allocation3 + $0x400] ss:$8 sps:$4 sm:$0xff]  }
 0x280   :  { %2716 = vmatprep.subr.bf16.mxu1 %v7756_v28  ;;  %v7802_v28 = vld [vmem:[#allocation3 + $0x500] ss:$8 sps:$4 sm:$0xff]  }
 0x282   :  { %2664 = vmatpush2.bf16.msra.mxu0 %v7751_v45  ;;  %v7807_v45 = vld [vmem:[#allocation3 + $0x4f4] ss:$8 sps:$4 sm:$0xff]  }
 0x283   :  { %2717 = vmatpush2.bf16.msra.mxu1 %v7754_v0  ;;  %3508 = vmatprep.subr.bf16.mxu0 %v7759_v6  ;;  %v7810_v0 = vld [vmem:[#allocation3 + $0x5f4] ss:$8 sps:$4 sm:$0xff]   ;;  %v7805_v6 = vld [vmem:[#allocation3 + $0x4f0] ss:$8 sps:$4 sm:$0xff]  }
 0x284   :  { %3561 = vmatprep.subr.bf16.mxu1 %v7762_v27  ;;  %v7808_v27 = vld [vmem:[#allocation3 + $0x5f0] ss:$8 sps:$4 sm:$0xff]  }
 0x285   :  { %6732 = vmatmul.mubr.msk.bf16.vlgmr.msra.gmra.mxu0 %vm9624_vm5, %v6731_v50  ;;  %v7813_v50 = vld [vmem:[#allocation3 + $0x4e4] ss:$8 sps:$4 sm:$0xff]  }
 0x286   :  { %6738 = vmatmul.mubr.msk.bf16.vlgmr.msra.gmra.mxu1 %vm9624_vm5, %v6737_v21  ;;  %3509 = vmatpush1.bf16.msra.mxu0 %v7757_v38  ;;  %v7816_v21 = vld [vmem:[#allocation3 + $0x5e4] ss:$8 sps:$4 sm:$0xff]   ;;  %v7811_v38 = vld [vmem:[#allocation3 + $0x4e0] ss:$8 sps:$4 sm:$0xff]  }
 0x287   :  { %3562 = vmatpush1.bf16.msra.mxu1 %v7760_v55  ;;  %3510 = vmatprep.subr.bf16.mxu0 %v7765_v11  ;;  %v7814_v55 = vld [vmem:[#allocation3 + $0x5e0] ss:$8 sps:$4 sm:$0xff]   ;;  %v7819_v11 = vld [vmem:[#allocation3 + $0x4d4] ss:$8 sps:$4 sm:$0xff]  }
 0x288   :  { %3563 = vmatprep.subr.bf16.mxu1 %v7768_v43  ;;  %2675 = vmatprep.mubr.bf16.mxu0 %v1743_v8  ;;  %v7783_v8 = vld [vmem:[#allocation3 + $0x434] ss:$8 sps:$4 sm:$0xff]  }
 0x289   :  { %2728 = vmatprep.mubr.bf16.mxu1 %v1745_v47  ;;  %v7798_v47 = vld [vmem:[#allocation3 + $0x514] ss:$8 sps:$4 sm:$0xff]  }
 0x28a   :  { %3511 = vmatpush1.bf16.msra.mxu0 %v7763_v59  ;;  %v7822_v43 = vld [vmem:[#allocation3 + $0x5d4] ss:$8 sps:$4 sm:$0xff]   ;;  %v7817_v59 = vld [vmem:[#allocation3 + $0x4d0] ss:$8 sps:$4 sm:$0xff]  }
 0x28b   :  { %3564 = vmatpush1.bf16.msra.mxu1 %v7766_v40  ;;  %3512 = vmatprep.subr.bf16.mxu0 %v7771_v7  ;;  %v7820_v40 = vld [vmem:[#allocation3 + $0x5d0] ss:$8 sps:$4 sm:$0xff]   ;;  %v7825_v7 = vld [vmem:[#allocation3 + $0x4c4] ss:$8 sps:$4 sm:$0xff]  }
 0x28c   :  { %3565 = vmatprep.subr.bf16.mxu1 %v7774_v16  ;;  %v7828_v16 = vld [vmem:[#allocation3 + $0x5c4] ss:$8 sps:$4 sm:$0xff]  }
 0x28d   :  { %2676 = vmatmul.mubr.bf16.gmra.mxu0 %v1742_v26  ;;  %v7792_v26 = vld [vmem:[#allocation3 + $0x524] ss:$8 sps:$4 sm:$0xff]  }
 0x28e   :  { %2729 = vmatmul.mubr.bf16.gmra.mxu1 %v1744_v63  ;;  %3513 = vmatpush1.bf16.msra.mxu0 %v7769_v10  ;;  %v7795_v63 = vld [vmem:[#allocation3 + $0x414] ss:$8 sps:$4 sm:$0xff]   ;;  %v7823_v10 = vld [vmem:[#allocation3 + $0x4c0] ss:$8 sps:$4 sm:$0xff]  }
 0x28f   :  { %3566 = vmatpush1.bf16.msra.mxu1 %v7772_v12  ;;  %3514 = vmatprep.subr.bf16.mxu0 %v7777_v60  ;;  %v7826_v12 = vld [vmem:[#allocation3 + $0x5c0] ss:$8 sps:$4 sm:$0xff]   ;;  %v7831_v60 = vld [vmem:[#allocation3 + $0x4b4] ss:$8 sps:$4 sm:$0xff]  }
 0x290   :  { %3567 = vmatprep.subr.bf16.mxu1 %v7780_v53  ;;  %3540 = vmatprep.mubr.bf16.mxu0 %v9510_v57  ;;  %v7796_v57 = vld [vmem:[#allocation3 + $0x510] ss:$8 sps:$4 sm:$0xff]   ;;  %v7834_v53 = vld [vmem:[#allocation3 + $0x5b4] ss:$8 sps:$4 sm:$0xff]  }
 0x291   :  { %3593 = vmatprep.mubr.bf16.mxu1 %v9601_v34  ;;  %v7801_v34 = vld [vmem:[#allocation3 + $0x404] ss:$8 sps:$4 sm:$0xff]  }
 0x292   :  { %3515 = vmatpush1.bf16.msra.mxu0 %v7775_v31  ;;  %v7829_v31 = vld [vmem:[#allocation3 + $0x4b0] ss:$8 sps:$4 sm:$0xff]  }
 0x293   :  { %3568 = vmatpush1.bf16.msra.mxu1 %v7778_v41  ;;  %3516 = vmatprep.subr.bf16.mxu0 %v7783_v8  ;;  %v7832_v41 = vld [vmem:[#allocation3 + $0x5b0] ss:$8 sps:$4 sm:$0xff]   ;;  %v7837_v8 = vld [vmem:[#allocation3 + $0x4a4] ss:$8 sps:$4 sm:$0xff]  }
 0x294   :  { %3569 = vmatprep.subr.bf16.mxu1 %v7786_v14  ;;  %v7840_v14 = vld [vmem:[#allocation3 + $0x5a4] ss:$8 sps:$4 sm:$0xff]  }
 0x296   :  { %3517 = vmatpush1.bf16.msra.mxu0 %v7781_v29  ;;  %v7835_v29 = vld [vmem:[#allocation3 + $0x4a0] ss:$8 sps:$4 sm:$0xff]  }
 0x297   :  { %3570 = vmatpush1.bf16.msra.mxu1 %v7784_v23  ;;  %3518 = vmatprep.subr.bf16.mxu0 %v7789_v30  ;;  %v7838_v23 = vld [vmem:[#allocation3 + $0x5a0] ss:$8 sps:$4 sm:$0xff]   ;;  %v7843_v30 = vld [vmem:[#allocation3 + $0x494] ss:$8 sps:$4 sm:$0xff]  }
 0x298   :  { %3571 = vmatprep.subr.bf16.mxu1 %v7792_v26  ;;  %v7846_v26 = vld [vmem:[#allocation3 + $0x594] ss:$8 sps:$4 sm:$0xff]  }
 0x29a   :  { %3519 = vmatpush1.bf16.msra.mxu0 %v7787_v4  ;;  %v7841_v4 = vld [vmem:[#allocation3 + $0x490] ss:$8 sps:$4 sm:$0xff]  }
 0x29b   :  { %3572 = vmatpush1.bf16.msra.mxu1 %v7790_v3  ;;  %3520 = vmatprep.subr.bf16.mxu0 %v7795_v63  ;;  %v7844_v3 = vld [vmem:[#allocation3 + $0x590] ss:$8 sps:$4 sm:$0xff]   ;;  %v7849_v63 = vld [vmem:[#allocation3 + $0x484] ss:$8 sps:$4 sm:$0xff]  }
 0x29c   :  { %3573 = vmatprep.subr.bf16.mxu1 %v7798_v47  ;;  %v7852_v47 = vld [vmem:[#allocation3 + $0x584] ss:$8 sps:$4 sm:$0xff]  }
 0x29e   :  { %3521 = vmatpush1.bf16.msra.mxu0 %v7793_v46  ;;  %v7847_v46 = vld [vmem:[#allocation3 + $0x480] ss:$8 sps:$4 sm:$0xff]  }
 0x29f   :  { %3574 = vmatpush1.bf16.msra.mxu1 %v7796_v57  ;;  %3522 = vmatprep.subr.bf16.mxu0 %v7801_v34  ;;  %v7850_v57 = vld [vmem:[#allocation3 + $0x580] ss:$8 sps:$4 sm:$0xff]   ;;  %v7855_v34 = vld [vmem:[#allocation3 + $0x674] ss:$8 sps:$4 sm:$0xff]  }
 0x2a0   :  { %3575 = vmatprep.subr.bf16.mxu1 %v7804_v5  ;;  %v7858_v5 = vld [vmem:[#allocation3 + $0x774] ss:$8 sps:$4 sm:$0xff]  }
 0x2a2   :  { %3523 = vmatpush1.bf16.msra.mxu0 %v7799_v54  ;;  %v7853_v54 = vld [vmem:[#allocation3 + $0x670] ss:$8 sps:$4 sm:$0xff]  }
 0x2a3   :  { %3576 = vmatpush1.bf16.msra.mxu1 %v7802_v28  ;;  %3524 = vmatprep.subr.bf16.mxu0 %v7807_v45  ;;  %v7856_v28 = vld [vmem:[#allocation3 + $0x770] ss:$8 sps:$4 sm:$0xff]   ;;  %v7861_v45 = vld [vmem:[#allocation3 + $0x664] ss:$8 sps:$4 sm:$0xff]  }
 0x2a4   :  { %3577 = vmatprep.subr.bf16.mxu1 %v7810_v0  ;;  %v7864_v0 = vld [vmem:[#allocation3 + $0x764] ss:$8 sps:$4 sm:$0xff]  }
 0x2a6   :  { %3525 = vmatpush2.bf16.msra.mxu0 %v7805_v6  ;;  %v7859_v6 = vld [vmem:[#allocation3 + $0x660] ss:$8 sps:$4 sm:$0xff]  }
 0x2a7   :  { %3578 = vmatpush2.bf16.msra.mxu1 %v7808_v27  ;;  %3526 = vmatprep.subr.bf16.mxu0 %v7813_v50  ;;  %v7862_v27 = vld [vmem:[#allocation3 + $0x760] ss:$8 sps:$4 sm:$0xff]   ;;  %v7867_v50 = vld [vmem:[#allocation3 + $0x654] ss:$8 sps:$4 sm:$0xff]  }
 0x2a8   :  { %3579 = vmatprep.subr.bf16.mxu1 %v7816_v21  ;;  %v7870_v21 = vld [vmem:[#allocation3 + $0x754] ss:$8 sps:$4 sm:$0xff]  }
 0x2aa   :  { %3527 = vmatpush2.bf16.msra.mxu0 %v7811_v38  ;;  %v7865_v38 = vld [vmem:[#allocation3 + $0x650] ss:$8 sps:$4 sm:$0xff]  }
 0x2ab   :  { %3580 = vmatpush2.bf16.msra.mxu1 %v7814_v55  ;;  %3528 = vmatprep.subr.bf16.mxu0 %v7819_v11  ;;  %v7868_v55 = vld [vmem:[#allocation3 + $0x750] ss:$8 sps:$4 sm:$0xff]   ;;  %v7871_v11 = vld [vmem:[#allocation3 + $0x640] ss:$8 sps:$4 sm:$0xff]  }
 0x2ac   :  { %3581 = vmatprep.subr.bf16.mxu1 %v7822_v43  ;;  %v7874_v43 = vld [vmem:[#allocation3 + $0x740] ss:$8 sps:$4 sm:$0xff]  }
 0x2ae   :  { %3529 = vmatpush2.bf16.msra.mxu0 %v7817_v59  ;;  %v11082_v59 = vpack.c.bf16 %v9591_v61, %v9595_v20  ;;  %v7892_v61 = vld [vmem:[#allocation3 + $0x710] ss:$8 sps:$4 sm:$0xff]   ;;  %v7897_v20 = vld [vmem:[#allocation3 + $0x604] ss:$8 sps:$4 sm:$0xff]  }
 0x2af   :  { %3582 = vmatpush2.bf16.msra.mxu1 %v7820_v40  ;;  %3530 = vmatprep.subr.bf16.mxu0 %v7825_v7  ;;  %v7885_v40 = vld [vmem:[#allocation3 + $0x624] ss:$8 sps:$4 sm:$0xff]  }
 0x2b0   :  { %3583 = vmatprep.subr.bf16.mxu1 %v7828_v16  ;;  %v7888_v7 = vld [vmem:[#allocation3 + $0x724] ss:$8 sps:$4 sm:$0xff]   ;;  %v7883_v16 = vld [vmem:[#allocation3 + $0x620] ss:$8 sps:$4 sm:$0xff]  }
 0x2b2   :  { %3531 = vmatpush2.bf16.msra.mxu0 %v7823_v10  ;;  %v7886_v10 = vld [vmem:[#allocation3 + $0x720] ss:$8 sps:$4 sm:$0xff]  }
 0x2b3   :  { %3584 = vmatpush2.bf16.msra.mxu1 %v7826_v12  ;;  %3532 = vmatprep.subr.bf16.mxu0 %v7831_v60  ;;  %v7900_v12 = vld [vmem:[#allocation3 + $0x704] ss:$8 sps:$4 sm:$0xff]   ;;  %v7895_v60 = vld [vmem:[#allocation3 + $0x600] ss:$8 sps:$4 sm:$0xff]  }
 0x2b4   :  { %3585 = vmatprep.subr.bf16.mxu1 %v7834_v53  ;;  %v7898_v53 = vld [vmem:[#allocation3 + $0x700] ss:$8 sps:$4 sm:$0xff]  }
 0x2b6   :  { %3533 = vmatpush2.bf16.msra.mxu0 %v7829_v31  ;;  %v7903_v31 = vld [vmem:[#allocation3 + $0x6f4] ss:$8 sps:$4 sm:$0xff]  }
 0x2b7   :  { %3586 = vmatpush2.bf16.msra.mxu1 %v7832_v41  ;;  %3534 = vmatprep.subr.bf16.mxu0 %v7837_v8  ;;  %v7906_v41 = vld [vmem:[#allocation3 + $0x7f4] ss:$8 sps:$4 sm:$0xff]   ;;  %v7901_v8 = vld [vmem:[#allocation3 + $0x6f0] ss:$8 sps:$4 sm:$0xff]  }
 0x2b8   :  { %3587 = vmatprep.subr.bf16.mxu1 %v7840_v14  ;;  %v7904_v14 = vld [vmem:[#allocation3 + $0x7f0] ss:$8 sps:$4 sm:$0xff]  }
 0x2ba   :  { %3535 = vmatpush2.bf16.msra.mxu0 %v7835_v29  ;;  %v7909_v29 = vld [vmem:[#allocation3 + $0x6e4] ss:$8 sps:$4 sm:$0xff]  }
 0x2bb   :  { %3588 = vmatpush2.bf16.msra.mxu1 %v7838_v23  ;;  %3536 = vmatprep.subr.bf16.mxu0 %v7843_v30  ;;  %v7912_v23 = vld [vmem:[#allocation3 + $0x7e4] ss:$8 sps:$4 sm:$0xff]   ;;  %v7907_v30 = vld [vmem:[#allocation3 + $0x6e0] ss:$8 sps:$4 sm:$0xff]  }
 0x2bc   :  { %3589 = vmatprep.subr.bf16.mxu1 %v7846_v26  ;;  %v7910_v26 = vld [vmem:[#allocation3 + $0x7e0] ss:$8 sps:$4 sm:$0xff]  }
 0x2be   :  { %3537 = vmatpush2.bf16.msra.mxu0 %v7841_v4  ;;  %v7915_v4 = vld [vmem:[#allocation3 + $0x6d4] ss:$8 sps:$4 sm:$0xff]  }
 0x2bf   :  { %3590 = vmatpush2.bf16.msra.mxu1 %v7844_v3  ;;  %3538 = vmatprep.subr.bf16.mxu0 %v7849_v63  ;;  %v7918_v3 = vld [vmem:[#allocation3 + $0x7d4] ss:$8 sps:$4 sm:$0xff]   ;;  %v7913_v63 = vld [vmem:[#allocation3 + $0x6d0] ss:$8 sps:$4 sm:$0xff]  }
 0x2c0   :  { %3591 = vmatprep.subr.bf16.mxu1 %v7852_v47  ;;  %v7916_v47 = vld [vmem:[#allocation3 + $0x7d0] ss:$8 sps:$4 sm:$0xff]  }
 0x2c2   :  { %3539 = vmatpush2.bf16.msra.mxu0 %v7847_v46  ;;  %v7921_v46 = vld [vmem:[#allocation3 + $0x6c4] ss:$8 sps:$4 sm:$0xff]  }
 0x2c3   :  { %3592 = vmatpush2.bf16.msra.mxu1 %v7850_v57  ;;  %3614 = vmatprep.subr.bf16.mxu0 %v7855_v34  ;;  %v7924_v57 = vld [vmem:[#allocation3 + $0x7c4] ss:$8 sps:$4 sm:$0xff]   ;;  %v7919_v34 = vld [vmem:[#allocation3 + $0x6c0] ss:$8 sps:$4 sm:$0xff]  }
 0x2c4   :  { %3667 = vmatprep.subr.bf16.mxu1 %v7858_v5  ;;  %v7922_v5 = vld [vmem:[#allocation3 + $0x7c0] ss:$8 sps:$4 sm:$0xff]  }
 0x2c5   :  { %3541 = vmatmul.mubr.bf16.vlgmr.msra.gmra.mxu0 %v9468_v36  ;;  %v7873_v36 = vld [vmem:[#allocation3 + $0x644] ss:$8 sps:$4 sm:$0xff]  }
 0x2c6   :  { %3594 = vmatmul.mubr.bf16.vlgmr.msra.gmra.mxu1 %v9561_v35  ;;  %3615 = vmatpush1.bf16.msra.mxu0 %v7853_v54  ;;  %v7876_v35 = vld [vmem:[#allocation3 + $0x744] ss:$8 sps:$4 sm:$0xff]   ;;  %v7927_v54 = vld [vmem:[#allocation3 + $0x6b4] ss:$8 sps:$4 sm:$0xff]  }
 0x2c7   :  { %3668 = vmatpush1.bf16.msra.mxu1 %v7856_v28  ;;  %3616 = vmatprep.subr.bf16.mxu0 %v7861_v45  ;;  %v7930_v28 = vld [vmem:[#allocation3 + $0x7b4] ss:$8 sps:$4 sm:$0xff]   ;;  %v7925_v45 = vld [vmem:[#allocation3 + $0x6b0] ss:$8 sps:$4 sm:$0xff]  }
 0x2c8   :  { %3669 = vmatprep.subr.bf16.mxu1 %v7864_v0  ;;  %3550 = vmatprep.mubr.bf16.mxu0 %v9512_v56  ;;  %v7879_v56 = vld [vmem:[#allocation3 + $0x634] ss:$8 sps:$4 sm:$0xff]   ;;  %v7928_v0 = vld [vmem:[#allocation3 + $0x7b0] ss:$8 sps:$4 sm:$0xff]  }
 0x2c9   :  { %3603 = vmatprep.mubr.bf16.mxu1 %v9603_v22  ;;  %v7882_v22 = vld [vmem:[#allocation3 + $0x734] ss:$8 sps:$4 sm:$0xff]  }
 0x2ca   :  { %3617 = vmatpush1.bf16.msra.mxu0 %v7859_v6  ;;  %v7933_v6 = vld [vmem:[#allocation3 + $0x6a4] ss:$8 sps:$4 sm:$0xff]  }
 0x2cb   :  { %3670 = vmatpush1.bf16.msra.mxu1 %v7862_v27  ;;  %3618 = vmatprep.subr.bf16.mxu0 %v7867_v50  ;;  %v7936_v27 = vld [vmem:[#allocation3 + $0x7a4] ss:$8 sps:$4 sm:$0xff]   ;;  %v7931_v50 = vld [vmem:[#allocation3 + $0x6a0] ss:$8 sps:$4 sm:$0xff]  }
 0x2cc   :  { %3671 = vmatprep.subr.bf16.mxu1 %v7870_v21  ;;  %v7934_v21 = vld [vmem:[#allocation3 + $0x7a0] ss:$8 sps:$4 sm:$0xff]  }
 0x2cd   :  { %3551 = vmatmul.mubr.bf16.gmra.mxu0 %v9470_v39  ;;  %v7877_v39 = vld [vmem:[#allocation3 + $0x630] ss:$8 sps:$4 sm:$0xff]  }
 0x2ce   :  { %3604 = vmatmul.mubr.bf16.gmra.mxu1 %v9563_v2  ;;  %3619 = vmatpush1.bf16.msra.mxu0 %v7865_v38  ;;  %v7880_v2 = vld [vmem:[#allocation3 + $0x730] ss:$8 sps:$4 sm:$0xff]   ;;  %v7939_v38 = vld [vmem:[#allocation3 + $0x694] ss:$8 sps:$4 sm:$0xff]  }
 0x2cf   :  { %3672 = vmatpush1.bf16.msra.mxu1 %v7868_v55  ;;  %3620 = vmatprep.subr.bf16.mxu0 %v7873_v36  ;;  %v7942_v55 = vld [vmem:[#allocation3 + $0x794] ss:$8 sps:$4 sm:$0xff]   ;;  %v7937_v36 = vld [vmem:[#allocation3 + $0x690] ss:$8 sps:$4 sm:$0xff]  }
 0x2d0   :  { %3673 = vmatprep.subr.bf16.mxu1 %v7876_v35  ;;  %3646 = vmatprep.mubr.bf16.mxu0 %v1747_v58  ;;  %v7889_v58 = vld [vmem:[#allocation3 + $0x610] ss:$8 sps:$4 sm:$0xff]  }
 0x2d1   :  { %3699 = vmatprep.mubr.bf16.mxu1 %v11082_v59  ;;  %v7940_v35 = vld [vmem:[#allocation3 + $0x790] ss:$8 sps:$4 sm:$0xff]   ;;  %v6868_v59 = vpack.c.bf16 %v9508_v15, %v9496_v62  ;;  %v6877_v62 = vpack.c.bf16 %v9559_v18, %v9547_v49 }
 0x2d2   :  { %3621 = vmatpush1.bf16.msra.mxu0 %v7871_v11  ;;  %v7945_v11 = vld [vmem:[#allocation3 + $0x684] ss:$8 sps:$4 sm:$0xff]  }
 0x2d3   :  { %3674 = vmatpush1.bf16.msra.mxu1 %v7874_v43  ;;  %3622 = vmatprep.subr.bf16.mxu0 %v7879_v56  ;;  %v7948_v43 = vld [vmem:[#allocation3 + $0x784] ss:$8 sps:$4 sm:$0xff]   ;;  %v7943_v56 = vld [vmem:[#allocation3 + $0x680] ss:$8 sps:$4 sm:$0xff]  }
 0x2d4   :  { %3675 = vmatprep.subr.bf16.mxu1 %v7882_v22  ;;  %v7946_v22 = vld [vmem:[#allocation3 + $0x780] ss:$8 sps:$4 sm:$0xff]  }
 0x2d6   :  { %3623 = vmatpush1.bf16.msra.mxu0 %v7877_v39  ;;  %v6874_v39 = vpack.c.bf16 %v9599_v24, %v9587_v32 }
 0x2d7   :  { %3676 = vmatpush1.bf16.msra.mxu1 %v7880_v2  ;;  %3624 = vmatprep.subr.bf16.mxu0 %v7885_v40  ;;  %v11083_v2 = vmov 0  ;;  %v11086_v40 = vpack.c.bf16 %v9458_v42, %v9462_v17 }
 0x2d8   :  { %3677 = vmatprep.subr.bf16.mxu1 %v7888_v7  ;;  %v11084_v2 = vsel %vm9673_vm6, 4294967295, %v11083_v2  ;;  %v11087_v7 = vpack.c.bf16 %v9551_v52, %v9555_v1 }
 0x2d9   :  { %11085 = vst [vmem:[#allocation40_spill] sm:$0xff] %v11084_v2 }
 0x2da   :  { %3625 = vmatpush1.bf16.msra.mxu0 %v7883_v16 }
 0x2db   :  { %3678 = vmatpush1.bf16.msra.mxu1 %v7886_v10  ;;  %3626 = vmatprep.subr.bf16.mxu0 %v7891_v25 }
 0x2dc   :  { %3679 = vmatprep.subr.bf16.mxu1 %v7894_v51 }
 0x2de   :  { %3627 = vmatpush1.bf16.msra.mxu0 %v7889_v58 }
 0x2df   :  { %3680 = vmatpush1.bf16.msra.mxu1 %v7892_v61  ;;  %3628 = vmatprep.subr.bf16.mxu0 %v7897_v20 }
 0x2e0   :  { %3681 = vmatprep.subr.bf16.mxu1 %v7900_v12 }
 0x2e2   :  { %3629 = vmatpush1.bf16.msra.mxu0 %v7895_v60 }
 0x2e3   :  { %3682 = vmatpush1.bf16.msra.mxu1 %v7898_v53  ;;  %3630 = vmatprep.subr.bf16.mxu0 %v7903_v31 }
 0x2e4   :  { %3683 = vmatprep.subr.bf16.mxu1 %v7906_v41 }
 0x2e6   :  { %3631 = vmatpush2.bf16.msra.mxu0 %v7901_v8 }
 0x2e7   :  { %3684 = vmatpush2.bf16.msra.mxu1 %v7904_v14  ;;  %3632 = vmatprep.subr.bf16.mxu0 %v7909_v29 }
 0x2e8   :  { %3685 = vmatprep.subr.bf16.mxu1 %v7912_v23 }
 0x2ea   :  { %3633 = vmatpush2.bf16.msra.mxu0 %v7907_v30 }
 0x2eb   :  { %3686 = vmatpush2.bf16.msra.mxu1 %v7910_v26  ;;  %3634 = vmatprep.subr.bf16.mxu0 %v7915_v4 }
 0x2ec   :  { %3687 = vmatprep.subr.bf16.mxu1 %v7918_v3 }
 0x2ee   :  { %3635 = vmatpush2.bf16.msra.mxu0 %v7913_v63 }
 0x2ef   :  { %3688 = vmatpush2.bf16.msra.mxu1 %v7916_v47  ;;  %3636 = vmatprep.subr.bf16.mxu0 %v7921_v46 }
 0x2f0   :  { %3689 = vmatprep.subr.bf16.mxu1 %v7924_v57 }
 0x2f2   :  { %3637 = vmatpush2.bf16.msra.mxu0 %v7919_v34 }
 0x2f3   :  { %3690 = vmatpush2.bf16.msra.mxu1 %v7922_v5  ;;  %3638 = vmatprep.subr.bf16.mxu0 %v7927_v54 }
 0x2f4   :  { %3691 = vmatprep.subr.bf16.mxu1 %v7930_v28 }
 0x2f6   :  { %3639 = vmatpush2.bf16.msra.mxu0 %v7925_v45 }
 0x2f7   :  { %3692 = vmatpush2.bf16.msra.mxu1 %v7928_v0  ;;  %3640 = vmatprep.subr.bf16.mxu0 %v7933_v6 }
 0x2f8   :  { %3693 = vmatprep.subr.bf16.mxu1 %v7936_v27 }
 0x2fa   :  { %3641 = vmatpush2.bf16.msra.mxu0 %v7931_v50 }
 0x2fb   :  { %3694 = vmatpush2.bf16.msra.mxu1 %v7934_v21  ;;  %3642 = vmatprep.subr.bf16.mxu0 %v7939_v38 }
 0x2fc   :  { %3695 = vmatprep.subr.bf16.mxu1 %v7942_v55 }
 0x2fe   :  { %3643 = vmatpush2.bf16.msra.mxu0 %v7937_v36 }
 0x2ff   :  { %3696 = vmatpush2.bf16.msra.mxu1 %v7940_v35  ;;  %3644 = vmatprep.subr.bf16.mxu0 %v7945_v11 }
 0x300   :  { %3697 = vmatprep.subr.bf16.mxu1 %v7948_v43 }
 0x302   :  { %3645 = vmatpush2.bf16.msra.mxu0 %v7943_v56 }
 0x303   :  { %3698 = vmatpush2.bf16.msra.mxu1 %v7946_v22 }
 0x305   :  { %3647 = vmatmul.mubr.bf16.vlgmr.msra.gmra.mxu0 %v11086_v40  ;;  %v2561_v42 = vpop.f32.mrf.mxu0 }
 0x306   :  { %3700 = vmatmul.mubr.bf16.vlgmr.msra.gmra.mxu1 %v11087_v7  ;;  %6869 = vmatprep.mubr.msk.bf16.mxu0 %vm9673_vm6, %v6868_v59  ;;  %v2614_v17 = vpop.f32.mrf.mxu1 }
 0x307   :  { %6875 = vmatprep.mubr.msk.bf16.mxu1 %vm9673_vm6, %v6874_v39  ;;  %v2563_v15 = vpop.f32.mrf.mxu0  ;;  %v2615_v36 = vadd.f32 %v2614_v17, %v2561_v42 }
 0x308   :  { %v2616_v52 = vpop.f32.mrf.mxu1 }
 0x309   :  { %v2565_v1 = vpop.f32.mrf.mxu0  ;;  %v2617_v56 = vadd.f32 %v2616_v52, %v2563_v15 }
 0x30a   :  { %v2618_v32 = vpop.f32.mrf.mxu1 }
 0x30b   :  { %v2567_v24 = vpop.f32.mrf.mxu0  ;;  %v2619_v21 = vadd.f32 %v2618_v32, %v2565_v1 }
 0x30c   :  { %v2620_v16 = vpop.f32.mrf.mxu1 }
 0x30d   :  { %6872 = vmatmul.mubr.msk.bf16.gmra.mxu0 %vm9673_vm6, %v6871_v37  ;;  %v2571_v10 = vpop.f32.mrf.mxu0  ;;  %v2621_v35 = vadd.f32 %v2620_v16, %v2567_v24 }
 0x30e   :  { %6878 = vmatmul.mubr.msk.bf16.gmra.mxu1 %vm9673_vm6, %v6877_v62  ;;  %v2624_v25 = vpop.f32.mrf.mxu1 }
 0x30f   :  { %v2573_v19 = vpop.f32.mrf.mxu0  ;;  %v2625_v11 = vadd.f32 %v2624_v25, %v2571_v10 }
 0x310   :  { %v2626_v9 = vpop.f32.mrf.mxu1 }
 0x311   :  { %v2575_v51 = vpop.f32.mrf.mxu0  ;;  %v2627_v22 = vadd.f32 %v2626_v9, %v2573_v19 }
 0x312   :  { %v2628_v49 = vpop.f32.mrf.mxu1 }
 0x313   :  { %v2577_v18 = vpop.f32.mrf.mxu0  ;;  %v2629_v59 = vadd.f32 %v2628_v49, %v2575_v51 }
 0x314   :  { %v2630_v58 = vpop.f32.mrf.mxu1 }
 0x315   :  { %v2631_v2 = vadd.f32 %v2630_v58, %v2577_v18 }
 0x345   :  { %v2667_v61 = vpop.f32.mrf.mxu0 }
 0x346   :  { %v2720_v20 = vpop.f32.mrf.mxu1  ;;  %v2668_v39 = vadd.f32 %v2667_v61, %v2615_v36 }
 0x347   :  { %v2669_v12 = vpop.f32.mrf.mxu0 }
 0x348   :  { %v2722_v60 = vpop.f32.mrf.mxu1  ;;  %v2670_v48 = vadd.f32 %v2669_v12, %v2617_v56  ;;  %v9697_v17 = vadd.f32 %v2720_v20, %v2668_v39 }
 0x349   :  { %v2671_v53 = vpop.f32.mrf.mxu0 }
 0x34a   :  { %v2724_v31 = vpop.f32.mrf.mxu1  ;;  %v2672_v43 = vadd.f32 %v2671_v53, %v2619_v21  ;;  %v9703_v51 = vadd.f32 %v2722_v60, %v2670_v48 }
 0x34b   :  { %v2673_v41 = vpop.f32.mrf.mxu0 }
 0x34c   :  { %v2726_v8 = vpop.f32.mrf.mxu1  ;;  %v2674_v40 = vadd.f32 %v2673_v41, %v2621_v35  ;;  %v9695_v33 = vadd.f32 %v2724_v31, %v2672_v43 }
 0x34d   :  { %v2677_v14 = vpop.f32.mrf.mxu0 }
 0x34e   :  { %v2730_v29 = vpop.f32.mrf.mxu1  ;;  %v2678_v7 = vadd.f32 %v2677_v14, %v2625_v11  ;;  %v9699_v24 = vadd.f32 %v2726_v8, %v2674_v40  ;;  %v3722_v49 = vadd.f32 %v9695_v33, %v9697_v17 }
 0x34f   :  { %v2679_v23 = vpop.f32.mrf.mxu0 }
 0x350   :  { %v2732_v30 = vpop.f32.mrf.mxu1  ;;  %v2680_v13 = vadd.f32 %v2679_v23, %v2627_v22  ;;  %v9701_v15 = vadd.f32 %v2730_v29, %v2678_v7 }
 0x351   :  { %v2681_v26 = vpop.f32.mrf.mxu0 }
 0x352   :  { %v2734_v4 = vpop.f32.mrf.mxu1  ;;  %v2682_v1 = vadd.f32 %v2681_v26, %v2629_v59  ;;  %v9707_v18 = vadd.f32 %v2732_v30, %v2680_v13  ;;  %v3723_v41 = vadd.f32 %v3722_v49, %v9701_v15 }
 0x353   :  { %v2683_v3 = vpop.f32.mrf.mxu0 }
 0x354   :  { %v2736_v63 = vpop.f32.mrf.mxu1  ;;  %v2684_v52 = vadd.f32 %v2683_v3, %v2631_v2  ;;  %v9709_v58 = vadd.f32 %v2734_v4, %v2682_v1  ;;  %v3735_v2 = vadd.f32 %v9699_v24, %v9703_v51 }
 0x356   :  { %v9714_v8 = vadd.f32 %v2736_v63, %v2684_v52  ;;  %v3736_v23 = vadd.f32 %v3735_v2, %v9707_v18  ;;  %v3724_v30 = vadd.f32 %v3723_v41, %v9709_v58 }
 0x385   :  { %v3542_v47 = vpop.f32.mrf.mxu0 }
 0x386   :  { %v3595_v46 = vpop.f32.mrf.mxu1 }
 0x387   :  { %v3544_v57 = vpop.f32.mrf.mxu0  ;;  %v3596_v42 = vadd.f32 %v3595_v46, %v3542_v47 }
 0x388   :  { %v3597_v34 = vpop.f32.mrf.mxu1 }
 0x389   :  { %v3546_v5 = vpop.f32.mrf.mxu0  ;;  %v3598_v25 = vadd.f32 %v3597_v34, %v3544_v57  ;;  %v3737_v34 = vadd.f32 %v3736_v23, %v9714_v8 }
 0x38a   :  { %v3599_v54 = vpop.f32.mrf.mxu1 }
 0x38b   :  { %v3548_v28 = vpop.f32.mrf.mxu0  ;;  %v3600_v19 = vadd.f32 %v3599_v54, %v3546_v5 }
 0x38c   :  { %v3601_v45 = vpop.f32.mrf.mxu1 }
 0x38d   :  { %v3552_v0 = vpop.f32.mrf.mxu0  ;;  %v3602_v12 = vadd.f32 %v3601_v45, %v3548_v28 }
 0x38e   :  { %v3605_v6 = vpop.f32.mrf.mxu1 }
 0x38f   :  { %v3554_v27 = vpop.f32.mrf.mxu0  ;;  %v3606_v14 = vadd.f32 %v3605_v6, %v3552_v0 }
 0x390   :  { %v3607_v50 = vpop.f32.mrf.mxu1 }
 0x391   :  { %v3556_v38 = vpop.f32.mrf.mxu0  ;;  %v3608_v3 = vadd.f32 %v3607_v50, %v3554_v27 }
 0x392   :  { %v3609_v55 = vpop.f32.mrf.mxu1 }
 0x393   :  { %v3558_v37 = vpop.f32.mrf.mxu0  ;;  %v3610_v63 = vadd.f32 %v3609_v55, %v3556_v38 }
 0x394   :  { %v3611_v62 = vpop.f32.mrf.mxu1 }
 0x395   :  { %v3612_v6 = vadd.f32 %v3611_v62, %v3558_v37 }
 0x3c5   :  { %v3648_v32 = vpop.f32.mrf.mxu0 }
 0x3c6   :  { %v3701_v44 = vpop.f32.mrf.mxu1  ;;  %v3649_v9 = vadd.f32 %v3648_v32, %v3596_v42 }
 0x3c7   :  { %v3650_v16 = vpop.f32.mrf.mxu0 }
 0x3c8   :  { %v3703_v10 = vpop.f32.mrf.mxu1  ;;  %v3651_v53 = vadd.f32 %v3650_v16, %v3598_v25  ;;  %v3702_v29 = vadd.f32 %v3701_v44, %v3649_v9 }
 0x3c9   :  { %v3652_v61 = vpop.f32.mrf.mxu0 }
 0x3ca   :  { %v3705_v20 = vpop.f32.mrf.mxu1  ;;  %v3653_v31 = vadd.f32 %v3652_v61, %v3600_v19  ;;  %v9718_v47 = vadd.f32 %v3703_v10, %v3651_v53  ;;  %v3725_v28 = vadd.f32 %v3724_v30, %v3702_v29 }
 0x3cb   :  { %v3654_v48 = vpop.f32.mrf.mxu0 }
 0x3cc   :  { %v3707_v60 = vpop.f32.mrf.mxu1  ;;  %v3655_v13 = vadd.f32 %v3654_v48, %v3602_v12  ;;  %v3706_v46 = vadd.f32 %v3705_v20, %v3653_v31  ;;  %v3738_v35 = vadd.f32 %v3737_v34, %v9718_v47 }
 0x3cd   :  { %v3658_v26 = vpop.f32.mrf.mxu0 }
 0x3ce   :  { %v3711_v4 = vpop.f32.mrf.mxu1  ;;  %v3659_v57 = vadd.f32 %v3658_v26, %v3606_v14  ;;  %v9721_v45 = vadd.f32 %v3707_v60, %v3655_v13  ;;  %v3726_v27 = vadd.f32 %v3725_v28, %v3706_v46 }
 0x3cf   :  { %v3660_v5 = vpop.f32.mrf.mxu0 }
 0x3d0   :  { %v3713_v54 = vpop.f32.mrf.mxu1  ;;  %v3712_v44 = vadd.f32 %v3711_v4, %v3659_v57  ;;  %v3661_v0 = vadd.f32 %v3660_v5, %v3608_v3  ;;  %v3739_v56 = vadd.f32 %v3738_v35, %v9721_v45 }
 0x3d1   :  { %v3662_v21 = vpop.f32.mrf.mxu0 }
 0x3d2   :  { %v3715_v36 = vpop.f32.mrf.mxu1  ;;  %v3714_v50 = vadd.f32 %v3713_v54, %v3661_v0  ;;  %v3663_v11 = vadd.f32 %v3662_v21, %v3610_v63  ;;  %v3727_v22 = vadd.f32 %v3726_v27, %v3712_v44 }
 0x3d3   :  { %v3664_v43 = vpop.f32.mrf.mxu0 }
 0x3d4   :  { %v3716_v38 = vadd.f32 %v3715_v36, %v3663_v11  ;;  %v3665_v55 = vadd.f32 %v3664_v43, %v3612_v6  ;;  %v3717_v59 = vpop.f32.mrf.mxu1  ;;  %v3740_v39 = vadd.f32 %v3739_v56, %v3714_v50 }
 0x3d6   :  { %v3728_v40 = vadd.f32 %v3727_v22, %v3716_v38  ;;  %v3718_v7 = vadd.f32 %v3717_v59, %v3665_v55 }
 0x3d8   :  { %v3729_v1 = vrot.slane %v3728_v40, 4  ;;  %v3741_v32 = vadd.f32 %v3740_v39, %v3718_v7 }
 0x3da   :  { %v3730_v37 = vadd.f32 %v3729_v1, %v3728_v40  ;;  %v3742_v62 = vrot.slane %v3741_v32, 4 }
 0x3dc   :  { %v3731_v42 = vrot.slane %v3730_v37, 2  ;;  %v3743_v52 = vadd.f32 %v3742_v62, %v3741_v32 }
 0x3de   :  { %v3732_v16 = vadd.f32 %v3731_v42, %v3730_v37  ;;  %v3744_v10 = vrot.slane %v3743_v52, 2 }
 0x3e0   :  { %v3733_v25 = vrot.slane %v3732_v16, 1  ;;  %v3745_v19 = vadd.f32 %v3744_v10, %v3743_v52 }
 0x3e2   :  { %v3734_v9 = vadd.f32 %v3733_v25, %v3732_v16  ;;  %v3746_v49 = vrot.slane %v3745_v19, 1 }
 0x3e4   :  { %v3748_v61 = vmul.f32 0.015625, %v3734_v9  ;;  %v3747_v31 = vadd.f32 %v3746_v49, %v3745_v19 }
 0x3e6   :  { %v9726_v20 = vsub.f32 %v9697_v17, %v3748_v61  ;;  %v9729_v12 = vsub.f32 %v9695_v33, %v3748_v61  ;;  %v9732_v53 = vsub.f32 %v9701_v15, %v3748_v61  ;;  %v9735_v2 = vsub.f32 %v9709_v58, %v3748_v61 }
 0x3e7   :  { %v9741_v60 = vsub.f32 %v3702_v29, %v3748_v61  ;;  %v3749_v14 = vmul.f32 0.015625, %v3747_v31  ;;  %v9745_v13 = vsub.f32 %v3706_v46, %v3748_v61  ;;  %v3762_v26 = vsub.f32 %v3712_v44, %v3748_v61  ;;  %v3720_v31 = vld [vmem:[%s10841_s3] sm:$0x3] }
 0x3e8   :  { %v3766_v41 = vmul.f32 %v9726_v20, %v9726_v20  ;;  %v3768_v48 = vmul.f32 %v9729_v12, %v9729_v12  ;;  %v3770_v17 = vmul.f32 %v9732_v53, %v9732_v53  ;;  %v3772_v15 = vmul.f32 %v9735_v2, %v9735_v2 }
 0x3e9   :  { %v9750_v23 = vsub.f32 %v9703_v51, %v3749_v14  ;;  %v9753_v30 = vsub.f32 %v9699_v24, %v3749_v14  ;;  %v9756_v29 = vsub.f32 %v9707_v18, %v3749_v14  ;;  %v3774_v4 = vmul.f32 %v9741_v60, %v9741_v60 }
 0x3ea   :  { %v3782_v33 = vadd.f32 %v3768_v48, %v3766_v41  ;;  %v9761_v46 = vsub.f32 %v9714_v8, %v3749_v14  ;;  %v3764_v34 = vsub.f32 %v3716_v38, %v3748_v61  ;;  %v3776_v24 = vmul.f32 %v9745_v13, %v9745_v13  ;;  %v3721_v41 = vld [vmem:[%s10842_s4] sm:$0x3]  ;;  %v11088_v48 = vld [vmem:[#allocation81_spill] sm:$0xff] }
 0x3eb   :  { %v3767_v57 = vmul.f32 %v9750_v23, %v9750_v23  ;;  %v3769_v51 = vmul.f32 %v9753_v30, %v9753_v30  ;;  %v9770_v63 = vsub.f32 %v9718_v47, %v3749_v14  ;;  %v3771_v5 = vmul.f32 %v9756_v29, %v9756_v29 }
 0x3ec   :  { %v3783_v58 = vadd.f32 %v3782_v33, %v3770_v17  ;;  %v3778_v8 = vmul.f32 %v3762_v26, %v3762_v26  ;;  %v9775_v44 = vsub.f32 %v9721_v45, %v3749_v14  ;;  %v3773_v0 = vmul.f32 %v9761_v46, %v9761_v46 }
 0x3ed   :  { %v3795_v54 = vadd.f32 %v3769_v51, %v3767_v57  ;;  %v3780_v21 = vmul.f32 %v3764_v34, %v3764_v34  ;;  %v9779_v35 = vsub.f32 %v3714_v50, %v3749_v14  ;;  %v3775_v47 = vmul.f32 %v9770_v63, %v9770_v63 }
 0x3ee   :  { %v3784_v3 = vadd.f32 %v3783_v58, %v3772_v15  ;;  %v9783_v43 = vsub.f32 %v3718_v7, %v3749_v14  ;;  %v3777_v56 = vmul.f32 %v9775_v44, %v9775_v44  ;;  %v3834_v17 = vrot.slane %v3720_v31, %v11088_v48  ;;  %v11089_v15 = vld [vmem:[#allocation79_spill] sm:$0xff] }
 0x3ef   :  { %v3796_v6 = vadd.f32 %v3795_v54, %v3771_v5  ;;  %v3779_v38 = vmul.f32 %v9779_v35, %v9779_v35  ;;  %v3861_v14 = vrot.slane %v3721_v41, %v11088_v48  ;;  %v9800_v58 = vrot.slane %v3720_v31, %v11089_v15 }
 0x3f0   :  { %v3785_v18 = vadd.f32 %v3784_v3, %v3774_v4  ;;  %v3781_v50 = vmul.f32 %v9783_v43, %v9783_v43  ;;  %v9803_v4 = vrot.slane %v3721_v41, %v11089_v15 }
 0x3f1   :  { %v3797_v27 = vadd.f32 %v3796_v6, %v3773_v0 }
 0x3f2   :  { %v3786_v28 = vadd.f32 %v3785_v18, %v3776_v24 }
 0x3f3   :  { %v3798_v45 = vadd.f32 %v3797_v27, %v3775_v47 }
 0x3f4   :  { %v3787_v36 = vadd.f32 %v3786_v28, %v3778_v8 }
 0x3f5   :  { %v3799_v55 = vadd.f32 %v3798_v45, %v3777_v56 }
 0x3f6   :  { %v3788_v11 = vadd.f32 %v3787_v36, %v3780_v21 }
 0x3f7   :  { %v3800_v39 = vadd.f32 %v3799_v55, %v3779_v38 }
 0x3f8   :  { %v3789_v22 = vrot.slane %v3788_v11, 4 }
 0x3f9   :  { %v3801_v1 = vadd.f32 %v3800_v39, %v3781_v50 }
 0x3fa   :  { %v3790_v59 = vadd.f32 %v3789_v22, %v3788_v11 }
 0x3fb   :  { %v3802_v37 = vrot.slane %v3801_v1, 4 }
 0x3fc   :  { %v3791_v40 = vrot.slane %v3790_v59, 2 }
 0x3fd   :  { %v3803_v62 = vadd.f32 %v3802_v37, %v3801_v1 }
 0x3fe   :  { %v3792_v32 = vadd.f32 %v3791_v40, %v3790_v59 }
 0x3ff   :  { %v3804_v52 = vrot.slane %v3803_v62, 2 }
 0x400   :  { %v3793_v7 = vrot.slane %v3792_v32, 1 }
 0x401   :  { %v3805_v10 = vadd.f32 %v3804_v52, %v3803_v62 }
 0x402   :  { %v3794_v42 = vadd.f32 %v3793_v7, %v3792_v32 }
 0x403   :  { %v3806_v19 = vrot.slane %v3805_v10, 1 }
 0x404   :  { %v3808_v16 = vmul.f32 0.015625, %v3794_v42 }
 0x405   :  { %v3807_v9 = vadd.f32 %v3806_v19, %v3805_v10 }
 0x406   :  { %v3810_v25 = vadd.f32 1e-05, %v3808_v16 }
 0x407   :  { %v3809_v49 = vmul.f32 0.015625, %v3807_v9 }
 0x408   :  { %7949 = vrsqrt.f32 %v3810_v25 }
 0x409   :  { %v3811_v61 = vadd.f32 1e-05, %v3809_v49 }
 0x40b   :  { %7951 = vrsqrt.f32 %v3811_v61 }
 0x415   :  { %v7950_v33 = vpop.eup %7949 }
 0x416   :  { %v3814_v3 = vmul.f32 %v7950_v33, %v9726_v20  ;;  %v3816_v57 = vmul.f32 %v7950_v33, %v9729_v12  ;;  %v3818_v51 = vmul.f32 %v7950_v33, %v9732_v53  ;;  %v3820_v24 = vmul.f32 %v7950_v33, %v9735_v2 }
 0x417   :  { %v3822_v18 = vmul.f32 %v7950_v33, %v9741_v60  ;;  %v3824_v5 = vmul.f32 %v7950_v33, %v9745_v13  ;;  %v3826_v54 = vmul.f32 %v7950_v33, %v3762_v26  ;;  %v3828_v8 = vmul.f32 %v7950_v33, %v3764_v34 }
 0x418   :  { %v3841_v28 = vmul.f32 %v3834_v17, %v3814_v3  ;;  %v3843_v0 = vmul.f32 %v3834_v17, %v3816_v57  ;;  %v3845_v6 = vmul.f32 %v3834_v17, %v3818_v51  ;;  %v3847_v21 = vmul.f32 %v3834_v17, %v3820_v24  ;;  %v7952_v16 = vpop.eup %7951 }
 0x419   :  { %v3849_v36 = vmul.f32 %v3834_v17, %v3822_v18  ;;  %v3851_v47 = vmul.f32 %v3834_v17, %v3824_v5  ;;  %v3853_v27 = vmul.f32 %v3834_v17, %v3826_v54  ;;  %v3855_v20 = vmul.f32 %v3834_v17, %v3828_v8 }
 0x41a   :  { %v3868_v11 = vadd.f32 %v3861_v14, %v3841_v28  ;;  %v3870_v12 = vadd.f32 %v3861_v14, %v3843_v0  ;;  %v3872_v56 = vadd.f32 %v3861_v14, %v3845_v6  ;;  %v3874_v53 = vadd.f32 %v3861_v14, %v3847_v21 }
 0x41b   :  { %v3876_v45 = vadd.f32 %v3861_v14, %v3849_v36  ;;  %v3878_v2 = vadd.f32 %v3861_v14, %v3851_v47  ;;  %v3880_v22 = vadd.f32 %v3861_v14, %v3853_v27  ;;  %v3882_v60 = vadd.f32 %v3861_v14, %v3855_v20 }
 0x41c   :  { %v3884_v38 = vmax.f32 %v3868_v11, 0.0  ;;  %v3886_v13 = vmax.f32 %v3870_v12, 0.0  ;;  %v3888_v26 = vmax.f32 %v3872_v56, 0.0  ;;  %v3890_v34 = vmax.f32 %v3874_v53, 0.0 }
 0x41d   :  { %v3892_v55 = vmax.f32 %v3876_v45, 0.0  ;;  %v3894_v59 = vmax.f32 %v3878_v2, 0.0  ;;  %v3896_v50 = vmax.f32 %v3880_v22, 0.0  ;;  %v3898_v39 = vmax.f32 %v3882_v60, 0.0 }
 0x41e   :  { %v3924_v40 = vrot.slane %v3884_v38, 2  ;;  %v3926_v1 = vrot.slane %v3886_v13, 2  ;;  %v3928_v32 = vrot.slane %v3888_v26, 2  ;;  %v3930_v37 = vrot.slane %v3890_v34, 2 }
 0x41f   :  { %v3900_v7 = vrot.slane %v3892_v55, 6  ;;  %v3902_v62 = vrot.slane %v3894_v59, 6  ;;  %v3904_v42 = vrot.slane %v3896_v50, 6  ;;  %v3906_v52 = vrot.slane %v3898_v39, 6 }
 0x420   :  { %v9813_v25 = vsel %vm1693_vm3, %v3928_v32, %v3930_v37  ;;  %v9817_v19 = vsel %vm1693_vm3, %v3926_v1, %v3928_v32  ;;  %v9821_v9 = vsel %vm1693_vm3, %v3924_v40, %v3926_v1  ;;  %v9825_v49 = vsel %vm1693_vm3, %v3930_v37, %v3924_v40 }
 0x421   :  { %v9829_v61 = vsel %vm1637_vm2, %v3904_v42, %v3906_v52  ;;  %v9833_v31 = vsel %vm1637_vm2, %v3902_v62, %v3904_v42  ;;  %v9837_v41 = vsel %vm1637_vm2, %v3900_v7, %v3902_v62  ;;  %v9841_v48 = vsel %vm1637_vm2, %v3906_v52, %v3900_v7 }
 0x422   :  { %v9843_v17 = vpack.c.bf16 %v3886_v13, %v3884_v38  ;;  %v9845_v33 = vpack.c.bf16 %v3890_v34, %v3888_v26  ;;  %v9847_v14 = vpack.c.bf16 %v3894_v59, %v3892_v55  ;;  %v9849_v15 = vpack.c.bf16 %v3898_v39, %v3896_v50 }
 0x423   :  { %v3958_v3 = vpack.c.bf16 %v9829_v61, %v9833_v31  ;;  %v3960_v57 = vpack.c.bf16 %v9817_v19, %v9821_v9  ;;  %v3815_v51 = vmul.f32 %v7952_v16, %v9750_v23  ;;  %v3817_v24 = vmul.f32 %v7952_v16, %v9753_v30 }
 0x424   :  { %v3819_v18 = vmul.f32 %v7952_v16, %v9756_v29  ;;  %v3821_v5 = vmul.f32 %v7952_v16, %v9761_v46  ;;  %v3823_v54 = vmul.f32 %v7952_v16, %v9770_v63  ;;  %v3825_v8 = vmul.f32 %v7952_v16, %v9775_v44 }
 0x425   :  { %v3827_v28 = vmul.f32 %v7952_v16, %v9779_v35  ;;  %v3829_v0 = vmul.f32 %v7952_v16, %v9783_v43  ;;  %v3842_v6 = vmul.f32 %v9800_v58, %v3815_v51  ;;  %v3844_v21 = vmul.f32 %v9800_v58, %v3817_v24 }
 0x426   :  { %v3846_v23 = vmul.f32 %v9800_v58, %v3819_v18  ;;  %v3848_v30 = vmul.f32 %v9800_v58, %v3821_v5  ;;  %v3850_v29 = vmul.f32 %v9800_v58, %v3823_v54  ;;  %v3852_v46 = vmul.f32 %v9800_v58, %v3825_v8 }
 0x427   :  { %v3854_v63 = vmul.f32 %v9800_v58, %v3827_v28  ;;  %v3856_v44 = vmul.f32 %v9800_v58, %v3829_v0  ;;  %v3869_v35 = vadd.f32 %v9803_v4, %v3842_v6  ;;  %v3871_v43 = vadd.f32 %v9803_v4, %v3844_v21 }
 0x428   :  { %v3873_v36 = vadd.f32 %v9803_v4, %v3846_v23  ;;  %v3875_v47 = vadd.f32 %v9803_v4, %v3848_v30  ;;  %v3877_v27 = vadd.f32 %v9803_v4, %v3850_v29  ;;  %v3879_v20 = vadd.f32 %v9803_v4, %v3852_v46 }
 0x429   :  { %v3881_v11 = vadd.f32 %v9803_v4, %v3854_v63  ;;  %v3883_v12 = vadd.f32 %v9803_v4, %v3856_v44  ;;  %v3885_v56 = vmax.f32 %v3869_v35, 0.0  ;;  %v3887_v53 = vmax.f32 %v3871_v43, 0.0 }
 0x42a   :  { %v3889_v45 = vmax.f32 %v3873_v36, 0.0  ;;  %v3891_v58 = vmax.f32 %v3875_v47, 0.0  ;;  %v3893_v2 = vmax.f32 %v3877_v27, 0.0  ;;  %v3895_v22 = vmax.f32 %v3879_v20, 0.0 }
 0x42b   :  { %v3897_v60 = vmax.f32 %v3881_v11, 0.0  ;;  %v3899_v38 = vmax.f32 %v3883_v12, 0.0  ;;  %v3925_v13 = vrot.slane %v3885_v56, 2  ;;  %v3927_v26 = vrot.slane %v3887_v53, 2 }
 0x42c   :  { %v3901_v34 = vrot.slane %v3893_v2, 6  ;;  %v3903_v55 = vrot.slane %v3895_v22, 6  ;;  %v3929_v59 = vrot.slane %v3889_v45, 2  ;;  %v3931_v50 = vrot.slane %v3891_v58, 2 }
 0x42d   :  { %v3905_v39 = vrot.slane %v3897_v60, 6  ;;  %v3907_v40 = vrot.slane %v3899_v38, 6  ;;  %v9881_v1 = vsel %vm1693_vm3, %v3925_v13, %v3927_v26  ;;  %v9883_v4 = vpack.c.bf16 %v3887_v53, %v3885_v56 }
 0x42e   :  { %v3913_v32 = vsel %vm1637_vm2, %v3901_v34, %v3903_v55  ;;  %v9889_v37 = vsel %vm1693_vm3, %v3929_v59, %v3931_v50  ;;  %v9893_v7 = vsel %vm1693_vm3, %v3927_v26, %v3929_v59  ;;  %v9897_v62 = vsel %vm1693_vm3, %v3931_v50, %v3925_v13 }
 0x42f   :  { %v9901_v42 = vsel %vm1637_vm2, %v3905_v39, %v3907_v40  ;;  %v9905_v52 = vsel %vm1637_vm2, %v3903_v55, %v3905_v39  ;;  %v3915_v16 = vsel %vm1637_vm2, %v3907_v40, %v3901_v34  ;;  %v9909_v51 = vpack.c.bf16 %v3891_v58, %v3889_v45 }
 0x430   :  { %v9911_v24 = vpack.c.bf16 %v3895_v22, %v3893_v2  ;;  %v9913_v18 = vpack.c.bf16 %v3899_v38, %v3897_v60  ;;  %v3959_v5 = vpack.c.bf16 %v9901_v42, %v9905_v52  ;;  %v3961_v54 = vpack.c.bf16 %v9893_v7, %v9881_v1 }
 0x431   :  { %8297 = dma.done.wait [#allocation7 + $0x2], 8192 }
 0x432   :  { %8298 = vsyncadd [#allocation7 + $0x2], 4294959104  ;;  %4256 = vmatprep.mubr.bf16.mxu0 %v9883_v4  ;;  %v6912_v8 = vpack.c.bf16 %v3913_v32, %v3915_v16  ;;  %v7953_v0 = vld [vmem:[#allocation4 + $0x78] sm:$0xff]   ;;  %v7957_v30 = vld [vmem:[#allocation4 + $0x70] sm:$0xff]   ;;  %v6915_v40 = vpack.c.bf16 %v9837_v41, %v9841_v48 }
 0x433   :  { %v7954_v6 = vld [vmem:[#allocation4 + $0xf8] sm:$0xff]   ;;  %7040 = vmatprep.subr.bf16.mxu0 %v7953_v0  ;;  %v7958_v29 = vld [vmem:[#allocation4 + $0xf0] sm:$0xff]   ;;  %v7961_v44 = vld [vmem:[#allocation4 + $0x68] sm:$0xff]  }
 0x434   :  { %6913 = vmatprep.mubr.msk.bf16.mxu1 %vm9624_vm5, %v6912_v8  ;;  %v7955_v21 = vld [vmem:[#allocation4 + $0x38] sm:$0xff]   ;;  %7080 = vmatprep.subr.bf16.mxu1 %v7954_v6  ;;  %v7959_v46 = vld [vmem:[#allocation4 + $0x30] sm:$0xff]   ;;  %v7962_v35 = vld [vmem:[#allocation4 + $0xe8] sm:$0xff]  }
 0x435   :  { %v7956_v23 = vld [vmem:[#allocation4 + $0xb8] sm:$0xff]   ;;  %7041 = vmatpush3.bf16.msra.mxu0 %v7955_v21  ;;  %v7960_v63 = vld [vmem:[#allocation4 + $0xb0] sm:$0xff]   ;;  %v7963_v43 = vld [vmem:[#allocation4 + $0x28] sm:$0xff]  }
 0x436   :  { %7081 = vmatpush3.bf16.msra.mxu1 %v7956_v23  ;;  %7042 = vmatprep.subr.bf16.mxu0 %v7957_v30  ;;  %v7964_v36 = vld [vmem:[#allocation4 + $0xa8] sm:$0xff]   ;;  %v7965_v47 = vld [vmem:[#allocation4 + $0x60] sm:$0xff]   ;;  %v7969_v12 = vld [vmem:[#allocation4 + $0x58] sm:$0xff]  }
 0x437   :  { %7082 = vmatprep.subr.bf16.mxu1 %v7958_v29  ;;  %v7966_v27 = vld [vmem:[#allocation4 + $0xe0] sm:$0xff]   ;;  %v7970_v56 = vld [vmem:[#allocation4 + $0xd8] sm:$0xff]   ;;  %v7973_v58 = vld [vmem:[#allocation4 + $0x50] sm:$0xff]  }
 0x438   :  { %v7967_v20 = vld [vmem:[#allocation4 + $0x20] sm:$0xff]   ;;  %v7971_v53 = vld [vmem:[#allocation4 + $0x18] sm:$0xff]   ;;  %v7974_v2 = vld [vmem:[#allocation4 + $0xd0] sm:$0xff]  }
 0x439   :  { %7043 = vmatpush3.bf16.msra.mxu0 %v7959_v46  ;;  %v7968_v11 = vld [vmem:[#allocation4 + $0xa0] sm:$0xff]   ;;  %v7972_v45 = vld [vmem:[#allocation4 + $0x98] sm:$0xff]   ;;  %v7975_v22 = vld [vmem:[#allocation4 + $0x10] sm:$0xff]  }
 0x43a   :  { %7083 = vmatpush3.bf16.msra.mxu1 %v7960_v63  ;;  %7044 = vmatprep.subr.bf16.mxu0 %v7961_v44  ;;  %v7976_v60 = vld [vmem:[#allocation4 + $0x90] sm:$0xff]   ;;  %v7977_v38 = vld [vmem:[#allocation4 + $0x48] sm:$0xff]   ;;  %v7981_v55 = vld [vmem:[#allocation4 + $0x40] sm:$0xff]  }
 0x43b   :  { %7084 = vmatprep.subr.bf16.mxu1 %v7962_v35  ;;  %v7978_v13 = vld [vmem:[#allocation4 + $0xc8] sm:$0xff]   ;;  %v7982_v59 = vld [vmem:[#allocation4 + $0xc0] sm:$0xff]   ;;  %v7985_v32 = vld [vmem:[#allocation4 + $0x178] sm:$0xff]  }
 0x43c   :  { %v7979_v26 = vld [vmem:[#allocation4 + $0x8] sm:$0xff]   ;;  %v7983_v50 = vld [vmem:[#allocation4] sm:$0xff]   ;;  %v7986_v16 = vld [vmem:[#allocation4 + $0x1f8] sm:$0xff]  }
 0x43d   :  { %7045 = vmatpush3.bf16.msra.mxu0 %v7963_v43  ;;  %v7980_v34 = vld [vmem:[#allocation4 + $0x88] sm:$0xff]   ;;  %v7984_v39 = vld [vmem:[#allocation4 + $0x80] sm:$0xff]   ;;  %v7987_v8 = vld [vmem:[#allocation4 + $0x138] sm:$0xff]  }
 0x43e   :  { %7085 = vmatpush3.bf16.msra.mxu1 %v7964_v36  ;;  %7046 = vmatprep.subr.bf16.mxu0 %v7965_v47  ;;  %v7988_v0 = vld [vmem:[#allocation4 + $0x1b8] sm:$0xff]   ;;  %v7989_v6 = vld [vmem:[#allocation4 + $0x170] sm:$0xff]   ;;  %v7993_v23 = vld [vmem:[#allocation4 + $0x168] sm:$0xff]  }
 0x43f   :  { %7086 = vmatprep.subr.bf16.mxu1 %v7966_v27  ;;  %v7990_v21 = vld [vmem:[#allocation4 + $0x1f0] sm:$0xff]   ;;  %v7994_v30 = vld [vmem:[#allocation4 + $0x1e8] sm:$0xff]   ;;  %v7997_v63 = vld [vmem:[#allocation4 + $0x160] sm:$0xff]  }
 0x440   :  { %v7991_v41 = vld [vmem:[#allocation4 + $0x130] sm:$0xff]   ;;  %v7995_v29 = vld [vmem:[#allocation4 + $0x128] sm:$0xff]   ;;  %v7998_v42 = vld [vmem:[#allocation4 + $0x1e0] sm:$0xff]  }
 0x441   :  { %7047 = vmatpush3.bf16.msra.mxu0 %v7967_v20  ;;  %v7992_v48 = vld [vmem:[#allocation4 + $0x1b0] sm:$0xff]   ;;  %v7996_v46 = vld [vmem:[#allocation4 + $0x1a8] sm:$0xff]   ;;  %v7999_v52 = vld [vmem:[#allocation4 + $0x120] sm:$0xff]  }
 0x442   :  { %7087 = vmatpush3.bf16.msra.mxu1 %v7968_v11  ;;  %7048 = vmatprep.subr.bf16.mxu0 %v7969_v12  ;;  %v8001_v44 = vld [vmem:[#allocation4 + $0x158] sm:$0xff]   ;;  %v8005_v31 = vld [vmem:[#allocation4 + $0x150] sm:$0xff]   ;;  %v8009_v27 = vld [vmem:[#allocation4 + $0x148] sm:$0xff]  }
 0x443   :  { %7088 = vmatprep.subr.bf16.mxu1 %v7970_v56  ;;  %v8002_v35 = vld [vmem:[#allocation4 + $0x1d8] sm:$0xff]   ;;  %v8007_v36 = vld [vmem:[#allocation4 + $0x110] sm:$0xff]   ;;  %v8010_v20 = vld [vmem:[#allocation4 + $0x1c8] sm:$0xff]  }
 0x444   :  { %v8003_v43 = vld [vmem:[#allocation4 + $0x118] sm:$0xff]   ;;  %v8008_v47 = vld [vmem:[#allocation4 + $0x190] sm:$0xff]   ;;  %v8011_v11 = vld [vmem:[#allocation4 + $0x108] sm:$0xff]  }
 0x445   :  { %7049 = vmatpush3.bf16.msra.mxu0 %v7971_v53  ;;  %v8004_v61 = vld [vmem:[#allocation4 + $0x198] sm:$0xff]   ;;  %v8012_v12 = vld [vmem:[#allocation4 + $0x188] sm:$0xff]   ;;  %v8013_v56 = vld [vmem:[#allocation4 + $0x140] sm:$0xff]  }
 0x446   :  { %7089 = vmatpush3.bf16.msra.mxu1 %v7972_v45  ;;  %7050 = vmatprep.subr.bf16.mxu0 %v7973_v58  ;;  %v8014_v53 = vld [vmem:[#allocation4 + $0x1c0] sm:$0xff]  }
 0x447   :  { %7090 = vmatprep.subr.bf16.mxu1 %v7974_v2  ;;  %v8015_v45 = vld [vmem:[#allocation4 + $0x100] sm:$0xff]  }
 0x448   :  { %v8016_v58 = vld [vmem:[#allocation4 + $0x180] sm:$0xff]  }
 0x449   :  { %7051 = vmatpush3.bf16.msra.mxu0 %v7975_v22 }
 0x44a   :  { %7091 = vmatpush3.bf16.msra.mxu1 %v7976_v60  ;;  %7052 = vmatprep.subr.bf16.mxu0 %v7977_v38 }
 0x44b   :  { %7092 = vmatprep.subr.bf16.mxu1 %v7978_v13 }
 0x44d   :  { %7053 = vmatpush3.bf16.msra.mxu0 %v7979_v26 }
 0x44e   :  { %7093 = vmatpush3.bf16.msra.mxu1 %v7980_v34  ;;  %7054 = vmatprep.subr.bf16.mxu0 %v7981_v55 }
 0x44f   :  { %7094 = vmatprep.subr.bf16.mxu1 %v7982_v59 }
 0x451   :  { %7055 = vmatpush3.bf16.msra.mxu0 %v7983_v50 }
 0x452   :  { %7095 = vmatpush3.bf16.msra.mxu1 %v7984_v39  ;;  %7120 = vmatprep.subr.bf16.mxu0 %v7985_v32 }
 0x453   :  { %7160 = vmatprep.subr.bf16.mxu1 %v7986_v16 }
 0x454   :  { %4257 = vmatmul.mubr.bf16.vlgmr.msra.gmra.mxu0 %v9843_v17 }
 0x455   :  { %6916 = vmatmul.mubr.msk.bf16.vlgmr.msra.gmra.mxu1 %vm9624_vm5, %v6915_v40  ;;  %7121 = vmatpush3.bf16.msra.mxu0 %v7987_v8 }
 0x456   :  { %7161 = vmatpush3.bf16.msra.mxu1 %v7988_v0  ;;  %4264 = vmatprep.mubr.bf16.mxu0 %v9909_v51 }
 0x457   :  { %7122 = vmatprep.subr.bf16.mxu0 %v7989_v6  ;;  %4329 = vmatprep.mubr.bf16.mxu1 %v3959_v5  ;;  %v8000_v5 = vld [vmem:[#allocation4 + $0x1a0] sm:$0xff]  }
 0x458   :  { %7162 = vmatprep.subr.bf16.mxu1 %v7990_v21 }
 0x459   :  { %7123 = vmatpush3.bf16.msra.mxu0 %v7991_v41 }
 0x45a   :  { %7163 = vmatpush3.bf16.msra.mxu1 %v7992_v48  ;;  %7124 = vmatprep.subr.bf16.mxu0 %v7993_v23 }
 0x45b   :  { %7164 = vmatprep.subr.bf16.mxu1 %v7994_v30 }
 0x45c   :  { %4265 = vmatmul.mubr.bf16.gmra.mxu0 %v9845_v33 }
 0x45d   :  { %4330 = vmatmul.mubr.bf16.gmra.mxu1 %v3958_v3  ;;  %7125 = vmatpush3.bf16.msra.mxu0 %v7995_v29  ;;  %v8006_v3 = vld [vmem:[#allocation4 + $0x1d0] sm:$0xff]  }
 0x45e   :  { %7165 = vmatpush3.bf16.msra.mxu1 %v7996_v46  ;;  %4272 = vmatprep.mubr.bf16.mxu0 %v9911_v24 }
 0x45f   :  { %7126 = vmatprep.subr.bf16.mxu0 %v7997_v63  ;;  %4337 = vmatprep.mubr.bf16.mxu1 %v9883_v4 }
 0x460   :  { %7166 = vmatprep.subr.bf16.mxu1 %v7998_v42 }
 0x461   :  { %7127 = vmatpush3.bf16.msra.mxu0 %v7999_v52 }
 0x462   :  { %7167 = vmatpush3.bf16.msra.mxu1 %v8000_v5  ;;  %7128 = vmatprep.subr.bf16.mxu0 %v8001_v44 }
 0x463   :  { %7168 = vmatprep.subr.bf16.mxu1 %v8002_v35 }
 0x464   :  { %4273 = vmatmul.mubr.bf16.gmra.mxu0 %v9847_v14 }
 0x465   :  { %4338 = vmatmul.mubr.bf16.gmra.mxu1 %v9843_v17  ;;  %7129 = vmatpush3.bf16.msra.mxu0 %v8003_v43 }
 0x466   :  { %7169 = vmatpush3.bf16.msra.mxu1 %v8004_v61  ;;  %4280 = vmatprep.mubr.bf16.mxu0 %v9913_v18 }
 0x467   :  { %7130 = vmatprep.subr.bf16.mxu0 %v8005_v31  ;;  %4345 = vmatprep.mubr.bf16.mxu1 %v9909_v51 }
 0x468   :  { %7170 = vmatprep.subr.bf16.mxu1 %v8006_v3 }
 0x469   :  { %7131 = vmatpush3.bf16.msra.mxu0 %v8007_v36 }
 0x46a   :  { %7171 = vmatpush3.bf16.msra.mxu1 %v8008_v47  ;;  %7132 = vmatprep.subr.bf16.mxu0 %v8009_v27 }
 0x46b   :  { %7172 = vmatprep.subr.bf16.mxu1 %v8010_v20 }
 0x46c   :  { %4281 = vmatmul.mubr.bf16.gmra.mxu0 %v9849_v15 }
 0x46d   :  { %4346 = vmatmul.mubr.bf16.gmra.mxu1 %v9845_v33  ;;  %7133 = vmatpush3.bf16.msra.mxu0 %v8011_v11 }
 0x46e   :  { %7173 = vmatpush3.bf16.msra.mxu1 %v8012_v12  ;;  %4643 = vmatprep.mubr.bf16.mxu0 %v9883_v4  ;;  %v6950_v4 = vpack.c.bf16 %v9897_v62, %v9889_v37 }
 0x46f   :  { %7134 = vmatprep.subr.bf16.mxu0 %v8013_v56  ;;  %4708 = vmatprep.mubr.bf16.mxu1 %v9911_v24 }
 0x470   :  { %7174 = vmatprep.subr.bf16.mxu1 %v8014_v53 }
 0x471   :  { %7135 = vmatpush3.bf16.msra.mxu0 %v8015_v45 }
 0x472   :  { %7175 = vmatpush3.bf16.msra.mxu1 %v8016_v58 }
 0x474   :  { %4644 = vmatmul.mubr.bf16.vlgmr.msra.gmra.mxu0 %v9843_v17 }
 0x475   :  { %4709 = vmatmul.mubr.bf16.vlgmr.msra.gmra.mxu1 %v9847_v14  ;;  %4651 = vmatprep.mubr.bf16.mxu0 %v9909_v51 }
 0x476   :  { %4716 = vmatprep.mubr.bf16.mxu1 %v9913_v18 }
 0x47c   :  { %4652 = vmatmul.mubr.bf16.gmra.mxu0 %v9845_v33  ;;  %v6953_v33 = vpack.c.bf16 %v9825_v49, %v9813_v25 }
 0x47d   :  { %4717 = vmatmul.mubr.bf16.gmra.mxu1 %v9849_v15  ;;  %4659 = vmatprep.mubr.bf16.mxu0 %v9911_v24 }
 0x47e   :  { %4724 = vmatprep.mubr.bf16.mxu1 %v3961_v54 }
 0x484   :  { %4660 = vmatmul.mubr.bf16.gmra.mxu0 %v9847_v14 }
 0x485   :  { %4725 = vmatmul.mubr.bf16.gmra.mxu1 %v3960_v57  ;;  %4667 = vmatprep.mubr.bf16.mxu0 %v9913_v18 }
 0x486   :  { %6951 = vmatprep.mubr.msk.bf16.mxu1 %vm9673_vm6, %v6950_v4 }
 0x48c   :  { %4668 = vmatmul.mubr.bf16.gmra.mxu0 %v9849_v15 }
 0x48d   :  { %6954 = vmatmul.mubr.msk.bf16.gmra.mxu1 %vm9673_vm6, %v6953_v33 }
 0x514   :  { %v7056_v1 = vpop.f32.mrf.mxu0 }
 0x515   :  { %v7096_v37 = vpop.f32.mrf.mxu1 }
 0x516   :  { %v7057_v14 = vpop.f32.mrf.mxu0 }
 0x517   :  { %v7097_v7 = vpop.f32.mrf.mxu1  ;;  %v7058_v30 = vadd.f32 %v7057_v14, %v7056_v1 }
 0x518   :  { %v7059_v62 = vpop.f32.mrf.mxu0  ;;  %v7098_v29 = vadd.f32 %v7097_v7, %v7096_v37 }
 0x519   :  { %v7099_v19 = vpop.f32.mrf.mxu1 }
 0x51a   :  { %v7060_v9 = vpop.f32.mrf.mxu0  ;;  %v9983_v31 = vadd.f32 %v7098_v29, %v7058_v30 }
 0x51b   :  { %v7100_v57 = vpop.f32.mrf.mxu1  ;;  %v7061_v21 = vadd.f32 %v7060_v9, %v7059_v62 }
 0x51c   :  { %v7062_v51 = vpop.f32.mrf.mxu0  ;;  %v7101_v41 = vadd.f32 %v7100_v57, %v7099_v19 }
 0x51d   :  { %v7102_v24 = vpop.f32.mrf.mxu1 }
 0x51e   :  { %v7063_v18 = vpop.f32.mrf.mxu0  ;;  %v9981_v5 = vadd.f32 %v7101_v41, %v7061_v21 }
 0x51f   :  { %v7103_v54 = vpop.f32.mrf.mxu1  ;;  %v7064_v46 = vadd.f32 %v7063_v18, %v7062_v51 }
 0x520   :  { %v7065_v2 = vpop.f32.mrf.mxu0  ;;  %v7104_v63 = vadd.f32 %v7103_v54, %v7102_v24  ;;  %v4743_v11 = vadd.f32 %v9981_v5, %v9983_v31 }
 0x521   :  { %v7105_v22 = vpop.f32.mrf.mxu1 }
 0x522   :  { %v7066_v25 = vpop.f32.mrf.mxu0  ;;  %v9985_v3 = vadd.f32 %v7104_v63, %v7064_v46 }
 0x523   :  { %v7106_v49 = vpop.f32.mrf.mxu1  ;;  %v7067_v44 = vadd.f32 %v7066_v25, %v7065_v2 }
 0x524   :  { %v7068_v15 = vpop.f32.mrf.mxu0  ;;  %v7107_v35 = vadd.f32 %v7106_v49, %v7105_v22  ;;  %v4744_v4 = vadd.f32 %v4743_v11, %v9985_v3 }
 0x525   :  { %v7108_v60 = vpop.f32.mrf.mxu1 }
 0x526   :  { %v7069_v38 = vpop.f32.mrf.mxu0  ;;  %v9989_v12 = vadd.f32 %v7107_v35, %v7067_v44 }
 0x527   :  { %v7109_v13 = vpop.f32.mrf.mxu1  ;;  %v7070_v22 = vadd.f32 %v7069_v38, %v7068_v15 }
 0x528   :  { %v7071_v26 = vpop.f32.mrf.mxu0  ;;  %v4745_v7 = vadd.f32 %v4744_v4, %v9989_v12  ;;  %v7110_v25 = vadd.f32 %v7109_v13, %v7108_v60 }
 0x529   :  { %v7111_v34 = vpop.f32.mrf.mxu1 }
 0x52a   :  { %v7072_v55 = vpop.f32.mrf.mxu0 }
 0x52b   :  { %v7112_v59 = vpop.f32.mrf.mxu1 }
 0x52c   :  { %v9969_v50 = vpop.f32.mrf.mxu0  ;;  %v7113_v30 = vadd.f32 %v7112_v59, %v7111_v34 }
 0x52d   :  { %v9971_v39 = vpop.f32.mrf.mxu1 }
 0x52e   :  { %v7075_v40 = vpop.f32.mrf.mxu0 }
 0x52f   :  { %v7115_v32 = vpop.f32.mrf.mxu1  ;;  %v7076_v44 = vadd.f32 %v7075_v40, %v9969_v50 }
 0x530   :  { %v9973_v16 = vpop.f32.mrf.mxu0  ;;  %v7116_v15 = vadd.f32 %v7115_v32, %v9971_v39 }
 0x531   :  { %v9975_v8 = vpop.f32.mrf.mxu1 }
 0x532   :  { %v9977_v0 = vpop.f32.mrf.mxu0 }
 0x533   :  { %v9979_v6 = vpop.f32.mrf.mxu1 }
 0x534   :  { %v7136_v48 = vpop.f32.mrf.mxu0  ;;  %v7119_v34 = vadd.f32 %v9979_v6, %v9975_v8 }
 0x535   :  { %v7176_v23 = vpop.f32.mrf.mxu1 }
 0x536   :  { %v7137_v42 = vpop.f32.mrf.mxu0 }
 0x537   :  { %v7177_v52 = vpop.f32.mrf.mxu1  ;;  %v7138_v36 = vadd.f32 %v7137_v42, %v7136_v48 }
 0x538   :  { %v7139_v43 = vpop.f32.mrf.mxu0  ;;  %v7178_v47 = vadd.f32 %v7177_v52, %v7176_v23  ;;  %v7073_v23 = vadd.f32 %v7072_v55, %v7071_v26  ;;  %v10004_v52 = vadd.f32 %v7110_v25, %v7070_v22  ;;  %v7079_v26 = vadd.f32 %v9977_v0, %v9973_v16 }
 0x539   :  { %v7179_v61 = vpop.f32.mrf.mxu1 }
 0x53a   :  { %v7140_v27 = vpop.f32.mrf.mxu0  ;;  %v9992_v33 = vadd.f32 %v7178_v47, %v7138_v36  ;;  %v10009_v35 = vadd.f32 %v7113_v30, %v7073_v23  ;;  %v4351_v47 = vadd.f32 %v7119_v34, %v7079_v26 }
 0x53b   :  { %v7180_v20 = vpop.f32.mrf.mxu1  ;;  %v7141_v56 = vadd.f32 %v7140_v27, %v7139_v43 }
 0x53c   :  { %v7181_v53 = vadd.f32 %v7180_v20, %v7179_v61  ;;  %v7142_v45 = vpop.f32.mrf.mxu0  ;;  %v4746_v51 = vadd.f32 %v4745_v7, %v9992_v33  ;;  %v4348_v61 = vadd.f32 %v7116_v15, %v7076_v44 }
 0x53d   :  { %v7182_v58 = vpop.f32.mrf.mxu1 }
 0x53e   :  { %v7143_v1 = vpop.f32.mrf.mxu0  ;;  %v9995_v62 = vadd.f32 %v7181_v53, %v7141_v56 }
 0x53f   :  { %v7144_v37 = vadd.f32 %v7143_v1, %v7142_v45  ;;  %v7183_v14 = vpop.f32.mrf.mxu1 }
 0x540   :  { %v7184_v19 = vadd.f32 %v7183_v14, %v7182_v58  ;;  %v7145_v9 = vpop.f32.mrf.mxu0  ;;  %v4747_v49 = vadd.f32 %v4746_v51, %v9995_v62 }
 0x541   :  { %v7185_v57 = vpop.f32.mrf.mxu1 }
 0x542   :  { %v9998_v24 = vadd.f32 %v7184_v19, %v7144_v37  ;;  %v7146_v18 = vpop.f32.mrf.mxu0 }
 0x543   :  { %v7147_v54 = vadd.f32 %v7146_v18, %v7145_v9  ;;  %v7186_v2 = vpop.f32.mrf.mxu1 }
 0x544   :  { %v7187_v21 = vadd.f32 %v7186_v2, %v7185_v57  ;;  %v7148_v41 = vpop.f32.mrf.mxu0  ;;  %v4748_v29 = vadd.f32 %v4747_v49, %v9998_v24 }
 0x545   :  { %v7188_v48 = vpop.f32.mrf.mxu1 }
 0x546   :  { %v10002_v46 = vadd.f32 %v7187_v21, %v7147_v54  ;;  %v7149_v63 = vpop.f32.mrf.mxu0 }
 0x547   :  { %v7189_v42 = vpop.f32.mrf.mxu1  ;;  %v7150_v39 = vadd.f32 %v7149_v63, %v7148_v41 }
 0x548   :  { %v4749_v60 = vadd.f32 %v4748_v29, %v10002_v46  ;;  %v7151_v38 = vpop.f32.mrf.mxu0  ;;  %v7190_v40 = vadd.f32 %v7189_v42, %v7188_v48 }
 0x549   :  { %v7191_v13 = vpop.f32.mrf.mxu1 }
 0x54a   :  { %v4750_v55 = vadd.f32 %v4749_v60, %v10004_v52  ;;  %v7152_v59 = vpop.f32.mrf.mxu0  ;;  %v4727_v0 = vadd.f32 %v7190_v40, %v7150_v39 }
 0x54b   :  { %v7192_v43 = vpop.f32.mrf.mxu1  ;;  %v7153_v20 = vadd.f32 %v7152_v59, %v7151_v38 }
 0x54c   :  { %v4751_v50 = vadd.f32 %v4750_v55, %v10009_v35  ;;  %v7154_v32 = vpop.f32.mrf.mxu0  ;;  %v7193_v11 = vadd.f32 %v7192_v43, %v7191_v13 }
 0x54d   :  { %v7194_v36 = vpop.f32.mrf.mxu1 }
 0x54e   :  { %v4752_v27 = vadd.f32 %v4751_v50, %v4348_v61  ;;  %v7155_v56 = vpop.f32.mrf.mxu0  ;;  %v4730_v1 = vadd.f32 %v7193_v11, %v7153_v20 }
 0x54f   :  { %v7195_v16 = vpop.f32.mrf.mxu1  ;;  %v7156_v8 = vadd.f32 %v7155_v56, %v7154_v32 }
 0x550   :  { %v4753_v53 = vadd.f32 %v4752_v27, %v4351_v47  ;;  %v7196_v6 = vadd.f32 %v7195_v16, %v7194_v36  ;;  %v7157_v45 = vpop.f32.mrf.mxu0 }
 0x551   :  { %v7197_v58 = vpop.f32.mrf.mxu1 }
 0x552   :  { %v4754_v4 = vadd.f32 %v4753_v53, %v4727_v0  ;;  %v7158_v37 = vpop.f32.mrf.mxu0  ;;  %v4735_v9 = vadd.f32 %v7196_v6, %v7156_v8 }
 0x553   :  { %v7159_v14 = vadd.f32 %v7158_v37, %v7157_v45  ;;  %v7198_v7 = vpop.f32.mrf.mxu1 }
 0x554   :  { %v4755_v19 = vadd.f32 %v4754_v4, %v4730_v1  ;;  %v7199_v57 = vadd.f32 %v7198_v7, %v7197_v58 }
 0x556   :  { %v4756_v51 = vadd.f32 %v4755_v19, %v4735_v9  ;;  %v4738_v18 = vadd.f32 %v7199_v57, %v7159_v14 }
 0x558   :  { %v4757_v54 = vadd.f32 %v4756_v51, %v4738_v18 }
 0x55a   :  { %v4758_v2 = vrot.slane %v4757_v54, 4 }
 0x55c   :  { %v4759_v22 = vadd.f32 %v4758_v2, %v4757_v54 }
 0x55e   :  { %v4760_v25 = vrot.slane %v4759_v22, 2 }
 0x560   :  { %v4761_v49 = vadd.f32 %v4760_v25, %v4759_v22 }
 0x562   :  { %v4762_v21 = vrot.slane %v4761_v49, 1 }
 0x564   :  { %v4763_v41 = vadd.f32 %v4762_v21, %v4761_v49 }
 0x566   :  { %v4764_v48 = vmul.f32 0.0078125, %v4763_v41 }
 0x568   :  { %v4765_v23 = vsub.f32 %v9983_v31, %v4764_v48  ;;  %v4766_v30 = vsub.f32 %v9981_v5, %v4764_v48  ;;  %v4767_v29 = vsub.f32 %v9985_v3, %v4764_v48  ;;  %v4768_v44 = vsub.f32 %v9989_v12, %v4764_v48 }
 0x569   :  { %v4769_v15 = vsub.f32 %v9992_v33, %v4764_v48  ;;  %v4770_v13 = vsub.f32 %v9995_v62, %v4764_v48  ;;  %v4771_v55 = vsub.f32 %v9998_v24, %v4764_v48  ;;  %v4772_v5 = vsub.f32 %v10002_v46, %v4764_v48 }
 0x56a   :  { %v4781_v63 = vmul.f32 %v4765_v23, %v4765_v23  ;;  %v4782_v42 = vmul.f32 %v4766_v30, %v4766_v30  ;;  %v4783_v60 = vmul.f32 %v4767_v29, %v4767_v29  ;;  %v4784_v26 = vmul.f32 %v4768_v44, %v4768_v44 }
 0x56b   :  { %v4785_v59 = vmul.f32 %v4769_v15, %v4769_v15  ;;  %v4786_v43 = vmul.f32 %v4770_v13, %v4770_v13  ;;  %v4773_v50 = vsub.f32 %v10004_v52, %v4764_v48  ;;  %v4787_v39 = vmul.f32 %v4771_v55, %v4771_v55 }
 0x56c   :  { %v4797_v38 = vadd.f32 %v4782_v42, %v4781_v63  ;;  %v4774_v33 = vsub.f32 %v10009_v35, %v4764_v48  ;;  %v4788_v40 = vmul.f32 %v4772_v5, %v4772_v5  ;;  %v4775_v36 = vsub.f32 %v4348_v61, %v4764_v48 }
 0x56d   :  { %v4789_v62 = vmul.f32 %v4773_v50, %v4773_v50  ;;  %v4776_v20 = vsub.f32 %v4351_v47, %v4764_v48  ;;  %v4777_v56 = vsub.f32 %v4727_v0, %v4764_v48  ;;  %v4778_v46 = vsub.f32 %v4730_v1, %v4764_v48 }
 0x56e   :  { %v4798_v34 = vadd.f32 %v4797_v38, %v4783_v60  ;;  %v4790_v11 = vmul.f32 %v4774_v33, %v4774_v33  ;;  %v4791_v16 = vmul.f32 %v4775_v36, %v4775_v36  ;;  %v4779_v45 = vsub.f32 %v4735_v9, %v4764_v48 }
 0x56f   :  { %v4792_v8 = vmul.f32 %v4776_v20, %v4776_v20  ;;  %v4793_v52 = vmul.f32 %v4777_v56, %v4777_v56  ;;  %v4780_v4 = vsub.f32 %v4738_v18, %v4764_v48  ;;  %v4794_v37 = vmul.f32 %v4778_v46, %v4778_v46  ;;  %v6955_v48 = vld [vmem:[%s10843_s5] ss:$0 sm:$0xff] }
 0x570   :  { %v4799_v31 = vadd.f32 %v4798_v34, %v4784_v26  ;;  %v4795_v14 = vmul.f32 %v4779_v45, %v4779_v45 }
 0x571   :  { %v4796_v61 = vmul.f32 %v4780_v4, %v4780_v4 }
 0x572   :  { %v4800_v3 = vadd.f32 %v4799_v31, %v4785_v59 }
 0x574   :  { %v4801_v12 = vadd.f32 %v4800_v3, %v4786_v43 }
 0x576   :  { %v4802_v32 = vadd.f32 %v4801_v12, %v4787_v39 }
 0x578   :  { %v4803_v27 = vadd.f32 %v4802_v32, %v4788_v40  ;;  %v6956_v40 = vld [vmem:[%s10844_s6] ss:$0 sm:$0xff] }
 0x57a   :  { %v4804_v24 = vadd.f32 %v4803_v27, %v4789_v62 }
 0x57c   :  { %v4805_v53 = vadd.f32 %v4804_v24, %v4790_v11 }
 0x57e   :  { %v4806_v6 = vadd.f32 %v4805_v53, %v4791_v16 }
 0x580   :  { %v4807_v58 = vadd.f32 %v4806_v6, %v4792_v8 }
 0x582   :  { %v4808_v35 = vadd.f32 %v4807_v58, %v4793_v52 }
 0x584   :  { %v4809_v7 = vadd.f32 %v4808_v35, %v4794_v37 }
 0x586   :  { %v4810_v19 = vadd.f32 %v4809_v7, %v4795_v14 }
 0x588   :  { %v4811_v57 = vadd.f32 %v4810_v19, %v4796_v61 }
 0x58a   :  { %v4812_v47 = vrot.slane %v4811_v57, 4 }
 0x58c   :  { %v4813_v51 = vadd.f32 %v4812_v47, %v4811_v57 }
 0x58e   :  { %v4814_v54 = vrot.slane %v4813_v51, 2 }
 0x590   :  { %v4815_v0 = vadd.f32 %v4814_v54, %v4813_v51 }
 0x592   :  { %v4816_v2 = vrot.slane %v4815_v0, 1 }
 0x594   :  { %v4817_v22 = vadd.f32 %v4816_v2, %v4815_v0 }
 0x596   :  { %v4818_v1 = vmul.f32 0.0078125, %v4817_v22 }
 0x598   :  { %v4819_v25 = vadd.f32 1e-05, %v4818_v1 }
 0x59a   :  { %8017 = vrsqrt.f32 %v4819_v25 }
 0x5a7   :  { %v8018_v9 = vpop.eup %8017 }
 0x5a8   :  { %v4821_v49 = vmul.f32 %v8018_v9, %v4765_v23  ;;  %v4822_v21 = vmul.f32 %v8018_v9, %v4766_v30  ;;  %v4823_v18 = vmul.f32 %v8018_v9, %v4767_v29  ;;  %v4824_v41 = vmul.f32 %v8018_v9, %v4768_v44 }
 0x5a9   :  { %v4825_v63 = vmul.f32 %v8018_v9, %v4769_v15  ;;  %v4826_v42 = vmul.f32 %v8018_v9, %v4770_v13  ;;  %v4827_v60 = vmul.f32 %v8018_v9, %v4771_v55  ;;  %v4828_v38 = vmul.f32 %v8018_v9, %v4772_v5 }
 0x5aa   :  { %v4829_v26 = vmul.f32 %v8018_v9, %v4773_v50  ;;  %v4830_v34 = vmul.f32 %v8018_v9, %v4774_v33  ;;  %v4831_v59 = vmul.f32 %v8018_v9, %v4775_v36  ;;  %v4832_v31 = vmul.f32 %v8018_v9, %v4776_v20 }
 0x5ab   :  { %v4833_v43 = vmul.f32 %v8018_v9, %v4777_v56  ;;  %v4834_v3 = vmul.f32 %v8018_v9, %v4778_v46  ;;  %v4835_v39 = vmul.f32 %v8018_v9, %v4779_v45  ;;  %v4836_v12 = vmul.f32 %v8018_v9, %v4780_v4 }
 0x5ac   :  { %v4843_v23 = vmul.f32 %v6955_v48, %v4821_v49  ;;  %v4844_v30 = vmul.f32 %v6955_v48, %v4822_v21  ;;  %v4845_v29 = vmul.f32 %v6955_v48, %v4823_v18  ;;  %v4846_v44 = vmul.f32 %v6955_v48, %v4824_v41 }
 0x5ad   :  { %v4847_v15 = vmul.f32 %v6955_v48, %v4825_v63  ;;  %v4848_v13 = vmul.f32 %v6955_v48, %v4826_v42  ;;  %v4849_v55 = vmul.f32 %v6955_v48, %v4827_v60  ;;  %v4850_v5 = vmul.f32 %v6955_v48, %v4828_v38 }
 0x5ae   :  { %v4851_v50 = vmul.f32 %v6955_v48, %v4829_v26  ;;  %v4852_v33 = vmul.f32 %v6955_v48, %v4830_v34  ;;  %v4853_v32 = vmul.f32 %v6955_v48, %v4831_v59  ;;  %v4854_v36 = vmul.f32 %v6955_v48, %v4832_v31 }
 0x5af   :  { %v4855_v62 = vmul.f32 %v6955_v48, %v4833_v43  ;;  %v4856_v27 = vmul.f32 %v6955_v48, %v4834_v3  ;;  %v4857_v20 = vmul.f32 %v6955_v48, %v4835_v39  ;;  %v4858_v11 = vmul.f32 %v6955_v48, %v4836_v12 }
 0x5b0   :  { %v4865_v24 = vadd.f32 %v6956_v40, %v4843_v23  ;;  %v4866_v56 = vadd.f32 %v6956_v40, %v4844_v30  ;;  %v4867_v16 = vadd.f32 %v6956_v40, %v4845_v29  ;;  %v4868_v53 = vadd.f32 %v6956_v40, %v4846_v44 }
 0x5b1   :  { %v4869_v46 = vadd.f32 %v6956_v40, %v4847_v15  ;;  %v4870_v8 = vadd.f32 %v6956_v40, %v4848_v13  ;;  %v4871_v6 = vadd.f32 %v6956_v40, %v4849_v55  ;;  %v4872_v45 = vadd.f32 %v6956_v40, %v4850_v5 }
 0x5b2   :  { %v4873_v52 = vadd.f32 %v6956_v40, %v4851_v50  ;;  %v4874_v58 = vadd.f32 %v6956_v40, %v4852_v33  ;;  %v4875_v4 = vadd.f32 %v6956_v40, %v4853_v32  ;;  %v4876_v37 = vadd.f32 %v6956_v40, %v4854_v36 }
 0x5b3   :  { %v4877_v35 = vadd.f32 %v6956_v40, %v4855_v62  ;;  %v4878_v14 = vadd.f32 %v6956_v40, %v4856_v27  ;;  %v4879_v7 = vadd.f32 %v6956_v40, %v4857_v20  ;;  %v4880_v61 = vadd.f32 %v6956_v40, %v4858_v11 }
 0x5b4   :  { %v4881_v19 = vmax.f32 %v4865_v24, 0.0  ;;  %v4882_v57 = vmax.f32 %v4866_v56, 0.0  ;;  %v4883_v47 = vmax.f32 %v4867_v16, 0.0  ;;  %v4884_v51 = vmax.f32 %v4868_v53, 0.0 }
 0x5b5   :  { %v4885_v54 = vmax.f32 %v4869_v46, 0.0  ;;  %v4886_v0 = vmax.f32 %v4870_v8, 0.0  ;;  %v4887_v2 = vmax.f32 %v4871_v6, 0.0  ;;  %v4888_v22 = vmax.f32 %v4872_v45, 0.0 }
 0x5b6   :  { %v4889_v1 = vmax.f32 %v4873_v52, 0.0  ;;  %v4890_v25 = vmax.f32 %v4874_v58, 0.0  ;;  %v4891_v9 = vmax.f32 %v4875_v4, 0.0  ;;  %v4892_v49 = vmax.f32 %v4876_v37, 0.0 }
 0x5b7   :  { %v4893_v21 = vmax.f32 %v4877_v35, 0.0  ;;  %v4894_v18 = vmax.f32 %v4878_v14, 0.0  ;;  %v4895_v41 = vmax.f32 %v4879_v7, 0.0  ;;  %v4896_v48 = vmax.f32 %v4880_v61, 0.0 }
 0x5b8   :  { %v4909_v63 = vrot.slane %v4881_v19, 2  ;;  %v4910_v42 = vrot.slane %v4882_v57, 2  ;;  %v4911_v60 = vrot.slane %v4883_v47, 2  ;;  %v4912_v38 = vrot.slane %v4884_v51, 2 }
 0x5b9   :  { %v4897_v26 = vrot.slane %v4893_v21, 6  ;;  %v4898_v34 = vrot.slane %v4894_v18, 6  ;;  %v4899_v59 = vrot.slane %v4895_v41, 6  ;;  %v4900_v31 = vrot.slane %v4896_v48, 6 }
 0x5ba   :  { %v10035_v43 = vsel %vm1693_vm3, %v4911_v60, %v4912_v38  ;;  %v10039_v3 = vsel %vm1693_vm3, %v4910_v42, %v4911_v60  ;;  %v10043_v39 = vsel %vm1693_vm3, %v4909_v63, %v4910_v42  ;;  %v10047_v12 = vsel %vm1693_vm3, %v4912_v38, %v4909_v63 }
 0x5bb   :  { %v10051_v23 = vsel %vm1637_vm2, %v4899_v59, %v4900_v31  ;;  %v10055_v30 = vsel %vm1637_vm2, %v4898_v34, %v4899_v59  ;;  %v4903_v29 = vsel %vm1637_vm2, %v4897_v26, %v4898_v34  ;;  %v4904_v44 = vsel %vm1637_vm2, %v4900_v31, %v4897_v26 }
 0x5bc   :  { %v10061_v40 = vpack.c.bf16 %v4882_v57, %v4881_v19  ;;  %v10063_v15 = vpack.c.bf16 %v4884_v51, %v4883_v47  ;;  %v10065_v13 = vpack.c.bf16 %v4886_v0, %v4885_v54  ;;  %v10067_v55 = vpack.c.bf16 %v4888_v22, %v4887_v2 }
 0x5bd   :  { %v10069_v5 = vpack.c.bf16 %v4890_v25, %v4889_v1  ;;  %v10071_v50 = vpack.c.bf16 %v4892_v49, %v4891_v9  ;;  %v10073_v33 = vpack.c.bf16 %v4894_v18, %v4893_v21  ;;  %v10075_v32 = vpack.c.bf16 %v4896_v48, %v4895_v41 }
 0x5be   :  { %v4930_v36 = vpack.c.bf16 %v10051_v23, %v10055_v30  ;;  %v4931_v62 = vpack.c.bf16 %v10039_v3, %v10043_v39 }
 0x5bf   :  { %8299 = dma.done.wait [#allocation7 + $0x3], 4096 }
 0x5c0   :  { %8300 = vsyncadd [#allocation7 + $0x3], 4294963200  ;;  %v6974_v27 = vpack.c.bf16 %v4903_v29, %v4904_v44  ;;  %5323 = vmatprep.mubr.bf16.mxu1 %v10065_v13  ;;  %v8019_v20 = vld [vmem:[#allocation5 + $0x78] sm:$0xff]   ;;  %v8023_v16 = vld [vmem:[#allocation5 + $0x70] sm:$0xff]   ;;  %v6993_v41 = vpack.c.bf16 %v10047_v12, %v10035_v43 }
 0x5c1   :  { %v8020_v11 = vld [vmem:[#allocation5 + $0x38] sm:$0xff]   ;;  %7200 = vmatprep.subr.bf16.mxu0 %v8019_v20  ;;  %v8024_v53 = vld [vmem:[#allocation5 + $0x30] sm:$0xff]   ;;  %v8027_v6 = vld [vmem:[#allocation5 + $0x68] sm:$0xff]  }
 0x5c2   :  { %6975 = vmatprep.mubr.msk.bf16.mxu0 %vm9624_vm5, %v6974_v27  ;;  %v8021_v24 = vld [vmem:[#allocation5 + $0xf8] sm:$0xff]   ;;  %7201 = vmatpush3.bf16.msra.mxu0 %v8020_v11  ;;  %v8025_v46 = vld [vmem:[#allocation5 + $0xf0] sm:$0xff]   ;;  %v8028_v45 = vld [vmem:[#allocation5 + $0x28] sm:$0xff]  }
 0x5c3   :  { %v8022_v56 = vld [vmem:[#allocation5 + $0xb8] sm:$0xff]   ;;  %7264 = vmatprep.subr.bf16.mxu1 %v8021_v24  ;;  %7202 = vmatprep.subr.bf16.mxu0 %v8023_v16  ;;  %v8026_v8 = vld [vmem:[#allocation5 + $0xb0] sm:$0xff]   ;;  %v8029_v52 = vld [vmem:[#allocation5 + $0xe8] sm:$0xff]  }
 0x5c4   :  { %7265 = vmatpush3.bf16.msra.mxu1 %v8022_v56  ;;  %v8030_v58 = vld [vmem:[#allocation5 + $0xa8] sm:$0xff]   ;;  %v8031_v4 = vld [vmem:[#allocation5 + $0x60] sm:$0xff]   ;;  %v8035_v7 = vld [vmem:[#allocation5 + $0x58] sm:$0xff]  }
 0x5c5   :  { %7266 = vmatprep.subr.bf16.mxu1 %v8025_v46  ;;  %v8032_v37 = vld [vmem:[#allocation5 + $0x20] sm:$0xff]   ;;  %v8036_v61 = vld [vmem:[#allocation5 + $0x18] sm:$0xff]   ;;  %v8039_v47 = vld [vmem:[#allocation5 + $0x50] sm:$0xff]  }
 0x5c6   :  { %7203 = vmatpush3.bf16.msra.mxu0 %v8024_v53  ;;  %v8033_v35 = vld [vmem:[#allocation5 + $0xe0] sm:$0xff]   ;;  %v8037_v19 = vld [vmem:[#allocation5 + $0xd8] sm:$0xff]   ;;  %v8040_v51 = vld [vmem:[#allocation5 + $0x10] sm:$0xff]  }
 0x5c7   :  { %7204 = vmatprep.subr.bf16.mxu0 %v8027_v6  ;;  %v8034_v14 = vld [vmem:[#allocation5 + $0xa0] sm:$0xff]   ;;  %v8038_v57 = vld [vmem:[#allocation5 + $0x98] sm:$0xff]   ;;  %v8041_v54 = vld [vmem:[#allocation5 + $0xd0] sm:$0xff]  }
 0x5c8   :  { %7267 = vmatpush3.bf16.msra.mxu1 %v8026_v8  ;;  %v8042_v0 = vld [vmem:[#allocation5 + $0x90] sm:$0xff]   ;;  %v8043_v2 = vld [vmem:[#allocation5 + $0x48] sm:$0xff]   ;;  %v8047_v9 = vld [vmem:[#allocation5 + $0x40] sm:$0xff]  }
 0x5c9   :  { %7268 = vmatprep.subr.bf16.mxu1 %v8029_v52  ;;  %v8044_v22 = vld [vmem:[#allocation5 + $0x8] sm:$0xff]   ;;  %v8048_v49 = vld [vmem:[#allocation5] sm:$0xff]  }
 0x5ca   :  { %7205 = vmatpush3.bf16.msra.mxu0 %v8028_v45  ;;  %v8045_v1 = vld [vmem:[#allocation5 + $0xc8] sm:$0xff]   ;;  %v8049_v21 = vld [vmem:[#allocation5 + $0xc0] sm:$0xff]  }
 0x5cb   :  { %7206 = vmatprep.subr.bf16.mxu0 %v8031_v4  ;;  %v8046_v25 = vld [vmem:[#allocation5 + $0x88] sm:$0xff]   ;;  %v8050_v18 = vld [vmem:[#allocation5 + $0x80] sm:$0xff]  }
 0x5cc   :  { %7269 = vmatpush3.bf16.msra.mxu1 %v8030_v58 }
 0x5cd   :  { %7270 = vmatprep.subr.bf16.mxu1 %v8033_v35 }
 0x5ce   :  { %7207 = vmatpush3.bf16.msra.mxu0 %v8032_v37 }
 0x5cf   :  { %7208 = vmatprep.subr.bf16.mxu0 %v8035_v7 }
 0x5d0   :  { %7271 = vmatpush3.bf16.msra.mxu1 %v8034_v14 }
 0x5d1   :  { %7272 = vmatprep.subr.bf16.mxu1 %v8037_v19 }
 0x5d2   :  { %7209 = vmatpush3.bf16.msra.mxu0 %v8036_v61 }
 0x5d3   :  { %7210 = vmatprep.subr.bf16.mxu0 %v8039_v47 }
 0x5d4   :  { %7273 = vmatpush3.bf16.msra.mxu1 %v8038_v57 }
 0x5d5   :  { %7274 = vmatprep.subr.bf16.mxu1 %v8041_v54 }
 0x5d6   :  { %7211 = vmatpush3.bf16.msra.mxu0 %v8040_v51 }
 0x5d7   :  { %7212 = vmatprep.subr.bf16.mxu0 %v8043_v2 }
 0x5d8   :  { %7275 = vmatpush3.bf16.msra.mxu1 %v8042_v0 }
 0x5d9   :  { %7276 = vmatprep.subr.bf16.mxu1 %v8045_v1 }
 0x5da   :  { %7213 = vmatpush3.bf16.msra.mxu0 %v8044_v22 }
 0x5db   :  { %7214 = vmatprep.subr.bf16.mxu0 %v8047_v9 }
 0x5dc   :  { %7277 = vmatpush3.bf16.msra.mxu1 %v8046_v25 }
 0x5dd   :  { %7278 = vmatprep.subr.bf16.mxu1 %v8049_v21 }
 0x5de   :  { %7215 = vmatpush3.bf16.msra.mxu0 %v8048_v49 }
 0x5e0   :  { %7279 = vmatpush3.bf16.msra.mxu1 %v8050_v18 }
 0x5e1   :  { %5098 = vmatmul.mubr.bf16.vlgmr.msra.gmra.mxu0 %v10061_v40 }
 0x5e2   :  { %5105 = vmatprep.mubr.bf16.mxu0 %v4930_v36 }
 0x5e3   :  { %5324 = vmatmul.mubr.bf16.vlgmr.msra.gmra.mxu1 %v10061_v40 }
 0x5e4   :  { %5331 = vmatprep.mubr.bf16.mxu1 %v10067_v55 }
 0x5e9   :  { %5106 = vmatmul.mubr.bf16.gmra.mxu0 %v10063_v15 }
 0x5ea   :  { %5113 = vmatprep.mubr.bf16.mxu0 %v10061_v40 }
 0x5eb   :  { %5332 = vmatmul.mubr.bf16.gmra.mxu1 %v10063_v15 }
 0x5ec   :  { %5339 = vmatprep.mubr.bf16.mxu1 %v10069_v5 }
 0x5f1   :  { %5114 = vmatmul.mubr.bf16.gmra.mxu0 %v10065_v13 }
 0x5f2   :  { %5121 = vmatprep.mubr.bf16.mxu0 %v10063_v15 }
 0x5f3   :  { %5340 = vmatmul.mubr.bf16.gmra.mxu1 %v10065_v13 }
 0x5f4   :  { %5347 = vmatprep.mubr.bf16.mxu1 %v10071_v50 }
 0x5f9   :  { %5122 = vmatmul.mubr.bf16.gmra.mxu0 %v10067_v55 }
 0x5fa   :  { %5129 = vmatprep.mubr.bf16.mxu0 %v10065_v13 }
 0x5fb   :  { %5348 = vmatmul.mubr.bf16.gmra.mxu1 %v10067_v55 }
 0x5fc   :  { %5355 = vmatprep.mubr.bf16.mxu1 %v10073_v33 }
 0x601   :  { %5130 = vmatmul.mubr.bf16.gmra.mxu0 %v10069_v5 }
 0x602   :  { %5137 = vmatprep.mubr.bf16.mxu0 %v10067_v55 }
 0x603   :  { %5356 = vmatmul.mubr.bf16.gmra.mxu1 %v10069_v5 }
 0x604   :  { %5363 = vmatprep.mubr.bf16.mxu1 %v10075_v32 }
 0x609   :  { %5138 = vmatmul.mubr.bf16.gmra.mxu0 %v10071_v50 }
 0x60a   :  { %5145 = vmatprep.mubr.bf16.mxu0 %v10069_v5 }
 0x60b   :  { %5364 = vmatmul.mubr.bf16.gmra.mxu1 %v10071_v50 }
 0x60c   :  { %5371 = vmatprep.mubr.bf16.mxu1 %v4931_v62 }
 0x611   :  { %5146 = vmatmul.mubr.bf16.gmra.mxu0 %v10073_v33 }
 0x612   :  { %5153 = vmatprep.mubr.bf16.mxu0 %v10071_v50 }
 0x613   :  { %5372 = vmatmul.mubr.bf16.gmra.mxu1 %v10073_v33 }
 0x614   :  { %6994 = vmatprep.mubr.msk.bf16.mxu1 %vm9673_vm6, %v6993_v41 }
 0x619   :  { %5154 = vmatmul.mubr.bf16.gmra.mxu0 %v10075_v32 }
 0x61b   :  { %5380 = vmatmul.mubr.bf16.gmra.mxu1 %v10075_v32 }
 0x6a1   :  { %v7216_v48 = vpop.f32.mrf.mxu0 }
 0x6a3   :  { %v7217_v63 = vpop.f32.mrf.mxu0  ;;  %v7280_v42 = vpop.f32.mrf.mxu1 }
 0x6a4   :  { %v10123_v12 = vadd.f32 %v7217_v63, %v7216_v48 }
 0x6a5   :  { %v7219_v60 = vpop.f32.mrf.mxu0  ;;  %v7281_v38 = vpop.f32.mrf.mxu1 }
 0x6a6   :  { %v10132_v33 = vadd.f32 %v7281_v38, %v7280_v42 }
 0x6a7   :  { %v7220_v26 = vpop.f32.mrf.mxu0  ;;  %v7283_v34 = vpop.f32.mrf.mxu1 }
 0x6a8   :  { %v10121_v43 = vadd.f32 %v7220_v26, %v7219_v60 }
 0x6a9   :  { %v7222_v59 = vpop.f32.mrf.mxu0  ;;  %v7284_v31 = vpop.f32.mrf.mxu1 }
 0x6aa   :  { %v5390_v44 = vadd.f32 %v10121_v43, %v10123_v12  ;;  %v10135_v27 = vadd.f32 %v7284_v31, %v7283_v34 }
 0x6ab   :  { %v7223_v3 = vpop.f32.mrf.mxu0  ;;  %v7286_v39 = vpop.f32.mrf.mxu1 }
 0x6ac   :  { %v10125_v23 = vadd.f32 %v7223_v3, %v7222_v59 }
 0x6ad   :  { %v7225_v30 = vpop.f32.mrf.mxu0  ;;  %v7287_v29 = vpop.f32.mrf.mxu1 }
 0x6ae   :  { %v5391_v13 = vadd.f32 %v10125_v23, %v5390_v44  ;;  %v10138_v56 = vadd.f32 %v7287_v29, %v7286_v39 }
 0x6af   :  { %v7226_v40 = vpop.f32.mrf.mxu0  ;;  %v7289_v15 = vpop.f32.mrf.mxu1 }
 0x6b0   :  { %v10130_v55 = vadd.f32 %v7226_v40, %v7225_v30 }
 0x6b1   :  { %v7228_v5 = vpop.f32.mrf.mxu0  ;;  %v7290_v50 = vpop.f32.mrf.mxu1 }
 0x6b2   :  { %v5392_v32 = vadd.f32 %v10130_v55, %v5391_v13  ;;  %v10141_v8 = vadd.f32 %v7290_v50, %v7289_v15 }
 0x6b3   :  { %v7229_v36 = vpop.f32.mrf.mxu0  ;;  %v7292_v62 = vpop.f32.mrf.mxu1 }
 0x6b4   :  { %v5393_v20 = vadd.f32 %v10132_v33, %v5392_v32  ;;  %v10145_v4 = vadd.f32 %v7229_v36, %v7228_v5 }
 0x6b5   :  { %v7231_v11 = vpop.f32.mrf.mxu0  ;;  %v7293_v24 = vpop.f32.mrf.mxu1 }
 0x6b6   :  { %v5394_v16 = vadd.f32 %v10135_v27, %v5393_v20  ;;  %v10156_v25 = vadd.f32 %v7293_v24, %v7292_v62 }
 0x6b7   :  { %v7232_v53 = vpop.f32.mrf.mxu0  ;;  %v7295_v46 = vpop.f32.mrf.mxu1 }
 0x6b8   :  { %v5395_v6 = vadd.f32 %v10138_v56, %v5394_v16  ;;  %v10148_v7 = vadd.f32 %v7232_v53, %v7231_v11 }
 0x6b9   :  { %v7234_v45 = vpop.f32.mrf.mxu0  ;;  %v7296_v52 = vpop.f32.mrf.mxu1 }
 0x6ba   :  { %v5396_v58 = vadd.f32 %v10141_v8, %v5395_v6  ;;  %v10159_v18 = vadd.f32 %v7296_v52, %v7295_v46 }
 0x6bb   :  { %v7235_v37 = vpop.f32.mrf.mxu0  ;;  %v7298_v35 = vpop.f32.mrf.mxu1 }
 0x6bc   :  { %v5397_v14 = vadd.f32 %v10145_v4, %v5396_v58  ;;  %v10151_v47 = vadd.f32 %v7235_v37, %v7234_v45 }
 0x6bd   :  { %v7237_v61 = vpop.f32.mrf.mxu0  ;;  %v7299_v19 = vpop.f32.mrf.mxu1 }
 0x6be   :  { %v5398_v57 = vadd.f32 %v10148_v7, %v5397_v14  ;;  %v10162_v42 = vadd.f32 %v7299_v19, %v7298_v35 }
 0x6bf   :  { %v7238_v51 = vpop.f32.mrf.mxu0  ;;  %v7301_v54 = vpop.f32.mrf.mxu1 }
 0x6c0   :  { %v5399_v0 = vadd.f32 %v10151_v47, %v5398_v57  ;;  %v10154_v2 = vadd.f32 %v7238_v51, %v7237_v61 }
 0x6c1   :  { %v7240_v22 = vpop.f32.mrf.mxu0  ;;  %v7302_v1 = vpop.f32.mrf.mxu1 }
 0x6c2   :  { %v5400_v9 = vadd.f32 %v10154_v2, %v5399_v0  ;;  %v10165_v34 = vadd.f32 %v7302_v1, %v7301_v54 }
 0x6c3   :  { %v7241_v49 = vpop.f32.mrf.mxu0  ;;  %v7304_v21 = vpop.f32.mrf.mxu1 }
 0x6c4   :  { %v5401_v41 = vadd.f32 %v10156_v25, %v5400_v9  ;;  %v10169_v30 = vadd.f32 %v7241_v49, %v7240_v22 }
 0x6c5   :  { %v7243_v48 = vpop.f32.mrf.mxu0  ;;  %v7305_v63 = vpop.f32.mrf.mxu1 }
 0x6c6   :  { %v5402_v60 = vadd.f32 %v10159_v18, %v5401_v41  ;;  %v10180_v53 = vadd.f32 %v7305_v63, %v7304_v21 }
 0x6c7   :  { %v7244_v38 = vpop.f32.mrf.mxu0  ;;  %v7307_v26 = vpop.f32.mrf.mxu1 }
 0x6c8   :  { %v5403_v59 = vadd.f32 %v10162_v42, %v5402_v60  ;;  %v10172_v15 = vadd.f32 %v7244_v38, %v7243_v48 }
 0x6c9   :  { %v7246_v31 = vpop.f32.mrf.mxu0  ;;  %v7308_v3 = vpop.f32.mrf.mxu1 }
 0x6ca   :  { %v5404_v39 = vadd.f32 %v10165_v34, %v5403_v59  ;;  %v10183_v52 = vadd.f32 %v7308_v3, %v7307_v26 }
 0x6cb   :  { %v7247_v29 = vpop.f32.mrf.mxu0  ;;  %v7310_v44 = vpop.f32.mrf.mxu1 }
 0x6cc   :  { %v5405_v40 = vadd.f32 %v10169_v30, %v5404_v39  ;;  %v10175_v32 = vadd.f32 %v7247_v29, %v7246_v31 }
 0x6cd   :  { %v7249_v13 = vpop.f32.mrf.mxu0  ;;  %v7311_v5 = vpop.f32.mrf.mxu1 }
 0x6ce   :  { %v5406_v50 = vadd.f32 %v10172_v15, %v5405_v40  ;;  %v10186_v14 = vadd.f32 %v7311_v5, %v7310_v44 }
 0x6cf   :  { %v7250_v36 = vpop.f32.mrf.mxu0  ;;  %v7313_v62 = vpop.f32.mrf.mxu1 }
 0x6d0   :  { %v5407_v20 = vadd.f32 %v10175_v32, %v5406_v50  ;;  %v10178_v11 = vadd.f32 %v7250_v36, %v7249_v13 }
 0x6d1   :  { %v7252_v24 = vpop.f32.mrf.mxu0  ;;  %v7314_v16 = vpop.f32.mrf.mxu1 }
 0x6d2   :  { %v5408_v46 = vadd.f32 %v10178_v11, %v5407_v20  ;;  %v10189_v51 = vadd.f32 %v7314_v16, %v7313_v62 }
 0x6d3   :  { %v7253_v6 = vpop.f32.mrf.mxu0  ;;  %v7316_v45 = vpop.f32.mrf.mxu1 }
 0x6d4   :  { %v5409_v58 = vadd.f32 %v10180_v53, %v5408_v46  ;;  %v10193_v9 = vadd.f32 %v7253_v6, %v7252_v24 }
 0x6d5   :  { %v7255_v37 = vpop.f32.mrf.mxu0  ;;  %v7317_v35 = vpop.f32.mrf.mxu1 }
 0x6d6   :  { %v5410_v61 = vadd.f32 %v10183_v52, %v5409_v58  ;;  %v10204_v29 = vadd.f32 %v7317_v35, %v7316_v45 }
 0x6d7   :  { %v7256_v19 = vpop.f32.mrf.mxu0  ;;  %v7319_v57 = vpop.f32.mrf.mxu1 }
 0x6d8   :  { %v5411_v54 = vadd.f32 %v10186_v14, %v5410_v61  ;;  %v10196_v48 = vadd.f32 %v7256_v19, %v7255_v37 }
 0x6d9   :  { %v7258_v0 = vpop.f32.mrf.mxu0  ;;  %v7320_v22 = vpop.f32.mrf.mxu1 }
 0x6da   :  { %v5412_v1 = vadd.f32 %v10189_v51, %v5411_v54  ;;  %v10207_v40 = vadd.f32 %v7320_v22, %v7319_v57 }
 0x6db   :  { %v7259_v49 = vpop.f32.mrf.mxu0  ;;  %v7322_v21 = vpop.f32.mrf.mxu1 }
 0x6dc   :  { %v5413_v41 = vadd.f32 %v10193_v9, %v5412_v1  ;;  %v10199_v26 = vadd.f32 %v7259_v49, %v7258_v0 }
 0x6dd   :  { %v7261_v63 = vpop.f32.mrf.mxu0  ;;  %v7323_v60 = vpop.f32.mrf.mxu1 }
 0x6de   :  { %v5414_v38 = vadd.f32 %v10196_v48, %v5413_v41  ;;  %v10210_v50 = vadd.f32 %v7323_v60, %v7322_v21 }
 0x6df   :  { %v7262_v59 = vpop.f32.mrf.mxu0  ;;  %v7325_v39 = vpop.f32.mrf.mxu1 }
 0x6e0   :  { %v5415_v31 = vadd.f32 %v10199_v26, %v5414_v38  ;;  %v10202_v3 = vadd.f32 %v7262_v59, %v7261_v63 }
 0x6e1   :  { %v7326_v5 = vpop.f32.mrf.mxu1 }
 0x6e2   :  { %v5416_v44 = vadd.f32 %v10202_v3, %v5415_v31  ;;  %v10213_v62 = vadd.f32 %v7326_v5, %v7325_v39 }
 0x6e4   :  { %v5417_v13 = vadd.f32 %v10204_v29, %v5416_v44 }
 0x6e6   :  { %v5418_v36 = vadd.f32 %v10207_v40, %v5417_v13 }
 0x6e8   :  { %v5419_v20 = vadd.f32 %v10210_v50, %v5418_v36 }
 0x6ea   :  { %v5420_v24 = vadd.f32 %v10213_v62, %v5419_v20 }
 0x6ec   :  { %v5421_v16 = vrot.slane %v5420_v24, 4 }
 0x6ee   :  { %v5422_v46 = vadd.f32 %v5421_v16, %v5420_v24 }
 0x6f0   :  { %v5423_v6 = vrot.slane %v5422_v46, 2 }
 0x6f2   :  { %v5424_v45 = vadd.f32 %v5423_v6, %v5422_v46 }
 0x6f4   :  { %v5425_v58 = vrot.slane %v5424_v45, 1 }
 0x6f6   :  { %v5426_v37 = vadd.f32 %v5425_v58, %v5424_v45 }
 0x6f8   :  { %v10217_v35 = vmul.f32 0.00390625, %v5426_v37 }
 0x6fa   :  { %v10221_v61 = vsub.f32 %v10123_v12, %v10217_v35  ;;  %v10225_v19 = vsub.f32 %v10121_v43, %v10217_v35  ;;  %v10229_v57 = vsub.f32 %v10125_v23, %v10217_v35  ;;  %v10237_v22 = vsub.f32 %v10130_v55, %v10217_v35 }
 0x6fb   :  { %v10241_v12 = vsub.f32 %v10132_v33, %v10217_v35  ;;  %v10247_v23 = vsub.f32 %v10135_v27, %v10217_v35  ;;  %v10253_v55 = vsub.f32 %v10138_v56, %v10217_v35  ;;  %v10259_v63 = vsub.f32 %v10141_v8, %v10217_v35 }
 0x6fc   :  { %v5460_v54 = vmul.f32 %v10221_v61, %v10221_v61  ;;  %v5461_v0 = vmul.f32 %v10225_v19, %v10225_v19  ;;  %v5462_v43 = vmul.f32 %v10229_v57, %v10229_v57  ;;  %v5463_v49 = vmul.f32 %v10237_v22, %v10237_v22 }
 0x6fd   :  { %v5464_v33 = vmul.f32 %v10241_v12, %v10241_v12  ;;  %v5465_v27 = vmul.f32 %v10247_v23, %v10247_v23  ;;  %v10265_v38 = vsub.f32 %v10145_v4, %v10217_v35  ;;  %v5466_v56 = vmul.f32 %v10253_v55, %v10253_v55 }
 0x6fe   :  { %v5492_v1 = vadd.f32 %v5461_v0, %v5460_v54  ;;  %v10271_v31 = vsub.f32 %v10148_v7, %v10217_v35  ;;  %v5467_v8 = vmul.f32 %v10259_v63, %v10259_v63  ;;  %v10277_v44 = vsub.f32 %v10151_v47, %v10217_v35 }
 0x6ff   :  { %v5468_v4 = vmul.f32 %v10265_v38, %v10265_v38  ;;  %v10283_v5 = vsub.f32 %v10154_v2, %v10217_v35  ;;  %v10289_v20 = vsub.f32 %v10156_v25, %v10217_v35  ;;  %v10295_v16 = vsub.f32 %v10159_v18, %v10217_v35 }
 0x700   :  { %v5493_v21 = vadd.f32 %v5492_v1, %v5462_v43  ;;  %v5469_v7 = vmul.f32 %v10271_v31, %v10271_v31  ;;  %v5470_v47 = vmul.f32 %v10277_v44, %v10277_v44  ;;  %v10301_v6 = vsub.f32 %v10162_v42, %v10217_v35 }
 0x701   :  { %v5471_v2 = vmul.f32 %v10283_v5, %v10283_v5  ;;  %v5472_v25 = vmul.f32 %v10289_v20, %v10289_v20  ;;  %v10307_v58 = vsub.f32 %v10165_v34, %v10217_v35  ;;  %v5473_v18 = vmul.f32 %v10295_v16, %v10295_v16 }
 0x702   :  { %v5494_v41 = vadd.f32 %v5493_v21, %v5463_v49  ;;  %v10313_v54 = vsub.f32 %v10169_v30, %v10217_v35  ;;  %v5474_v42 = vmul.f32 %v10301_v6, %v10301_v6  ;;  %v10319_v43 = vsub.f32 %v10172_v15, %v10217_v35 }
 0x703   :  { %v5475_v34 = vmul.f32 %v10307_v58, %v10307_v58  ;;  %v10325_v49 = vsub.f32 %v10175_v32, %v10217_v35 }
 0x704   :  { %v5495_v60 = vadd.f32 %v5494_v41, %v5464_v33  ;;  %v5476_v30 = vmul.f32 %v10313_v54, %v10313_v54  ;;  %v10331_v33 = vsub.f32 %v10178_v11, %v10217_v35  ;;  %v5477_v15 = vmul.f32 %v10319_v43, %v10319_v43 }
 0x705   :  { %v5478_v32 = vmul.f32 %v10325_v49, %v10325_v49 }
 0x706   :  { %v5496_v59 = vadd.f32 %v5495_v60, %v5465_v27  ;;  %v10337_v27 = vsub.f32 %v10180_v53, %v10217_v35  ;;  %v5479_v11 = vmul.f32 %v10331_v33, %v10331_v33 }
 0x708   :  { %v5497_v39 = vadd.f32 %v5496_v59, %v5466_v56  ;;  %v10343_v56 = vsub.f32 %v10183_v52, %v10217_v35  ;;  %v5480_v53 = vmul.f32 %v10337_v27, %v10337_v27 }
 0x70a   :  { %v5498_v13 = vadd.f32 %v5497_v39, %v5467_v8  ;;  %v10349_v8 = vsub.f32 %v10186_v14, %v10217_v35  ;;  %v5481_v52 = vmul.f32 %v10343_v56, %v10343_v56 }
 0x70c   :  { %v5499_v36 = vadd.f32 %v5498_v13, %v5468_v4  ;;  %v10355_v4 = vsub.f32 %v10189_v51, %v10217_v35  ;;  %v5482_v14 = vmul.f32 %v10349_v8, %v10349_v8 }
 0x70e   :  { %v5500_v24 = vadd.f32 %v5499_v36, %v5469_v7  ;;  %v10361_v7 = vsub.f32 %v10193_v9, %v10217_v35  ;;  %v5455_v9 = vsub.f32 %v10202_v3, %v10217_v35  ;;  %v5459_v3 = vsub.f32 %v10213_v62, %v10217_v35 }
 0x710   :  { %v5501_v46 = vadd.f32 %v5500_v24, %v5470_v47  ;;  %v5453_v47 = vsub.f32 %v10196_v48, %v10217_v35  ;;  %v5483_v24 = vmul.f32 %v10355_v4, %v10355_v4 }
 0x712   :  { %v5502_v45 = vadd.f32 %v5501_v46, %v5471_v2  ;;  %v5454_v2 = vsub.f32 %v10199_v26, %v10217_v35  ;;  %v5484_v46 = vmul.f32 %v10361_v7, %v10361_v7  ;;  %v5458_v26 = vsub.f32 %v10210_v50, %v10217_v35 }
 0x714   :  { %v5503_v37 = vadd.f32 %v5502_v45, %v5472_v25  ;;  %v5485_v45 = vmul.f32 %v5453_v47, %v5453_v47  ;;  %v5486_v48 = vmul.f32 %v5454_v2, %v5454_v2 }
 0x716   :  { %v5504_v0 = vadd.f32 %v5503_v37, %v5473_v18  ;;  %v5456_v37 = vsub.f32 %v10204_v29, %v10217_v35  ;;  %v5491_v29 = vmul.f32 %v5459_v3, %v5459_v3 }
 0x718   :  { %v5505_v1 = vadd.f32 %v5504_v0, %v5474_v42  ;;  %v5457_v0 = vsub.f32 %v10207_v40, %v10217_v35 }
 0x71a   :  { %v5506_v21 = vadd.f32 %v5505_v1, %v5475_v34  ;;  %v5487_v34 = vmul.f32 %v5455_v9, %v5455_v9 }
 0x71c   :  { %v5507_v41 = vadd.f32 %v5506_v21, %v5476_v30  ;;  %v5488_v30 = vmul.f32 %v5456_v37, %v5456_v37 }
 0x71e   :  { %v5508_v60 = vadd.f32 %v5507_v41, %v5477_v15  ;;  %v5489_v15 = vmul.f32 %v5457_v0, %v5457_v0 }
 0x720   :  { %v5509_v59 = vadd.f32 %v5508_v60, %v5478_v32  ;;  %v5490_v32 = vmul.f32 %v5458_v26, %v5458_v26 }
 0x722   :  { %v5510_v39 = vadd.f32 %v5509_v59, %v5479_v11 }
 0x724   :  { %v5511_v13 = vadd.f32 %v5510_v39, %v5480_v53 }
 0x726   :  { %v5512_v36 = vadd.f32 %v5511_v13, %v5481_v52 }
 0x728   :  { %v5513_v51 = vadd.f32 %v5512_v36, %v5482_v14 }
 0x72a   :  { %v5514_v25 = vadd.f32 %v5513_v51, %v5483_v24 }
 0x72c   :  { %v5515_v18 = vadd.f32 %v5514_v25, %v5484_v46 }
 0x72e   :  { %v5516_v42 = vadd.f32 %v5515_v18, %v5485_v45 }
 0x730   :  { %v5517_v1 = vadd.f32 %v5516_v42, %v5486_v48 }
 0x732   :  { %v5518_v21 = vadd.f32 %v5517_v1, %v5487_v34 }
 0x734   :  { %v5519_v41 = vadd.f32 %v5518_v21, %v5488_v30 }
 0x736   :  { %v5520_v60 = vadd.f32 %v5519_v41, %v5489_v15 }
 0x738   :  { %v5521_v11 = vadd.f32 %v5520_v60, %v5490_v32 }
 0x73a   :  { %v5522_v59 = vadd.f32 %v5521_v11, %v5491_v29 }
 0x73c   :  { %v5523_v53 = vrot.slane %v5522_v59, 4 }
 0x73e   :  { %v5524_v39 = vadd.f32 %v5523_v53, %v5522_v59 }
 0x740   :  { %v5525_v40 = vrot.slane %v5524_v39, 2 }
 0x742   :  { %v5526_v52 = vadd.f32 %v5525_v40, %v5524_v39  ;;  %v6996_v39 = vld [vmem:[%s10846_s8] ss:$0 sm:$0xff] }
 0x744   :  { %v5527_v13 = vrot.slane %v5526_v52, 1 }
 0x746   :  { %v5528_v14 = vadd.f32 %v5527_v13, %v5526_v52 }
 0x748   :  { %v5529_v36 = vmul.f32 0.00390625, %v5528_v14 }
 0x74a   :  { %v5530_v50 = vadd.f32 1e-05, %v5529_v36 }
 0x74c   :  { %8051 = vrsqrt.f32 %v5530_v50 }
 0x759   :  { %v8052_v24 = vpop.eup %8051 }
 0x75a   :  { %v5532_v51 = vmul.f32 %v8052_v24, %v10221_v61  ;;  %v5533_v62 = vmul.f32 %v8052_v24, %v10225_v19  ;;  %v5534_v35 = vmul.f32 %v8052_v24, %v10229_v57  ;;  %v5535_v46 = vmul.f32 %v8052_v24, %v10237_v22 }
 0x75b   :  { %v5536_v25 = vmul.f32 %v8052_v24, %v10241_v12  ;;  %v5537_v45 = vmul.f32 %v8052_v24, %v10247_v23  ;;  %v5538_v18 = vmul.f32 %v8052_v24, %v10253_v55  ;;  %v5539_v48 = vmul.f32 %v8052_v24, %v10259_v63 }
 0x75c   :  { %v5540_v42 = vmul.f32 %v8052_v24, %v10265_v38  ;;  %v5541_v34 = vmul.f32 %v8052_v24, %v10271_v31  ;;  %v5542_v61 = vmul.f32 %v8052_v24, %v10277_v44  ;;  %v5543_v19 = vmul.f32 %v8052_v24, %v10283_v5  ;;  %v6995_v44 = vld [vmem:[%s10845_s7] ss:$0 sm:$0xff] }
 0x75d   :  { %v5544_v57 = vmul.f32 %v8052_v24, %v10289_v20  ;;  %v5545_v22 = vmul.f32 %v8052_v24, %v10295_v16  ;;  %v5546_v12 = vmul.f32 %v8052_v24, %v10301_v6  ;;  %v5547_v23 = vmul.f32 %v8052_v24, %v10307_v58 }
 0x75e   :  { %v5548_v55 = vmul.f32 %v8052_v24, %v10313_v54  ;;  %v5549_v63 = vmul.f32 %v8052_v24, %v10319_v43  ;;  %v5550_v38 = vmul.f32 %v8052_v24, %v10325_v49  ;;  %v5551_v31 = vmul.f32 %v8052_v24, %v10331_v33 }
 0x75f   :  { %v5552_v5 = vmul.f32 %v8052_v24, %v10337_v27  ;;  %v5553_v20 = vmul.f32 %v8052_v24, %v10343_v56  ;;  %v5554_v16 = vmul.f32 %v8052_v24, %v10349_v8  ;;  %v5555_v6 = vmul.f32 %v8052_v24, %v10355_v4 }
 0x760   :  { %v5556_v58 = vmul.f32 %v8052_v24, %v10361_v7  ;;  %v5557_v54 = vmul.f32 %v8052_v24, %v5453_v47  ;;  %v5558_v43 = vmul.f32 %v8052_v24, %v5454_v2  ;;  %v5559_v1 = vmul.f32 %v8052_v24, %v5455_v9 }
 0x761   :  { %v5560_v49 = vmul.f32 %v8052_v24, %v5456_v37  ;;  %v5561_v30 = vmul.f32 %v8052_v24, %v5457_v0  ;;  %v5562_v33 = vmul.f32 %v8052_v24, %v5458_v26  ;;  %v5563_v21 = vmul.f32 %v8052_v24, %v5459_v3 }
 0x762   :  { %v5570_v15 = vmul.f32 %v6995_v44, %v5532_v51  ;;  %v5571_v41 = vmul.f32 %v6995_v44, %v5533_v62  ;;  %v5572_v32 = vmul.f32 %v6995_v44, %v5534_v35  ;;  %v5573_v60 = vmul.f32 %v6995_v44, %v5535_v46 }
 0x763   :  { %v5574_v27 = vmul.f32 %v6995_v44, %v5536_v25  ;;  %v5575_v29 = vmul.f32 %v6995_v44, %v5537_v45  ;;  %v5576_v56 = vmul.f32 %v6995_v44, %v5538_v18  ;;  %v5577_v11 = vmul.f32 %v6995_v44, %v5539_v48 }
 0x764   :  { %v5578_v8 = vmul.f32 %v6995_v44, %v5540_v42  ;;  %v5579_v59 = vmul.f32 %v6995_v44, %v5541_v34  ;;  %v5580_v4 = vmul.f32 %v6995_v44, %v5542_v61  ;;  %v5581_v53 = vmul.f32 %v6995_v44, %v5543_v19 }
 0x765   :  { %v5582_v7 = vmul.f32 %v6995_v44, %v5544_v57  ;;  %v5583_v47 = vmul.f32 %v6995_v44, %v5545_v22  ;;  %v5584_v2 = vmul.f32 %v6995_v44, %v5546_v12  ;;  %v5585_v9 = vmul.f32 %v6995_v44, %v5547_v23 }
 0x766   :  { %v5586_v37 = vmul.f32 %v6995_v44, %v5548_v55  ;;  %v5587_v0 = vmul.f32 %v6995_v44, %v5549_v63  ;;  %v5588_v26 = vmul.f32 %v6995_v44, %v5550_v38  ;;  %v5589_v3 = vmul.f32 %v6995_v44, %v5551_v31 }
 0x767   :  { %v5590_v40 = vmul.f32 %v6995_v44, %v5552_v5  ;;  %v5591_v52 = vmul.f32 %v6995_v44, %v5553_v20  ;;  %v5592_v13 = vmul.f32 %v6995_v44, %v5554_v16  ;;  %v5593_v14 = vmul.f32 %v6995_v44, %v5555_v6 }
 0x768   :  { %v5594_v36 = vmul.f32 %v6995_v44, %v5556_v58  ;;  %v5595_v50 = vmul.f32 %v6995_v44, %v5557_v54  ;;  %v5596_v24 = vmul.f32 %v6995_v44, %v5558_v43  ;;  %v5597_v51 = vmul.f32 %v6995_v44, %v5559_v1 }
 0x769   :  { %v5598_v62 = vmul.f32 %v6995_v44, %v5560_v49  ;;  %v5599_v35 = vmul.f32 %v6995_v44, %v5561_v30  ;;  %v5600_v46 = vmul.f32 %v6995_v44, %v5562_v33  ;;  %v5601_v25 = vmul.f32 %v6995_v44, %v5563_v21 }
 0x76a   :  { %v10414_v45 = vadd.f32 %v6996_v39, %v5570_v15  ;;  %v10416_v18 = vadd.f32 %v6996_v39, %v5571_v41  ;;  %v10418_v48 = vadd.f32 %v6996_v39, %v5572_v32  ;;  %v10420_v42 = vadd.f32 %v6996_v39, %v5573_v60 }
 0x76b   :  { %v10422_v34 = vadd.f32 %v6996_v39, %v5574_v27  ;;  %v10424_v61 = vadd.f32 %v6996_v39, %v5575_v29  ;;  %v10426_v19 = vadd.f32 %v6996_v39, %v5576_v56  ;;  %v10428_v57 = vadd.f32 %v6996_v39, %v5577_v11 }
 0x76c   :  { %v10430_v22 = vadd.f32 %v6996_v39, %v5578_v8  ;;  %v10432_v12 = vadd.f32 %v6996_v39, %v5579_v59  ;;  %v10434_v23 = vadd.f32 %v6996_v39, %v5580_v4  ;;  %v10436_v55 = vadd.f32 %v6996_v39, %v5581_v53 }
 0x76d   :  { %v10438_v63 = vadd.f32 %v6996_v39, %v5582_v7  ;;  %v10440_v38 = vadd.f32 %v6996_v39, %v5583_v47  ;;  %v10442_v31 = vadd.f32 %v6996_v39, %v5584_v2  ;;  %v10444_v44 = vadd.f32 %v6996_v39, %v5585_v9 }
 0x76e   :  { %v10446_v5 = vadd.f32 %v6996_v39, %v5586_v37  ;;  %v10448_v20 = vadd.f32 %v6996_v39, %v5587_v0  ;;  %v10450_v16 = vadd.f32 %v6996_v39, %v5588_v26  ;;  %v10452_v6 = vadd.f32 %v6996_v39, %v5589_v3 }
 0x76f   :  { %v10454_v58 = vadd.f32 %v6996_v39, %v5590_v40  ;;  %v10456_v54 = vadd.f32 %v6996_v39, %v5591_v52  ;;  %v10458_v43 = vadd.f32 %v6996_v39, %v5592_v13  ;;  %v10460_v1 = vadd.f32 %v6996_v39, %v5593_v14 }
 0x770   :  { %v10462_v49 = vadd.f32 %v6996_v39, %v5594_v36  ;;  %v10464_v30 = vadd.f32 %v6996_v39, %v5595_v50  ;;  %v10466_v33 = vadd.f32 %v6996_v39, %v5596_v24  ;;  %v10468_v21 = vadd.f32 %v6996_v39, %v5597_v51 }
 0x771   :  { %v10470_v15 = vadd.f32 %v6996_v39, %v5598_v62  ;;  %v10472_v41 = vadd.f32 %v6996_v39, %v5599_v35  ;;  %v10474_v32 = vadd.f32 %v6996_v39, %v5600_v46  ;;  %v10476_v60 = vadd.f32 %v6996_v39, %v5601_v25 }
 0x772   :  { %v5640_v27 = vmax.f32 %v10414_v45, 0.0  ;;  %v5641_v29 = vmax.f32 %v10416_v18, 0.0  ;;  %v5642_v56 = vmax.f32 %v10418_v48, 0.0  ;;  %v5643_v11 = vmax.f32 %v10420_v42, 0.0 }
 0x773   :  { %v5644_v8 = vmax.f32 %v10422_v34, 0.0  ;;  %v5645_v59 = vmax.f32 %v10424_v61, 0.0  ;;  %v5646_v4 = vmax.f32 %v10426_v19, 0.0  ;;  %v5647_v53 = vmax.f32 %v10428_v57, 0.0 }
 0x774   :  { %v5648_v7 = vmax.f32 %v10430_v22, 0.0  ;;  %v5649_v47 = vmax.f32 %v10432_v12, 0.0  ;;  %v5650_v2 = vmax.f32 %v10434_v23, 0.0  ;;  %v5651_v9 = vmax.f32 %v10436_v55, 0.0 }
 0x775   :  { %v5652_v37 = vmax.f32 %v10438_v63, 0.0  ;;  %v5653_v0 = vmax.f32 %v10440_v38, 0.0  ;;  %v5654_v26 = vmax.f32 %v10442_v31, 0.0  ;;  %v5655_v3 = vmax.f32 %v10444_v44, 0.0 }
 0x776   :  { %v5656_v39 = vmax.f32 %v10446_v5, 0.0  ;;  %v5657_v40 = vmax.f32 %v10448_v20, 0.0  ;;  %v5658_v52 = vmax.f32 %v10450_v16, 0.0  ;;  %v5659_v13 = vmax.f32 %v10452_v6, 0.0 }
 0x777   :  { %v5660_v14 = vmax.f32 %v10454_v58, 0.0  ;;  %v5661_v36 = vmax.f32 %v10456_v54, 0.0  ;;  %v5662_v50 = vmax.f32 %v10458_v43, 0.0  ;;  %v5663_v24 = vmax.f32 %v10460_v1, 0.0 }
 0x778   :  { %v5664_v51 = vmax.f32 %v10462_v49, 0.0  ;;  %v5665_v62 = vmax.f32 %v10464_v30, 0.0  ;;  %v5666_v35 = vmax.f32 %v10466_v33, 0.0  ;;  %v5667_v46 = vmax.f32 %v10468_v21, 0.0 }
 0x779   :  { %v5668_v25 = vmax.f32 %v10470_v15, 0.0  ;;  %v5669_v45 = vmax.f32 %v10472_v41, 0.0  ;;  %v5670_v18 = vmax.f32 %v10474_v32, 0.0  ;;  %v5671_v48 = vmax.f32 %v10476_v60, 0.0 }
 0x77a   :  { %v5684_v42 = vrot.slane %v5640_v27, 2  ;;  %v5685_v34 = vrot.slane %v5641_v29, 2  ;;  %v5686_v61 = vrot.slane %v5642_v56, 2  ;;  %v5687_v19 = vrot.slane %v5643_v11, 2 }
 0x77b   :  { %v5672_v57 = vrot.slane %v5668_v25, 6  ;;  %v5673_v22 = vrot.slane %v5669_v45, 6  ;;  %v5674_v12 = vrot.slane %v5670_v18, 6  ;;  %v5675_v23 = vrot.slane %v5671_v48, 6 }
 0x77c   :  { %v10512_v55 = vsel %vm1693_vm3, %v5686_v61, %v5687_v19  ;;  %v10516_v63 = vsel %vm1693_vm3, %v5685_v34, %v5686_v61  ;;  %v10520_v38 = vsel %vm1693_vm3, %v5684_v42, %v5685_v34  ;;  %v10524_v31 = vsel %vm1693_vm3, %v5687_v19, %v5684_v42 }
 0x77d   :  { %v10528_v44 = vsel %vm1637_vm2, %v5674_v12, %v5675_v23  ;;  %v10532_v5 = vsel %vm1637_vm2, %v5673_v22, %v5674_v12  ;;  %v5678_v20 = vsel %vm1637_vm2, %v5672_v57, %v5673_v22  ;;  %v5679_v16 = vsel %vm1637_vm2, %v5675_v23, %v5672_v57 }
 0x77e   :  { %v10538_v6 = vpack.c.bf16 %v5641_v29, %v5640_v27  ;;  %v10540_v58 = vpack.c.bf16 %v5643_v11, %v5642_v56  ;;  %v10542_v54 = vpack.c.bf16 %v5645_v59, %v5644_v8  ;;  %v10544_v43 = vpack.c.bf16 %v5647_v53, %v5646_v4 }
 0x77f   :  { %v10546_v1 = vpack.c.bf16 %v5649_v47, %v5648_v7  ;;  %v10548_v49 = vpack.c.bf16 %v5651_v9, %v5650_v2  ;;  %v10550_v30 = vpack.c.bf16 %v5653_v0, %v5652_v37  ;;  %v10552_v33 = vpack.c.bf16 %v5655_v3, %v5654_v26 }
 0x780   :  { %v10554_v21 = vpack.c.bf16 %v5657_v40, %v5656_v39  ;;  %v10556_v10 = vpack.c.bf16 %v5659_v13, %v5658_v52  ;;  %v10558_v15 = vpack.c.bf16 %v5661_v36, %v5660_v14  ;;  %v10560_v41 = vpack.c.bf16 %v5663_v24, %v5662_v50 }
 0x781   :  { %v10562_v32 = vpack.c.bf16 %v5665_v62, %v5664_v51  ;;  %v10564_v60 = vpack.c.bf16 %v5667_v46, %v5666_v35  ;;  %v10566_v27 = vpack.c.bf16 %v5669_v45, %v5668_v25  ;;  %v10568_v29 = vpack.c.bf16 %v5671_v48, %v5670_v18 }
 0x782   :  { %v5713_v56 = vpack.c.bf16 %v10528_v44, %v10532_v5  ;;  %v5714_v11 = vpack.c.bf16 %v10516_v63, %v10520_v38 }
 0x783   :  { %8301 = dma.done.wait [#allocation7 + $0x4], 4096 }
 0x784   :  { %8302 = vsyncadd [#allocation7 + $0x4], 4294963200  ;;  %v7014_v8 = vpack.c.bf16 %v5678_v20, %v5679_v16  ;;  %6168 = vmatprep.mubr.bf16.mxu1 %v10542_v54  ;;  %v8053_v59 = vld [vmem:[#allocation6 + $0x78] sm:$0xff]   ;;  %v8057_v47 = vld [vmem:[#allocation6 + $0x70] sm:$0xff]   ;;  %v7033_v57 = vpack.c.bf16 %v10524_v31, %v10512_v55 }
 0x785   :  { %v8054_v4 = vld [vmem:[#allocation6 + $0xf8] sm:$0xff]   ;;  %7328 = vmatprep.subr.bf16.mxu0 %v8053_v59  ;;  %v8058_v2 = vld [vmem:[#allocation6 + $0xf0] sm:$0xff]   ;;  %v8061_v0 = vld [vmem:[#allocation6 + $0x68] sm:$0xff]  }
 0x786   :  { %7015 = vmatprep.mubr.msk.bf16.mxu0 %vm9624_vm5, %v7014_v8  ;;  %v8055_v53 = vld [vmem:[#allocation6 + $0x38] sm:$0xff]   ;;  %7440 = vmatprep.subr.bf16.mxu1 %v8054_v4  ;;  %v8059_v9 = vld [vmem:[#allocation6 + $0x30] sm:$0xff]   ;;  %v8062_v26 = vld [vmem:[#allocation6 + $0xe8] sm:$0xff]  }
 0x787   :  { %v8056_v7 = vld [vmem:[#allocation6 + $0xb8] sm:$0xff]   ;;  %7329 = vmatpush3.bf16.msra.mxu0 %v8055_v53  ;;  %v8060_v37 = vld [vmem:[#allocation6 + $0xb0] sm:$0xff]   ;;  %v8063_v28 = vld [vmem:[#allocation6 + $0x28] sm:$0xff]  }
 0x788   :  { %7441 = vmatpush3.bf16.msra.mxu1 %v8056_v7  ;;  %7330 = vmatprep.subr.bf16.mxu0 %v8057_v47  ;;  %v8064_v3 = vld [vmem:[#allocation6 + $0xa8] sm:$0xff]   ;;  %v8065_v39 = vld [vmem:[#allocation6 + $0x60] sm:$0xff]   ;;  %v8069_v14 = vld [vmem:[#allocation6 + $0x58] sm:$0xff]  }
 0x789   :  { %7442 = vmatprep.subr.bf16.mxu1 %v8058_v2  ;;  %v8066_v40 = vld [vmem:[#allocation6 + $0xe0] sm:$0xff]   ;;  %v8070_v36 = vld [vmem:[#allocation6 + $0xd8] sm:$0xff]   ;;  %v8073_v51 = vld [vmem:[#allocation6 + $0x50] sm:$0xff]  }
 0x78a   :  { %v8067_v52 = vld [vmem:[#allocation6 + $0x20] sm:$0xff]   ;;  %v8071_v50 = vld [vmem:[#allocation6 + $0x18] sm:$0xff]   ;;  %v8074_v62 = vld [vmem:[#allocation6 + $0xd0] sm:$0xff]  }
 0x78b   :  { %7331 = vmatpush3.bf16.msra.mxu0 %v8059_v9  ;;  %v8068_v13 = vld [vmem:[#allocation6 + $0xa0] sm:$0xff]   ;;  %v8072_v24 = vld [vmem:[#allocation6 + $0x98] sm:$0xff]   ;;  %v8075_v35 = vld [vmem:[#allocation6 + $0x10] sm:$0xff]  }
 0x78c   :  { %7443 = vmatpush3.bf16.msra.mxu1 %v8060_v37  ;;  %7332 = vmatprep.subr.bf16.mxu0 %v8061_v0  ;;  %v8076_v46 = vld [vmem:[#allocation6 + $0x90] sm:$0xff]   ;;  %v8077_v25 = vld [vmem:[#allocation6 + $0x48] sm:$0xff]   ;;  %v8081_v42 = vld [vmem:[#allocation6 + $0x40] sm:$0xff]  }
 0x78d   :  { %7444 = vmatprep.subr.bf16.mxu1 %v8062_v26  ;;  %v8078_v45 = vld [vmem:[#allocation6 + $0xc8] sm:$0xff]   ;;  %v8082_v34 = vld [vmem:[#allocation6 + $0xc0] sm:$0xff]  }
 0x78e   :  { %v8079_v18 = vld [vmem:[#allocation6 + $0x8] sm:$0xff]   ;;  %v8083_v61 = vld [vmem:[#allocation6] sm:$0xff]  }
 0x78f   :  { %7333 = vmatpush3.bf16.msra.mxu0 %v8063_v28  ;;  %v8080_v48 = vld [vmem:[#allocation6 + $0x88] sm:$0xff]   ;;  %v8084_v19 = vld [vmem:[#allocation6 + $0x80] sm:$0xff]  }
 0x790   :  { %7445 = vmatpush3.bf16.msra.mxu1 %v8064_v3  ;;  %7334 = vmatprep.subr.bf16.mxu0 %v8065_v39 }
 0x791   :  { %7446 = vmatprep.subr.bf16.mxu1 %v8066_v40 }
 0x793   :  { %7335 = vmatpush3.bf16.msra.mxu0 %v8067_v52 }
 0x794   :  { %7447 = vmatpush3.bf16.msra.mxu1 %v8068_v13  ;;  %7336 = vmatprep.subr.bf16.mxu0 %v8069_v14 }
 0x795   :  { %7448 = vmatprep.subr.bf16.mxu1 %v8070_v36 }
 0x797   :  { %7337 = vmatpush3.bf16.msra.mxu0 %v8071_v50 }
 0x798   :  { %7449 = vmatpush3.bf16.msra.mxu1 %v8072_v24  ;;  %7338 = vmatprep.subr.bf16.mxu0 %v8073_v51 }
 0x799   :  { %7450 = vmatprep.subr.bf16.mxu1 %v8074_v62 }
 0x79b   :  { %7339 = vmatpush3.bf16.msra.mxu0 %v8075_v35 }
 0x79c   :  { %7451 = vmatpush3.bf16.msra.mxu1 %v8076_v46  ;;  %7340 = vmatprep.subr.bf16.mxu0 %v8077_v25 }
 0x79d   :  { %7452 = vmatprep.subr.bf16.mxu1 %v8078_v45 }
 0x79f   :  { %7341 = vmatpush3.bf16.msra.mxu0 %v8079_v18 }
 0x7a0   :  { %7453 = vmatpush3.bf16.msra.mxu1 %v8080_v48  ;;  %7342 = vmatprep.subr.bf16.mxu0 %v8081_v42 }
 0x7a1   :  { %7454 = vmatprep.subr.bf16.mxu1 %v8082_v34 }
 0x7a3   :  { %7343 = vmatpush3.bf16.msra.mxu0 %v8083_v61 }
 0x7a4   :  { %7455 = vmatpush3.bf16.msra.mxu1 %v8084_v19 }
 0x7a6   :  { %5879 = vmatmul.mubr.bf16.vlgmr.msra.gmra.mxu0 %v10538_v6 }
 0x7a7   :  { %6169 = vmatmul.mubr.bf16.vlgmr.msra.gmra.mxu1 %v10538_v6  ;;  %5886 = vmatprep.mubr.bf16.mxu0 %v5713_v56 }
 0x7a8   :  { %6176 = vmatprep.mubr.bf16.mxu1 %v10544_v43 }
 0x7ae   :  { %5887 = vmatmul.mubr.bf16.gmra.mxu0 %v10540_v58 }
 0x7af   :  { %6177 = vmatmul.mubr.bf16.gmra.mxu1 %v10540_v58  ;;  %5894 = vmatprep.mubr.bf16.mxu0 %v10538_v6 }
 0x7b0   :  { %6184 = vmatprep.mubr.bf16.mxu1 %v10546_v1 }
 0x7b6   :  { %5895 = vmatmul.mubr.bf16.gmra.mxu0 %v10542_v54 }
 0x7b7   :  { %6185 = vmatmul.mubr.bf16.gmra.mxu1 %v10542_v54  ;;  %5902 = vmatprep.mubr.bf16.mxu0 %v10540_v58 }
 0x7b8   :  { %6192 = vmatprep.mubr.bf16.mxu1 %v10548_v49 }
 0x7be   :  { %5903 = vmatmul.mubr.bf16.gmra.mxu0 %v10544_v43 }
 0x7bf   :  { %6193 = vmatmul.mubr.bf16.gmra.mxu1 %v10544_v43  ;;  %5910 = vmatprep.mubr.bf16.mxu0 %v10542_v54 }
 0x7c0   :  { %6200 = vmatprep.mubr.bf16.mxu1 %v10550_v30 }
 0x7c6   :  { %5911 = vmatmul.mubr.bf16.gmra.mxu0 %v10546_v1 }
 0x7c7   :  { %6201 = vmatmul.mubr.bf16.gmra.mxu1 %v10546_v1  ;;  %5918 = vmatprep.mubr.bf16.mxu0 %v10544_v43 }
 0x7c8   :  { %6208 = vmatprep.mubr.bf16.mxu1 %v10552_v33 }
 0x7ce   :  { %5919 = vmatmul.mubr.bf16.gmra.mxu0 %v10548_v49 }
 0x7cf   :  { %6209 = vmatmul.mubr.bf16.gmra.mxu1 %v10548_v49  ;;  %5926 = vmatprep.mubr.bf16.mxu0 %v10546_v1 }
 0x7d0   :  { %6216 = vmatprep.mubr.bf16.mxu1 %v10554_v21 }
 0x7d6   :  { %5927 = vmatmul.mubr.bf16.gmra.mxu0 %v10550_v30 }
 0x7d7   :  { %6217 = vmatmul.mubr.bf16.gmra.mxu1 %v10550_v30  ;;  %5934 = vmatprep.mubr.bf16.mxu0 %v10548_v49 }
 0x7d8   :  { %6224 = vmatprep.mubr.bf16.mxu1 %v10556_v10 }
 0x7de   :  { %5935 = vmatmul.mubr.bf16.gmra.mxu0 %v10552_v33 }
 0x7df   :  { %6225 = vmatmul.mubr.bf16.gmra.mxu1 %v10552_v33  ;;  %5942 = vmatprep.mubr.bf16.mxu0 %v10550_v30 }
 0x7e0   :  { %6232 = vmatprep.mubr.bf16.mxu1 %v10558_v15 }
 0x7e6   :  { %5943 = vmatmul.mubr.bf16.gmra.mxu0 %v10554_v21 }
 0x7e7   :  { %6233 = vmatmul.mubr.bf16.gmra.mxu1 %v10554_v21  ;;  %5950 = vmatprep.mubr.bf16.mxu0 %v10552_v33 }
 0x7e8   :  { %6240 = vmatprep.mubr.bf16.mxu1 %v10560_v41 }
 0x7ee   :  { %5951 = vmatmul.mubr.bf16.gmra.mxu0 %v10556_v10 }
 0x7ef   :  { %6241 = vmatmul.mubr.bf16.gmra.mxu1 %v10556_v10  ;;  %5958 = vmatprep.mubr.bf16.mxu0 %v10554_v21 }
 0x7f0   :  { %6248 = vmatprep.mubr.bf16.mxu1 %v10562_v32 }
 0x7f6   :  { %5959 = vmatmul.mubr.bf16.gmra.mxu0 %v10558_v15 }
 0x7f7   :  { %6249 = vmatmul.mubr.bf16.gmra.mxu1 %v10558_v15  ;;  %5966 = vmatprep.mubr.bf16.mxu0 %v10556_v10 }
 0x7f8   :  { %6256 = vmatprep.mubr.bf16.mxu1 %v10564_v60 }
 0x7fe   :  { %5967 = vmatmul.mubr.bf16.gmra.mxu0 %v10560_v41 }
 0x7ff   :  { %6257 = vmatmul.mubr.bf16.gmra.mxu1 %v10560_v41  ;;  %5974 = vmatprep.mubr.bf16.mxu0 %v10558_v15 }
 0x800   :  { %6264 = vmatprep.mubr.bf16.mxu1 %v10566_v27 }
 0x806   :  { %5975 = vmatmul.mubr.bf16.gmra.mxu0 %v10562_v32 }
 0x807   :  { %6265 = vmatmul.mubr.bf16.gmra.mxu1 %v10562_v32  ;;  %5982 = vmatprep.mubr.bf16.mxu0 %v10560_v41 }
 0x808   :  { %6272 = vmatprep.mubr.bf16.mxu1 %v10568_v29 }
 0x80e   :  { %5983 = vmatmul.mubr.bf16.gmra.mxu0 %v10564_v60 }
 0x80f   :  { %6273 = vmatmul.mubr.bf16.gmra.mxu1 %v10564_v60  ;;  %5990 = vmatprep.mubr.bf16.mxu0 %v10562_v32 }
 0x810   :  { %6280 = vmatprep.mubr.bf16.mxu1 %v5714_v11 }
 0x816   :  { %5991 = vmatmul.mubr.bf16.gmra.mxu0 %v10566_v27 }
 0x817   :  { %6281 = vmatmul.mubr.bf16.gmra.mxu1 %v10566_v27  ;;  %5998 = vmatprep.mubr.bf16.mxu0 %v10564_v60 }
 0x818   :  { %7034 = vmatprep.mubr.msk.bf16.mxu1 %vm9673_vm6, %v7033_v57 }
 0x81e   :  { %5999 = vmatmul.mubr.bf16.gmra.mxu0 %v10568_v29 }
 0x81f   :  { %6289 = vmatmul.mubr.bf16.gmra.mxu1 %v10568_v29 }
 0x866   :  { %v7344_v22 = vpop.f32.mrf.mxu0 }
 0x867   :  { %v7456_v12 = vpop.f32.mrf.mxu1 }
 0x868   :  { %v7345_v23 = vpop.f32.mrf.mxu0 }
 0x869   :  { %v7346_v63 = vadd.f32 %v7345_v23, %v7344_v22  ;;  %v7457_v38 = vpop.f32.mrf.mxu1 }
 0x86a   :  { %v7458_v44 = vadd.f32 %v7457_v38, %v7456_v12  ;;  %v7347_v55 = vpop.f32.mrf.mxu0 }
 0x86b   :  { %8085 = vtanh.f32 %v7346_v63  ;;  %v7459_v31 = vpop.f32.mrf.mxu1 }
 0x86c   :  { %8087 = vtanh.f32 %v7458_v44  ;;  %v7348_v5 = vpop.f32.mrf.mxu0 }
 0x86d   :  { %v7349_v20 = vadd.f32 %v7348_v5, %v7347_v55  ;;  %v7460_v16 = vpop.f32.mrf.mxu1 }
 0x86e   :  { %v7461_v6 = vadd.f32 %v7460_v16, %v7459_v31  ;;  %v7350_v17 = vpop.f32.mrf.mxu0 }
 0x86f   :  { %8089 = vtanh.f32 %v7349_v20  ;;  %v7462_v58 = vpop.f32.mrf.mxu1 }
 0x870   :  { %8091 = vtanh.f32 %v7461_v6  ;;  %v7351_v54 = vpop.f32.mrf.mxu0 }
 0x871   :  { %v7352_v43 = vadd.f32 %v7351_v54, %v7350_v17  ;;  %v7463_v1 = vpop.f32.mrf.mxu1 }
 0x872   :  { %v7464_v49 = vadd.f32 %v7463_v1, %v7462_v58  ;;  %v7353_v30 = vpop.f32.mrf.mxu0 }
 0x873   :  { %8093 = vtanh.f32 %v7352_v43  ;;  %v7465_v33 = vpop.f32.mrf.mxu1 }
 0x874   :  { %8095 = vtanh.f32 %v7464_v49  ;;  %v7354_v21 = vpop.f32.mrf.mxu0 }
 0x875   :  { %v7355_v10 = vadd.f32 %v7354_v21, %v7353_v30  ;;  %v7466_v15 = vpop.f32.mrf.mxu1 }
 0x876   :  { %v7467_v41 = vadd.f32 %v7466_v15, %v7465_v33  ;;  %v7356_v32 = vpop.f32.mrf.mxu0 }
 0x877   :  { %8097 = vtanh.f32 %v7355_v10  ;;  %v7468_v60 = vpop.f32.mrf.mxu1 }
 0x878   :  { %v8086_v27 = vpop.eup %8085  ;;  %8099 = vtanh.f32 %v7467_v41  ;;  %v7357_v29 = vpop.f32.mrf.mxu0 }
 0x879   :  { %v8088_v56 = vpop.eup %8087  ;;  %6329 = vst [vmem:[%s10852_s14] sm:$0xff] %v8086_v27  ;;  %v7358_v11 = vadd.f32 %v7357_v29, %v7356_v32  ;;  %v7469_v8 = vpop.f32.mrf.mxu1 }
 0x87a   :  { %6393 = vst [vmem:[%s10852_s14 + $0x100] sm:$0xff] %v8088_v56  ;;  %v7470_v59 = vadd.f32 %v7469_v8, %v7468_v60  ;;  %v7359_v4 = vpop.f32.mrf.mxu0 }
 0x87b   :  { %8101 = vtanh.f32 %v7358_v11  ;;  %v7471_v53 = vpop.f32.mrf.mxu1 }
 0x87c   :  { %v8090_v7 = vpop.eup %8089  ;;  %8103 = vtanh.f32 %v7470_v59  ;;  %v7360_v47 = vpop.f32.mrf.mxu0 }
 0x87d   :  { %v8092_v2 = vpop.eup %8091  ;;  %6330 = vst [vmem:[%s10852_s14 + $0x8] sm:$0xff] %v8090_v7  ;;  %v7361_v9 = vadd.f32 %v7360_v47, %v7359_v4  ;;  %v7472_v37 = vpop.f32.mrf.mxu1 }
 0x87e   :  { %6394 = vst [vmem:[%s10852_s14 + $0x108] sm:$0xff] %v8092_v2  ;;  %v7473_v0 = vadd.f32 %v7472_v37, %v7471_v53  ;;  %v7362_v26 = vpop.f32.mrf.mxu0 }
 0x87f   :  { %8105 = vtanh.f32 %v7361_v9  ;;  %v7474_v28 = vpop.f32.mrf.mxu1 }
 0x880   :  { %v8094_v3 = vpop.eup %8093  ;;  %8107 = vtanh.f32 %v7473_v0  ;;  %v7363_v39 = vpop.f32.mrf.mxu0 }
 0x881   :  { %v8096_v40 = vpop.eup %8095  ;;  %6331 = vst [vmem:[%s10852_s14 + $0x10] sm:$0xff] %v8094_v3  ;;  %v7364_v52 = vadd.f32 %v7363_v39, %v7362_v26  ;;  %v7475_v13 = vpop.f32.mrf.mxu1 }
 0x882   :  { %6395 = vst [vmem:[%s10852_s14 + $0x110] sm:$0xff] %v8096_v40  ;;  %v7476_v14 = vadd.f32 %v7475_v13, %v7474_v28  ;;  %v7365_v36 = vpop.f32.mrf.mxu0 }
 0x883   :  { %8109 = vtanh.f32 %v7364_v52  ;;  %v7477_v50 = vpop.f32.mrf.mxu1 }
 0x884   :  { %v8098_v24 = vpop.eup %8097  ;;  %8111 = vtanh.f32 %v7476_v14  ;;  %v7366_v51 = vpop.f32.mrf.mxu0 }
 0x885   :  { %v8100_v62 = vpop.eup %8099  ;;  %6332 = vst [vmem:[%s10852_s14 + $0x18] sm:$0xff] %v8098_v24  ;;  %v7367_v35 = vadd.f32 %v7366_v51, %v7365_v36  ;;  %v7478_v46 = vpop.f32.mrf.mxu1 }
 0x886   :  { %6396 = vst [vmem:[%s10852_s14 + $0x118] sm:$0xff] %v8100_v62  ;;  %v7479_v25 = vadd.f32 %v7478_v46, %v7477_v50  ;;  %v7368_v45 = vpop.f32.mrf.mxu0 }
 0x887   :  { %8113 = vtanh.f32 %v7367_v35  ;;  %v7480_v18 = vpop.f32.mrf.mxu1 }
 0x888   :  { %v8102_v48 = vpop.eup %8101  ;;  %8115 = vtanh.f32 %v7479_v25  ;;  %v7369_v42 = vpop.f32.mrf.mxu0 }
 0x889   :  { %v8104_v34 = vpop.eup %8103  ;;  %6333 = vst [vmem:[%s10852_s14 + $0x20] sm:$0xff] %v8102_v48  ;;  %v7370_v61 = vadd.f32 %v7369_v42, %v7368_v45  ;;  %v7481_v19 = vpop.f32.mrf.mxu1 }
 0x88a   :  { %6397 = vst [vmem:[%s10852_s14 + $0x120] sm:$0xff] %v8104_v34  ;;  %v7482_v57 = vadd.f32 %v7481_v19, %v7480_v18  ;;  %v7371_v22 = vpop.f32.mrf.mxu0 }
 0x88b   :  { %8117 = vtanh.f32 %v7370_v61  ;;  %v7483_v12 = vpop.f32.mrf.mxu1 }
 0x88c   :  { %v8106_v23 = vpop.eup %8105  ;;  %8119 = vtanh.f32 %v7482_v57  ;;  %v7372_v63 = vpop.f32.mrf.mxu0 }
 0x88d   :  { %v8108_v38 = vpop.eup %8107  ;;  %6334 = vst [vmem:[%s10852_s14 + $0x28] sm:$0xff] %v8106_v23  ;;  %v7373_v44 = vadd.f32 %v7372_v63, %v7371_v22  ;;  %v7484_v55 = vpop.f32.mrf.mxu1 }
 0x88e   :  { %6398 = vst [vmem:[%s10852_s14 + $0x128] sm:$0xff] %v8108_v38  ;;  %v7485_v31 = vadd.f32 %v7484_v55, %v7483_v12  ;;  %v7374_v5 = vpop.f32.mrf.mxu0 }
 0x88f   :  { %8121 = vtanh.f32 %v7373_v44  ;;  %v7486_v20 = vpop.f32.mrf.mxu1 }
 0x890   :  { %v8110_v16 = vpop.eup %8109  ;;  %8123 = vtanh.f32 %v7485_v31  ;;  %v7375_v6 = vpop.f32.mrf.mxu0 }
 0x891   :  { %v8112_v17 = vpop.eup %8111  ;;  %6335 = vst [vmem:[%s10852_s14 + $0x30] sm:$0xff] %v8110_v16  ;;  %v7376_v58 = vadd.f32 %v7375_v6, %v7374_v5  ;;  %v7487_v54 = vpop.f32.mrf.mxu1 }
 0x892   :  { %6399 = vst [vmem:[%s10852_s14 + $0x130] sm:$0xff] %v8112_v17  ;;  %v7488_v43 = vadd.f32 %v7487_v54, %v7486_v20  ;;  %v7377_v1 = vpop.f32.mrf.mxu0 }
 0x893   :  { %8125 = vtanh.f32 %v7376_v58  ;;  %v7489_v49 = vpop.f32.mrf.mxu1 }
 0x894   :  { %v8114_v30 = vpop.eup %8113  ;;  %8127 = vtanh.f32 %v7488_v43  ;;  %v7378_v33 = vpop.f32.mrf.mxu0 }
 0x895   :  { %v8116_v21 = vpop.eup %8115  ;;  %6336 = vst [vmem:[%s10852_s14 + $0x38] sm:$0xff] %v8114_v30  ;;  %v7379_v10 = vadd.f32 %v7378_v33, %v7377_v1  ;;  %v7490_v15 = vpop.f32.mrf.mxu1 }
 0x896   :  { %6400 = vst [vmem:[%s10852_s14 + $0x138] sm:$0xff] %v8116_v21  ;;  %v7491_v41 = vadd.f32 %v7490_v15, %v7489_v49  ;;  %v7380_v32 = vpop.f32.mrf.mxu0 }
 0x897   :  { %8129 = vtanh.f32 %v7379_v10  ;;  %v7492_v60 = vpop.f32.mrf.mxu1 }
 0x898   :  { %v8118_v27 = vpop.eup %8117  ;;  %8131 = vtanh.f32 %v7491_v41  ;;  %v7381_v29 = vpop.f32.mrf.mxu0 }
 0x899   :  { %v8120_v56 = vpop.eup %8119  ;;  %6337 = vst [vmem:[%s10852_s14 + $0x40] sm:$0xff] %v8118_v27  ;;  %v7382_v11 = vadd.f32 %v7381_v29, %v7380_v32  ;;  %v7493_v8 = vpop.f32.mrf.mxu1 }
 0x89a   :  { %6401 = vst [vmem:[%s10852_s14 + $0x140] sm:$0xff] %v8120_v56  ;;  %v7494_v59 = vadd.f32 %v7493_v8, %v7492_v60  ;;  %v7383_v4 = vpop.f32.mrf.mxu0 }
 0x89b   :  { %8133 = vtanh.f32 %v7382_v11  ;;  %v7495_v53 = vpop.f32.mrf.mxu1 }
 0x89c   :  { %v8122_v7 = vpop.eup %8121  ;;  %8135 = vtanh.f32 %v7494_v59  ;;  %v7384_v47 = vpop.f32.mrf.mxu0 }
 0x89d   :  { %v8124_v2 = vpop.eup %8123  ;;  %6338 = vst [vmem:[%s10852_s14 + $0x48] sm:$0xff] %v8122_v7  ;;  %v7385_v9 = vadd.f32 %v7384_v47, %v7383_v4  ;;  %v7496_v37 = vpop.f32.mrf.mxu1 }
 0x89e   :  { %6402 = vst [vmem:[%s10852_s14 + $0x148] sm:$0xff] %v8124_v2  ;;  %v7497_v0 = vadd.f32 %v7496_v37, %v7495_v53  ;;  %v7386_v26 = vpop.f32.mrf.mxu0 }
 0x89f   :  { %8137 = vtanh.f32 %v7385_v9  ;;  %v7498_v28 = vpop.f32.mrf.mxu1 }
 0x8a0   :  { %v8126_v3 = vpop.eup %8125  ;;  %8139 = vtanh.f32 %v7497_v0  ;;  %v7387_v39 = vpop.f32.mrf.mxu0 }
 0x8a1   :  { %v8128_v40 = vpop.eup %8127  ;;  %6339 = vst [vmem:[%s10852_s14 + $0x50] sm:$0xff] %v8126_v3  ;;  %v7388_v52 = vadd.f32 %v7387_v39, %v7386_v26  ;;  %v7499_v13 = vpop.f32.mrf.mxu1 }
 0x8a2   :  { %6403 = vst [vmem:[%s10852_s14 + $0x150] sm:$0xff] %v8128_v40  ;;  %v7500_v14 = vadd.f32 %v7499_v13, %v7498_v28  ;;  %v7389_v36 = vpop.f32.mrf.mxu0 }
 0x8a3   :  { %8141 = vtanh.f32 %v7388_v52  ;;  %v7501_v50 = vpop.f32.mrf.mxu1 }
 0x8a4   :  { %v8130_v24 = vpop.eup %8129  ;;  %8143 = vtanh.f32 %v7500_v14  ;;  %v7390_v51 = vpop.f32.mrf.mxu0 }
 0x8a5   :  { %v8132_v62 = vpop.eup %8131  ;;  %6340 = vst [vmem:[%s10852_s14 + $0x58] sm:$0xff] %v8130_v24  ;;  %v7391_v35 = vadd.f32 %v7390_v51, %v7389_v36  ;;  %v7502_v46 = vpop.f32.mrf.mxu1 }
 0x8a6   :  { %6404 = vst [vmem:[%s10852_s14 + $0x158] sm:$0xff] %v8132_v62  ;;  %v7503_v25 = vadd.f32 %v7502_v46, %v7501_v50  ;;  %v7392_v45 = vpop.f32.mrf.mxu0 }
 0x8a7   :  { %8145 = vtanh.f32 %v7391_v35  ;;  %v7504_v18 = vpop.f32.mrf.mxu1 }
 0x8a8   :  { %v8134_v48 = vpop.eup %8133  ;;  %8147 = vtanh.f32 %v7503_v25  ;;  %v7393_v42 = vpop.f32.mrf.mxu0 }
 0x8a9   :  { %v8136_v34 = vpop.eup %8135  ;;  %6341 = vst [vmem:[%s10852_s14 + $0x60] sm:$0xff] %v8134_v48  ;;  %v7394_v61 = vadd.f32 %v7393_v42, %v7392_v45  ;;  %v7505_v19 = vpop.f32.mrf.mxu1 }
 0x8aa   :  { %6405 = vst [vmem:[%s10852_s14 + $0x160] sm:$0xff] %v8136_v34  ;;  %v7506_v57 = vadd.f32 %v7505_v19, %v7504_v18  ;;  %v7395_v22 = vpop.f32.mrf.mxu0 }
 0x8ab   :  { %8149 = vtanh.f32 %v7394_v61  ;;  %v7507_v12 = vpop.f32.mrf.mxu1 }
 0x8ac   :  { %v8138_v23 = vpop.eup %8137  ;;  %8151 = vtanh.f32 %v7506_v57  ;;  %v7396_v63 = vpop.f32.mrf.mxu0 }
 0x8ad   :  { %v8140_v38 = vpop.eup %8139  ;;  %6342 = vst [vmem:[%s10852_s14 + $0x68] sm:$0xff] %v8138_v23  ;;  %v7397_v44 = vadd.f32 %v7396_v63, %v7395_v22  ;;  %v7508_v55 = vpop.f32.mrf.mxu1 }
 0x8ae   :  { %6406 = vst [vmem:[%s10852_s14 + $0x168] sm:$0xff] %v8140_v38  ;;  %v7509_v31 = vadd.f32 %v7508_v55, %v7507_v12  ;;  %v7398_v5 = vpop.f32.mrf.mxu0 }
 0x8af   :  { %8153 = vtanh.f32 %v7397_v44  ;;  %v7510_v20 = vpop.f32.mrf.mxu1 }
 0x8b0   :  { %v8142_v16 = vpop.eup %8141  ;;  %8155 = vtanh.f32 %v7509_v31  ;;  %v7399_v6 = vpop.f32.mrf.mxu0 }
 0x8b1   :  { %v8144_v17 = vpop.eup %8143  ;;  %6343 = vst [vmem:[%s10852_s14 + $0x70] sm:$0xff] %v8142_v16  ;;  %v7400_v58 = vadd.f32 %v7399_v6, %v7398_v5  ;;  %v7511_v54 = vpop.f32.mrf.mxu1 }
 0x8b2   :  { %6407 = vst [vmem:[%s10852_s14 + $0x170] sm:$0xff] %v8144_v17  ;;  %v7512_v43 = vadd.f32 %v7511_v54, %v7510_v20  ;;  %v7401_v1 = vpop.f32.mrf.mxu0 }
 0x8b3   :  { %8157 = vtanh.f32 %v7400_v58  ;;  %v7513_v49 = vpop.f32.mrf.mxu1 }
 0x8b4   :  { %v8146_v30 = vpop.eup %8145  ;;  %8159 = vtanh.f32 %v7512_v43  ;;  %v7402_v33 = vpop.f32.mrf.mxu0 }
 0x8b5   :  { %v8148_v21 = vpop.eup %8147  ;;  %6344 = vst [vmem:[%s10852_s14 + $0x78] sm:$0xff] %v8146_v30  ;;  %v7403_v10 = vadd.f32 %v7402_v33, %v7401_v1  ;;  %v7514_v15 = vpop.f32.mrf.mxu1 }
 0x8b6   :  { %6408 = vst [vmem:[%s10852_s14 + $0x178] sm:$0xff] %v8148_v21  ;;  %v7515_v41 = vadd.f32 %v7514_v15, %v7513_v49  ;;  %v7404_v32 = vpop.f32.mrf.mxu0 }
 0x8b7   :  { %8161 = vtanh.f32 %v7403_v10  ;;  %v7516_v60 = vpop.f32.mrf.mxu1 }
 0x8b8   :  { %v8150_v27 = vpop.eup %8149  ;;  %8163 = vtanh.f32 %v7515_v41  ;;  %v7405_v29 = vpop.f32.mrf.mxu0 }
 0x8b9   :  { %v8152_v56 = vpop.eup %8151  ;;  %6345 = vst [vmem:[%s10852_s14 + $0x80] sm:$0xff] %v8150_v27  ;;  %v7406_v11 = vadd.f32 %v7405_v29, %v7404_v32  ;;  %v7517_v8 = vpop.f32.mrf.mxu1 }
 0x8ba   :  { %6409 = vst [vmem:[%s10852_s14 + $0x180] sm:$0xff] %v8152_v56  ;;  %v7518_v59 = vadd.f32 %v7517_v8, %v7516_v60  ;;  %v7407_v4 = vpop.f32.mrf.mxu0 }
 0x8bb   :  { %8165 = vtanh.f32 %v7406_v11  ;;  %v7519_v53 = vpop.f32.mrf.mxu1 }
 0x8bc   :  { %v8154_v7 = vpop.eup %8153  ;;  %8167 = vtanh.f32 %v7518_v59  ;;  %v7408_v47 = vpop.f32.mrf.mxu0 }
 0x8bd   :  { %v8156_v2 = vpop.eup %8155  ;;  %6346 = vst [vmem:[%s10852_s14 + $0x88] sm:$0xff] %v8154_v7  ;;  %v7409_v9 = vadd.f32 %v7408_v47, %v7407_v4  ;;  %v7520_v37 = vpop.f32.mrf.mxu1 }
 0x8be   :  { %6410 = vst [vmem:[%s10852_s14 + $0x188] sm:$0xff] %v8156_v2  ;;  %v7521_v0 = vadd.f32 %v7520_v37, %v7519_v53  ;;  %v7410_v26 = vpop.f32.mrf.mxu0 }
 0x8bf   :  { %8169 = vtanh.f32 %v7409_v9  ;;  %v7522_v28 = vpop.f32.mrf.mxu1 }
 0x8c0   :  { %v8158_v3 = vpop.eup %8157  ;;  %8171 = vtanh.f32 %v7521_v0  ;;  %v7411_v39 = vpop.f32.mrf.mxu0 }
 0x8c1   :  { %v8160_v40 = vpop.eup %8159  ;;  %6347 = vst [vmem:[%s10852_s14 + $0x90] sm:$0xff] %v8158_v3  ;;  %v7412_v52 = vadd.f32 %v7411_v39, %v7410_v26  ;;  %v7523_v13 = vpop.f32.mrf.mxu1 }
 0x8c2   :  { %6411 = vst [vmem:[%s10852_s14 + $0x190] sm:$0xff] %v8160_v40  ;;  %v7524_v14 = vadd.f32 %v7523_v13, %v7522_v28  ;;  %v7413_v36 = vpop.f32.mrf.mxu0 }
 0x8c3   :  { %8173 = vtanh.f32 %v7412_v52  ;;  %v7525_v50 = vpop.f32.mrf.mxu1 }
 0x8c4   :  { %v8162_v24 = vpop.eup %8161  ;;  %8175 = vtanh.f32 %v7524_v14  ;;  %v7414_v51 = vpop.f32.mrf.mxu0 }
 0x8c5   :  { %v8164_v62 = vpop.eup %8163  ;;  %6348 = vst [vmem:[%s10852_s14 + $0x98] sm:$0xff] %v8162_v24  ;;  %v7415_v35 = vadd.f32 %v7414_v51, %v7413_v36  ;;  %v7526_v46 = vpop.f32.mrf.mxu1 }
 0x8c6   :  { %6412 = vst [vmem:[%s10852_s14 + $0x198] sm:$0xff] %v8164_v62  ;;  %v7527_v25 = vadd.f32 %v7526_v46, %v7525_v50  ;;  %v7416_v45 = vpop.f32.mrf.mxu0 }
 0x8c7   :  { %8177 = vtanh.f32 %v7415_v35  ;;  %v7528_v18 = vpop.f32.mrf.mxu1 }
 0x8c8   :  { %v8166_v48 = vpop.eup %8165  ;;  %8179 = vtanh.f32 %v7527_v25  ;;  %v7417_v42 = vpop.f32.mrf.mxu0 }
 0x8c9   :  { %v8168_v34 = vpop.eup %8167  ;;  %6349 = vst [vmem:[%s10852_s14 + $0xa0] sm:$0xff] %v8166_v48  ;;  %v7418_v61 = vadd.f32 %v7417_v42, %v7416_v45  ;;  %v7529_v19 = vpop.f32.mrf.mxu1 }
 0x8ca   :  { %6413 = vst [vmem:[%s10852_s14 + $0x1a0] sm:$0xff] %v8168_v34  ;;  %v7530_v57 = vadd.f32 %v7529_v19, %v7528_v18  ;;  %v7419_v22 = vpop.f32.mrf.mxu0 }
 0x8cb   :  { %8181 = vtanh.f32 %v7418_v61  ;;  %v7531_v12 = vpop.f32.mrf.mxu1 }
 0x8cc   :  { %v8170_v23 = vpop.eup %8169  ;;  %8183 = vtanh.f32 %v7530_v57  ;;  %v7420_v63 = vpop.f32.mrf.mxu0 }
 0x8cd   :  { %v8172_v38 = vpop.eup %8171  ;;  %6350 = vst [vmem:[%s10852_s14 + $0xa8] sm:$0xff] %v8170_v23  ;;  %v7421_v44 = vadd.f32 %v7420_v63, %v7419_v22  ;;  %v7532_v55 = vpop.f32.mrf.mxu1 }
 0x8ce   :  { %6414 = vst [vmem:[%s10852_s14 + $0x1a8] sm:$0xff] %v8172_v38  ;;  %v7533_v31 = vadd.f32 %v7532_v55, %v7531_v12  ;;  %v7422_v5 = vpop.f32.mrf.mxu0 }
 0x8cf   :  { %8185 = vtanh.f32 %v7421_v44  ;;  %v7534_v20 = vpop.f32.mrf.mxu1 }
 0x8d0   :  { %v8174_v16 = vpop.eup %8173  ;;  %8187 = vtanh.f32 %v7533_v31  ;;  %v7423_v6 = vpop.f32.mrf.mxu0 }
 0x8d1   :  { %v8176_v17 = vpop.eup %8175  ;;  %6351 = vst [vmem:[%s10852_s14 + $0xb0] sm:$0xff] %v8174_v16  ;;  %v7424_v58 = vadd.f32 %v7423_v6, %v7422_v5  ;;  %v7535_v54 = vpop.f32.mrf.mxu1 }
 0x8d2   :  { %6415 = vst [vmem:[%s10852_s14 + $0x1b0] sm:$0xff] %v8176_v17  ;;  %v7536_v43 = vadd.f32 %v7535_v54, %v7534_v20  ;;  %v7425_v1 = vpop.f32.mrf.mxu0 }
 0x8d3   :  { %8189 = vtanh.f32 %v7424_v58  ;;  %v7537_v49 = vpop.f32.mrf.mxu1 }
 0x8d4   :  { %v8178_v30 = vpop.eup %8177  ;;  %8191 = vtanh.f32 %v7536_v43  ;;  %v7426_v33 = vpop.f32.mrf.mxu0 }
 0x8d5   :  { %v8180_v21 = vpop.eup %8179  ;;  %6352 = vst [vmem:[%s10852_s14 + $0xb8] sm:$0xff] %v8178_v30  ;;  %v7427_v10 = vadd.f32 %v7426_v33, %v7425_v1  ;;  %v7538_v15 = vpop.f32.mrf.mxu1 }
 0x8d6   :  { %6416 = vst [vmem:[%s10852_s14 + $0x1b8] sm:$0xff] %v8180_v21  ;;  %v7539_v41 = vadd.f32 %v7538_v15, %v7537_v49  ;;  %v7428_v32 = vpop.f32.mrf.mxu0 }
 0x8d7   :  { %8193 = vtanh.f32 %v7427_v10  ;;  %v7540_v60 = vpop.f32.mrf.mxu1 }
 0x8d8   :  { %v8182_v27 = vpop.eup %8181  ;;  %8195 = vtanh.f32 %v7539_v41  ;;  %v7429_v29 = vpop.f32.mrf.mxu0 }
 0x8d9   :  { %v8184_v56 = vpop.eup %8183  ;;  %6353 = vst [vmem:[%s10852_s14 + $0xc0] sm:$0xff] %v8182_v27  ;;  %v7430_v11 = vadd.f32 %v7429_v29, %v7428_v32  ;;  %v7541_v8 = vpop.f32.mrf.mxu1 }
 0x8da   :  { %6417 = vst [vmem:[%s10852_s14 + $0x1c0] sm:$0xff] %v8184_v56  ;;  %v7542_v59 = vadd.f32 %v7541_v8, %v7540_v60  ;;  %v7431_v4 = vpop.f32.mrf.mxu0 }
 0x8db   :  { %8197 = vtanh.f32 %v7430_v11  ;;  %v7543_v53 = vpop.f32.mrf.mxu1 }
 0x8dc   :  { %v8186_v7 = vpop.eup %8185  ;;  %8199 = vtanh.f32 %v7542_v59  ;;  %v7432_v47 = vpop.f32.mrf.mxu0 }
 0x8dd   :  { %v8188_v2 = vpop.eup %8187  ;;  %6354 = vst [vmem:[%s10852_s14 + $0xc8] sm:$0xff] %v8186_v7  ;;  %v7433_v9 = vadd.f32 %v7432_v47, %v7431_v4  ;;  %v7544_v37 = vpop.f32.mrf.mxu1 }
 0x8de   :  { %6418 = vst [vmem:[%s10852_s14 + $0x1c8] sm:$0xff] %v8188_v2  ;;  %v7545_v0 = vadd.f32 %v7544_v37, %v7543_v53  ;;  %v7434_v26 = vpop.f32.mrf.mxu0 }
 0x8df   :  { %8201 = vtanh.f32 %v7433_v9  ;;  %v7546_v28 = vpop.f32.mrf.mxu1 }
 0x8e0   :  { %v8190_v3 = vpop.eup %8189  ;;  %8203 = vtanh.f32 %v7545_v0  ;;  %v7435_v39 = vpop.f32.mrf.mxu0 }
 0x8e1   :  { %v8192_v40 = vpop.eup %8191  ;;  %6355 = vst [vmem:[%s10852_s14 + $0xd0] sm:$0xff] %v8190_v3  ;;  %v7436_v52 = vadd.f32 %v7435_v39, %v7434_v26  ;;  %v7547_v13 = vpop.f32.mrf.mxu1 }
 0x8e2   :  { %6419 = vst [vmem:[%s10852_s14 + $0x1d0] sm:$0xff] %v8192_v40  ;;  %v7548_v14 = vadd.f32 %v7547_v13, %v7546_v28  ;;  %v7437_v36 = vpop.f32.mrf.mxu0 }
 0x8e3   :  { %8205 = vtanh.f32 %v7436_v52  ;;  %v7549_v50 = vpop.f32.mrf.mxu1 }
 0x8e4   :  { %v8194_v24 = vpop.eup %8193  ;;  %8207 = vtanh.f32 %v7548_v14  ;;  %v7438_v51 = vpop.f32.mrf.mxu0 }
 0x8e5   :  { %v8196_v62 = vpop.eup %8195  ;;  %6356 = vst [vmem:[%s10852_s14 + $0xd8] sm:$0xff] %v8194_v24  ;;  %v7439_v35 = vadd.f32 %v7438_v51, %v7437_v36  ;;  %v7550_v46 = vpop.f32.mrf.mxu1 }
 0x8e6   :  { %6420 = vst [vmem:[%s10852_s14 + $0x1d8] sm:$0xff] %v8196_v62  ;;  %v7551_v25 = vadd.f32 %v7550_v46, %v7549_v50 }
 0x8e7   :  { %8209 = vtanh.f32 %v7439_v35 }
 0x8e8   :  { %v8198_v45 = vpop.eup %8197  ;;  %8211 = vtanh.f32 %v7551_v25 }
 0x8e9   :  { %v8200_v18 = vpop.eup %8199  ;;  %6357 = vst [vmem:[%s10852_s14 + $0xe0] sm:$0xff] %v8198_v45 }
 0x8ea   :  { %6421 = vst [vmem:[%s10852_s14 + $0x1e0] sm:$0xff] %v8200_v18 }
 0x8ec   :  { %v8202_v48 = vpop.eup %8201 }
 0x8ed   :  { %v8204_v42 = vpop.eup %8203  ;;  %6358 = vst [vmem:[%s10852_s14 + $0xe8] sm:$0xff] %v8202_v48 }
 0x8ee   :  { %6422 = vst [vmem:[%s10852_s14 + $0x1e8] sm:$0xff] %v8204_v42 }
 0x8f0   :  { %v8206_v34 = vpop.eup %8205 }
 0x8f1   :  { %v8208_v61 = vpop.eup %8207  ;;  %6359 = vst [vmem:[%s10852_s14 + $0xf0] sm:$0xff] %v8206_v34 }
 0x8f2   :  { %6423 = vst [vmem:[%s10852_s14 + $0x1f0] sm:$0xff] %v8208_v61 }
 0x8f4   :  { %v8210_v19 = vpop.eup %8209 }
 0x8f5   :  { %v8212_v57 = vpop.eup %8211  ;;  %6360 = vst [vmem:[%s10852_s14 + $0xf8] sm:$0xff] %v8210_v19 }
 0x8f6   :  { %6424 = vst [vmem:[%s10852_s14 + $0x1f8] sm:$0xff] %v8212_v57 }
 0x8f7   :  { %6429 = vsyncmov [#allocation7] }
 0x8fa   :  { %s6430_s17 = vpop.sfrf %6429 }
 0x8fb   :  { %p7035_p6 = scmp.ne.s32.totalorder %s6430_s17, 0 }
 0x8fd   :  { %6434 = shalt.err (%p7035_p6)  }
 0x8fe   :  { %6436 = vsyncmov [#allocation7 + $0x1] }
 0x901   :  { %s6437_s18 = vpop.sfrf %6436 }
 0x902   :  { %p7036_p7 = scmp.ne.s32.totalorder %s6437_s18, 0 }
 0x904   :  { %6441 = shalt.err (%p7036_p7)  }
 0x905   :  { %6443 = vsyncmov [#allocation7 + $0x2] }
 0x908   :  { %s6444_s19 = vpop.sfrf %6443 }
 0x909   :  { %p7037_p8 = scmp.ne.s32.totalorder %s6444_s19, 0 }
 0x90b   :  { %6448 = shalt.err (%p7037_p8)  }
 0x90c   :  { %6450 = vsyncmov [#allocation7 + $0x3] }
 0x90f   :  { %s6451_s9 = vpop.sfrf %6450 }
 0x910   :  { %p7038_p9 = scmp.ne.s32.totalorder %s6451_s9, 0 }
 0x912   :  { %6455 = shalt.err (%p7038_p9)  }
 0x913   :  { %6457 = vsyncmov [#allocation7 + $0x4] }
 0x916   :  { %s6458_s20 = vpop.sfrf %6457 }
 0x917   :  { %p7039_p10 = scmp.ne.s32.totalorder %s6458_s20, 0 }
 0x919   :  { %6462 = shalt.err (%p7039_p10)  }

</bundles_post_ra>
